<compile_context>
chip_gen: v5e
topology: v5e:2x2
jax: 0.10.0
libtpu: 0.0.40
codegen_flags: <defaults>
</compile_context>

<pallas_src>
import functools

import jax
import jax.numpy as jnp
from jax import lax
from jax.experimental import pallas as pl
from jax.experimental.pallas import tpu as pltpu


def _elu(z):
    # ELU(alpha=1); clamp exp arg so the unselected branch stays finite.
    return jnp.where(z > 0, z, jnp.exp(jnp.minimum(z, 0.0)) - 1.0)


# ----------------------------- fused kernel ----------------------------------
# Time-axis factorisation (T = 750):  t = r2 + 2*r3 + 6*r5 + 30*v
#   r2 in [0,2) : block2 conv tap          r3 in [0,3) : MaxPool(2,3) tap
#   r5 in [0,5) : block3 conv tap          v  in [0,25): block3 output index
# Input lanes  : bi*25 + v   (bi = batch element inside the tile)
# Input rows   : u*C + c     (u = r2 + 2*r3 + 6*r5)
# block1 rows  : ((r2*3 + r3)*2 + ph)*24 + (r5*4 + g)   (h = 2*g + ph, 4 dead
#                rows per 24 keep every slice boundary a multiple of 8).
def _fused_kernel(x_ref, w1_ref, b1_ref, w3_ref, b3_ref, s_ref, gm_ref,
                  wc_ref, w2s_ref, bc_ref, o_ref):
    x = x_ref[...]                                           # (30*C, Bt*25)

    # ---- block1: Conv2d(1,8,(C,1)) + folded BN + ELU (one MXU matmul) -------
    a1 = jnp.dot(w1_ref[...], x, preferred_element_type=jnp.float32)  # (288, N)
    a1 = _elu(a1 + b1_ref[...])

    even = a1[0:144, :]      # r2 == 0  -> conv2 tap at t = 2w
    odd = a1[144:288, :]     # r2 == 1  -> conv2 tap at t = 2w + 1

    # ---- block2 conv + BN + ELU + MaxPool(2,3), then block3 conv ------------
    acc = None
    for j in range(4):                       # block2 output channels
        we = w2s_ref[j, 0]                   # folded conv2 weights / bias
        wo = w2s_ref[j, 1]
        bb = w2s_ref[j, 2]
        z = _elu(even * we + odd * wo + bb)                  # (144, N)
        # MaxPool2d((2,3)): max over the 3 time taps (48-row blocks) ...
        m = jnp.maximum(jnp.maximum(z[0:48, :], z[48:96, :]), z[96:144, :])
        # ... and over the channel pairs (24-row blocks).
        p = jnp.maximum(m[0:24, :], m[24:48, :])             # (24, N)
        # block3 Conv2d(4,2,(2,5),stride(2,5)) contribution of this channel.
        c = jnp.dot(w3_ref[j], p, preferred_element_type=jnp.float32)  # (4, N)
        acc = c if acc is None else acc + c
    z3 = _elu(acc + b3_ref[...])             # (4, N), rows = oc3*2 + h3

    # ---- MaxPool2d((1,5)): gather the 5 taps via selection matmuls, max -----
    pooled = None
    for r in range(5):
        tap = jnp.dot(z3, s_ref[r], preferred_element_type=jnp.float32)  # (4, Bt*5)
        pooled = tap if pooled is None else jnp.maximum(pooled, tap)

    # ---- classifier: Linear(20,2) + Softmax, segmented per batch element ----
    logits = []
    for cl in range(2):
        t = pooled * wc_ref[cl]                                          # (4, Bt*5)
        t = jnp.dot(t, gm_ref[...], preferred_element_type=jnp.float32)  # (4, Bt)
        logits.append(jnp.sum(t, axis=0, keepdims=True) + bc_ref[cl])    # (1, Bt)
    l0, l1 = logits
    mx = jnp.maximum(l0, l1)
    e0 = jnp.exp(l0 - mx)
    e1 = jnp.exp(l1 - mx)
    inv = 1.0 / (e0 + e1)
    o_ref[0:1, :] = e0 * inv
    o_ref[1:2, :] = e1 * inv


# ----------------------- wrapper-side weight folding --------------------------
def _prepare_operands(params, C, Bt, eps=1e-5):
    f32 = jnp.float32

    def bn_fold(bn):
        sc = bn["gamma"] / jnp.sqrt(bn["var"] + eps)
        sh = bn["beta"] - bn["mean"] * sc
        return sc, sh

    sc1, sh1 = bn_fold(params["bn1"])
    sc2, sh2 = bn_fold(params["bn2"])
    sc3, sh3 = bn_fold(params["bn3"])

    w1f = params["W1"][:, 0, :, 0] * sc1[:, None]            # (8, C)
    b1f = params["b1"] * sc1 + sh1                           # (8,)
    we = params["W2"][:, 0, 0, 0] * sc2                      # (4,)
    wo = params["W2"][:, 0, 0, 1] * sc2                      # (4,)
    bb = params["b2"] * sc2 + sh2                            # (4,)
    W3f = params["W3"] * sc3[:, None, None, None]            # (2, 4, 2, 5)
    b3f = params["b3"] * sc3 + sh3                           # (2,)

    # block1 weight as a block-sparse (288, 30*C) matrix.
    r2 = jnp.arange(2)
    r3 = jnp.arange(3)
    r5 = jnp.arange(5)
    u_idx = r2[:, None, None] + 2 * r3[None, :, None] + 6 * r5[None, None, :]
    u_oh = jax.nn.one_hot(u_idx, 30, dtype=f32)              # (2,3,5,30)
    w1_pg = w1f.reshape(4, 2, C).transpose(1, 0, 2)          # (ph, g, c)
    T = (u_oh[:, :, None, :, None, :, None] *
         w1_pg[None, None, :, None, :, None, :])             # (2,3,2,5,4,30,C)
    T = T.reshape(2, 3, 2, 20, 30 * C)
    T = jnp.pad(T, ((0, 0), (0, 0), (0, 0), (0, 4), (0, 0)))
    w1_big = T.reshape(288, 30 * C).astype(f32)

    b1_pg = b1f.reshape(4, 2).T                              # (ph, g)
    b1_blk = jnp.broadcast_to(b1_pg[:, None, :], (2, 5, 4)).reshape(2, 20)
    b1_blk = jnp.pad(b1_blk, ((0, 0), (0, 4)))               # (2, 24)
    b1_big = jnp.broadcast_to(b1_blk[None, None], (2, 3, 2, 24))
    b1_big = b1_big.reshape(288, 1).astype(f32)

    # block2 per-channel scalars (SMEM).
    w2s = jnp.stack([we, wo, bb], axis=1).astype(f32)        # (4, 3)

    # block3 weight: one (4, 24) matrix per block2 channel.
    gg = jnp.arange(4)
    sel = (gg[None, :] // 2 == jnp.arange(2)[:, None]).astype(f32)   # (h3, g)
    w3_g = W3f[:, :, gg % 2, :]                              # (o3, j, g, dr)
    w3_e = w3_g[:, None, :, :, :] * sel[None, :, None, :, None]      # (o3,h3,j,g,dr)
    w3_e = w3_e.transpose(2, 0, 1, 4, 3)                     # (j, o3, h3, dr, g)
    w3_big = jnp.pad(w3_e.reshape(4, 4, 20),
                     ((0, 0), (0, 0), (0, 4))).astype(f32)   # (4, 4, 24)

    b3_big = jnp.repeat(b3f, 2).reshape(4, 1).astype(f32)    # rows = o3*2 + h3

    # MaxPool(1,5) tap-selection matrices and per-batch segment summer.
    lane_out = jnp.arange(Bt * 5)
    need = ((lane_out[None, :] // 5) * 25 + (lane_out[None, :] % 5) * 5
            + jnp.arange(5)[:, None])                        # (5, Bt*5)
    s_sel = (jnp.arange(Bt * 25)[None, :, None]
             == need[:, None, :]).astype(f32)                # (5, Bt*25, Bt*5)
    gm = (jnp.arange(Bt * 5)[:, None] // 5
          == jnp.arange(Bt)[None, :]).astype(f32)            # (Bt*5, Bt)

    # classifier weights, tiled across the batch lane segments.
    wc_k = params["Wc"].reshape(2, 4, 5)                     # (cl, o3*2+h3, w4)
    wc_t = jnp.tile(wc_k, (1, 1, Bt)).astype(f32)            # (2, 4, Bt*5)
    bc = params["bc"].astype(f32)                            # (2,)

    return w1_big, b1_big, w2s, w3_big, b3_big, s_sel, gm, wc_t, bc


@functools.partial(jax.jit, static_argnames="block_batch")
def brainnet_forward(x, params, block_batch=8):
    B, C, T = x.shape
    # The classifier Linear(20, 2) forces T = 750: 750/2=375, /3=125, conv->25, /5=5.
    assert T == 750, "Linear(20, 2) classifier requires T == 750"

    # batch tile size: largest divisor of B that is <= block_batch.
    Bt = min(B, block_batch)
    while B % Bt:
        Bt -= 1
    G = B // Bt
    N = Bt * 25

    (w1_big, b1_big, w2s, w3_big, b3_big,
     s_sel, gm, wc_t, bc) = _prepare_operands(params, C, Bt)

    # Input glue (single XLA transpose of the raw input):
    #   xk[g, u*C + c, bi*25 + v] = x[g*Bt + bi, c, 30*v + u]
    xk = (x.astype(jnp.float32)
           .reshape(G, Bt, C, 25, 30)
           .transpose(0, 4, 2, 1, 3)
           .reshape(G, 30 * C, N))

    out = pl.pallas_call(
        _fused_kernel,
        out_shape=jax.ShapeDtypeStruct((G, 2, Bt), jnp.float32),
        grid=(G,),
        in_specs=[
            pl.BlockSpec((None, 30 * C, N), lambda g: (g, 0, 0)),   # x tile
            pl.BlockSpec((288, 30 * C), lambda g: (0, 0)),          # W1 big
            pl.BlockSpec((288, 1), lambda g: (0, 0)),               # b1 big
            pl.BlockSpec((4, 4, 24), lambda g: (0, 0, 0)),          # W3 big
            pl.BlockSpec((4, 1), lambda g: (0, 0)),                 # b3 big
            pl.BlockSpec((5, N, Bt * 5), lambda g: (0, 0, 0)),      # pool3 select
            pl.BlockSpec((Bt * 5, Bt), lambda g: (0, 0)),           # segment sum
            pl.BlockSpec((2, 4, Bt * 5), lambda g: (0, 0, 0)),      # Wc tiled
            pl.BlockSpec(memory_space=pltpu.MemorySpace.SMEM),      # w2 scalars
            pl.BlockSpec(memory_space=pltpu.MemorySpace.SMEM),      # bc
        ],
        out_specs=pl.BlockSpec((None, 2, Bt), lambda g: (g, 0, 0)),
        compiler_params=pltpu.CompilerParams(
            dimension_semantics=("parallel",)),
    )(xk, w1_big, b1_big, w3_big, b3_big, s_sel, gm, wc_t, w2s, bc)

    return out.transpose(0, 2, 1).reshape(B, 2)


# ------------------------------ parameter init --------------------------------
def init_params(key, C):
    ks = jax.random.split(key, 12)

    def u(k, shape, fan_in):
        bound = 1.0 / jnp.sqrt(float(fan_in))
        return jax.random.uniform(k, shape, jnp.float32, -bound, bound)

    p = {
        "W1": u(ks[0], (8, 1, C, 1), C), "b1": u(ks[1], (8,), C),
        "W2": u(ks[2], (4, 1, 1, 2), 2), "b2": u(ks[3], (4,), 2),
        "W3": u(ks[4], (2, 4, 2, 5), 40), "b3": u(ks[5], (2,), 40),
        "Wc": u(ks[6], (2, 20), 20), "bc": u(ks[7], (2,), 20),
    }
    for i, (name, n) in enumerate([("bn1", 8), ("bn2", 4), ("bn3", 2)]):
        kg, kb, km, kv = jax.random.split(ks[8 + i], 4)
        p[name] = dict(
            gamma=1.0 + 0.1 * jax.random.normal(kg, (n,), jnp.float32),
            beta=0.1 * jax.random.normal(kb, (n,), jnp.float32),
            mean=0.1 * jax.random.normal(km, (n,), jnp.float32),
            var=1.0 + 0.1 * jax.random.uniform(kv, (n,), jnp.float32),
        )
    return p


# ---------------------------- pure-JAX reference ------------------------------
def reference_forward(x, params, eps=1e-5):
    B = x.shape[0]

    def bn(z, bnp):
        s = bnp["gamma"] / jnp.sqrt(bnp["var"] + eps)
        t = bnp["beta"] - bnp["mean"] * s
        return z * s[None, :, None, None] + t[None, :, None, None]

    def conv(z, w, strides):
        return lax.conv_general_dilated(z, w, window_strides=strides, padding="VALID",
                                        dimension_numbers=("NCHW", "OIHW", "NCHW"))

    def maxpool(z, win):
        return lax.reduce_window(z, -jnp.inf, lax.max, (1, 1) + win, (1, 1) + win, "VALID")

    z = x[:, None, :, :]
    z = _elu(bn(conv(z, params["W1"], (1, 1)) + params["b1"][None, :, None, None], params["bn1"]))
    z = jnp.transpose(z, (0, 2, 1, 3))
    z = _elu(bn(conv(z, params["W2"], (1, 2)) + params["b2"][None, :, None, None], params["bn2"]))
    z = maxpool(z, (2, 3))
    z = _elu(bn(conv(z, params["W3"], (2, 5)) + params["b3"][None, :, None, None], params["bn3"]))
    z = maxpool(z, (1, 5))
    flat = z.reshape(B, -1)
    logits = flat @ params["Wc"].T + params["bc"][None, :]
    return jax.nn.softmax(logits, axis=1)


if __name__ == "__main__":
    B, C, T = 2, 4, 750   # T=750 is the only length compatible with Linear(20, 2)
    x = jax.random.normal(jax.random.PRNGKey(0), (B, C, T), jnp.float32)
    params = init_params(jax.random.PRNGKey(1), C)

    y = jax.block_until_ready(brainnet_forward(x, params))
    y_ref = reference_forward(x, params)

    assert y.shape == (B, 2)
    assert bool(jnp.all(jnp.isfinite(y)))
    assert bool(jnp.allclose(jnp.sum(y, axis=1), 1.0, atol=1e-5))
    assert bool(jnp.allclose(y, y_ref, atol=2e-3, rtol=2e-3))
    print("KERNEL_OK")
</pallas_src>

<mosaic_0001>
module attributes {stable_mosaic.version = 11 : i64} {
  func.func @_fused_kernel(%arg0: i32, %arg1: memref<1x120x50xf32, #tpu.memory_space<vmem>>, %arg2: memref<288x120xf32, #tpu.memory_space<vmem>>, %arg3: memref<288x1xf32, #tpu.memory_space<vmem>>, %arg4: memref<4x4x24xf32, #tpu.memory_space<vmem>>, %arg5: memref<4x1xf32, #tpu.memory_space<vmem>>, %arg6: memref<5x50x10xf32, #tpu.memory_space<vmem>>, %arg7: memref<10x2xf32, #tpu.memory_space<vmem>>, %arg8: memref<2x4x10xf32, #tpu.memory_space<vmem>>, %arg9: memref<4x3xf32, #tpu.memory_space<smem>>, %arg10: memref<2xf32, #tpu.memory_space<smem>>, %arg11: memref<1x2x2xf32, #tpu.memory_space<vmem>>) attributes {dimension_semantics = [#tpu.dimension_semantics<parallel>], iteration_bounds = array<i64: 1>, scalar_prefetch = 0 : i64, scratch_operands = 0 : i64, tpu.core_type = #tpu.core_type<tc>, window_params = [{transform_indices = @transform_0, window_bounds = array<i64: 1, 120, 50>}, {pipeline_mode = #tpu.pipeline_mode<synchronous>, transform_indices = @transform_1, window_bounds = array<i64: 288, 120>}, {pipeline_mode = #tpu.pipeline_mode<synchronous>, transform_indices = @transform_2, window_bounds = array<i64: 288, 1>}, {pipeline_mode = #tpu.pipeline_mode<synchronous>, transform_indices = @transform_3, window_bounds = array<i64: 4, 4, 24>}, {pipeline_mode = #tpu.pipeline_mode<synchronous>, transform_indices = @transform_4, window_bounds = array<i64: 4, 1>}, {pipeline_mode = #tpu.pipeline_mode<synchronous>, transform_indices = @transform_5, window_bounds = array<i64: 5, 50, 10>}, {pipeline_mode = #tpu.pipeline_mode<synchronous>, transform_indices = @transform_6, window_bounds = array<i64: 10, 2>}, {pipeline_mode = #tpu.pipeline_mode<synchronous>, transform_indices = @transform_7, window_bounds = array<i64: 2, 4, 10>}, {transform_indices = @transform_8, window_bounds = array<i64: 4, 3>}, {transform_indices = @transform_9, window_bounds = array<i64: 2>}, {transform_indices = @transform_10, window_bounds = array<i64: 1, 2, 2>}]} {
    %c0 = arith.constant 0 : index
    %c0_0 = arith.constant 0 : index
    %c0_1 = arith.constant 0 : index
    %0 = vector.load %arg1[%c0, %c0_0, %c0_1] : memref<1x120x50xf32, #tpu.memory_space<vmem>>, vector<1x120x50xf32>
    %1 = vector.shape_cast %0 : vector<1x120x50xf32> to vector<120x50xf32>
    %c0_2 = arith.constant 0 : index
    %c0_3 = arith.constant 0 : index
    %2 = vector.load %arg2[%c0_2, %c0_3] : memref<288x120xf32, #tpu.memory_space<vmem>>, vector<288x120xf32>
    %cst = arith.constant dense<0.000000e+00> : vector<288x50xf32>
    %3 = tpu.matmul %2, %1, %cst {dimension_numbers = #tpu.dot_dimension_numbers<[1], [0], [0], [1], [0, 0, 1, 1], [], []>} : vector<288x120xf32>, vector<120x50xf32>, vector<288x50xf32> -> vector<288x50xf32>
    %c0_4 = arith.constant 0 : index
    %c0_5 = arith.constant 0 : index
    %4 = vector.load %arg3[%c0_4, %c0_5] : memref<288x1xf32, #tpu.memory_space<vmem>>, vector<288x1xf32>
    %5 = vector.broadcast %4 : vector<288x1xf32> to vector<288x50xf32>
    %6 = arith.addf %3, %5 : vector<288x50xf32>
    %cst_6 = arith.constant 0.000000e+00 : f32
    %7 = vector.broadcast %cst_6 : f32 to vector<288x50xf32>
    %8 = arith.cmpf ogt, %6, %7 : vector<288x50xf32>
    %cst_7 = arith.constant 0.000000e+00 : f32
    %9 = vector.broadcast %cst_7 : f32 to vector<288x50xf32>
    %10 = arith.minimumf %6, %9 : vector<288x50xf32>
    %11 = math.exp %10 : vector<288x50xf32>
    %cst_8 = arith.constant 1.000000e+00 : f32
    %12 = vector.broadcast %cst_8 : f32 to vector<288x50xf32>
    %13 = arith.subf %11, %12 : vector<288x50xf32>
    %14 = arith.select %8, %6, %13 : vector<288x50xi1>, vector<288x50xf32>
    %15 = vector.extract_strided_slice %14 {offsets = [0, 0], sizes = [144, 50], strides = [1, 1]} : vector<288x50xf32> to vector<144x50xf32>
    %16 = vector.extract_strided_slice %14 {offsets = [144, 0], sizes = [144, 50], strides = [1, 1]} : vector<288x50xf32> to vector<144x50xf32>
    %c0_9 = arith.constant 0 : index
    %c0_10 = arith.constant 0 : index
    %17 = memref.load %arg9[%c0_9, %c0_10] : memref<4x3xf32, #tpu.memory_space<smem>>
    %c0_11 = arith.constant 0 : index
    %c1 = arith.constant 1 : index
    %18 = memref.load %arg9[%c0_11, %c1] : memref<4x3xf32, #tpu.memory_space<smem>>
    %c0_12 = arith.constant 0 : index
    %c2 = arith.constant 2 : index
    %19 = memref.load %arg9[%c0_12, %c2] : memref<4x3xf32, #tpu.memory_space<smem>>
    %20 = vector.broadcast %17 : f32 to vector<144x50xf32>
    %21 = arith.mulf %15, %20 : vector<144x50xf32>
    %22 = vector.broadcast %18 : f32 to vector<144x50xf32>
    %23 = arith.mulf %16, %22 : vector<144x50xf32>
    %24 = arith.addf %21, %23 : vector<144x50xf32>
    %25 = vector.broadcast %19 : f32 to vector<144x50xf32>
    %26 = arith.addf %24, %25 : vector<144x50xf32>
    %cst_13 = arith.constant 0.000000e+00 : f32
    %27 = vector.broadcast %cst_13 : f32 to vector<144x50xf32>
    %28 = arith.cmpf ogt, %26, %27 : vector<144x50xf32>
    %cst_14 = arith.constant 0.000000e+00 : f32
    %29 = vector.broadcast %cst_14 : f32 to vector<144x50xf32>
    %30 = arith.minimumf %26, %29 : vector<144x50xf32>
    %31 = math.exp %30 : vector<144x50xf32>
    %cst_15 = arith.constant 1.000000e+00 : f32
    %32 = vector.broadcast %cst_15 : f32 to vector<144x50xf32>
    %33 = arith.subf %31, %32 : vector<144x50xf32>
    %34 = arith.select %28, %26, %33 : vector<144x50xi1>, vector<144x50xf32>
    %35 = vector.extract_strided_slice %34 {offsets = [0, 0], sizes = [48, 50], strides = [1, 1]} : vector<144x50xf32> to vector<48x50xf32>
    %36 = vector.extract_strided_slice %34 {offsets = [48, 0], sizes = [48, 50], strides = [1, 1]} : vector<144x50xf32> to vector<48x50xf32>
    %37 = arith.maximumf %35, %36 : vector<48x50xf32>
    %38 = vector.extract_strided_slice %34 {offsets = [96, 0], sizes = [48, 50], strides = [1, 1]} : vector<144x50xf32> to vector<48x50xf32>
    %39 = arith.maximumf %37, %38 : vector<48x50xf32>
    %40 = vector.extract_strided_slice %39 {offsets = [0, 0], sizes = [24, 50], strides = [1, 1]} : vector<48x50xf32> to vector<24x50xf32>
    %41 = vector.extract_strided_slice %39 {offsets = [24, 0], sizes = [24, 50], strides = [1, 1]} : vector<48x50xf32> to vector<24x50xf32>
    %42 = arith.maximumf %40, %41 : vector<24x50xf32>
    %c0_16 = arith.constant 0 : index
    %c0_17 = arith.constant 0 : index
    %c0_18 = arith.constant 0 : index
    %43 = vector.load %arg4[%c0_16, %c0_17, %c0_18] : memref<4x4x24xf32, #tpu.memory_space<vmem>>, vector<1x4x24xf32>
    %44 = vector.shape_cast %43 : vector<1x4x24xf32> to vector<4x24xf32>
    %cst_19 = arith.constant dense<0.000000e+00> : vector<4x50xf32>
    %45 = tpu.matmul %44, %42, %cst_19 {dimension_numbers = #tpu.dot_dimension_numbers<[1], [0], [0], [1], [0, 0, 1, 1], [], []>} : vector<4x24xf32>, vector<24x50xf32>, vector<4x50xf32> -> vector<4x50xf32>
    %c1_20 = arith.constant 1 : index
    %c0_21 = arith.constant 0 : index
    %46 = memref.load %arg9[%c1_20, %c0_21] : memref<4x3xf32, #tpu.memory_space<smem>>
    %c1_22 = arith.constant 1 : index
    %c1_23 = arith.constant 1 : index
    %47 = memref.load %arg9[%c1_22, %c1_23] : memref<4x3xf32, #tpu.memory_space<smem>>
    %c1_24 = arith.constant 1 : index
    %c2_25 = arith.constant 2 : index
    %48 = memref.load %arg9[%c1_24, %c2_25] : memref<4x3xf32, #tpu.memory_space<smem>>
    %49 = vector.broadcast %46 : f32 to vector<144x50xf32>
    %50 = arith.mulf %15, %49 : vector<144x50xf32>
    %51 = vector.broadcast %47 : f32 to vector<144x50xf32>
    %52 = arith.mulf %16, %51 : vector<144x50xf32>
    %53 = arith.addf %50, %52 : vector<144x50xf32>
    %54 = vector.broadcast %48 : f32 to vector<144x50xf32>
    %55 = arith.addf %53, %54 : vector<144x50xf32>
    %cst_26 = arith.constant 0.000000e+00 : f32
    %56 = vector.broadcast %cst_26 : f32 to vector<144x50xf32>
    %57 = arith.cmpf ogt, %55, %56 : vector<144x50xf32>
    %cst_27 = arith.constant 0.000000e+00 : f32
    %58 = vector.broadcast %cst_27 : f32 to vector<144x50xf32>
    %59 = arith.minimumf %55, %58 : vector<144x50xf32>
    %60 = math.exp %59 : vector<144x50xf32>
    %cst_28 = arith.constant 1.000000e+00 : f32
    %61 = vector.broadcast %cst_28 : f32 to vector<144x50xf32>
    %62 = arith.subf %60, %61 : vector<144x50xf32>
    %63 = arith.select %57, %55, %62 : vector<144x50xi1>, vector<144x50xf32>
    %64 = vector.extract_strided_slice %63 {offsets = [0, 0], sizes = [48, 50], strides = [1, 1]} : vector<144x50xf32> to vector<48x50xf32>
    %65 = vector.extract_strided_slice %63 {offsets = [48, 0], sizes = [48, 50], strides = [1, 1]} : vector<144x50xf32> to vector<48x50xf32>
    %66 = arith.maximumf %64, %65 : vector<48x50xf32>
    %67 = vector.extract_strided_slice %63 {offsets = [96, 0], sizes = [48, 50], strides = [1, 1]} : vector<144x50xf32> to vector<48x50xf32>
    %68 = arith.maximumf %66, %67 : vector<48x50xf32>
    %69 = vector.extract_strided_slice %68 {offsets = [0, 0], sizes = [24, 50], strides = [1, 1]} : vector<48x50xf32> to vector<24x50xf32>
    %70 = vector.extract_strided_slice %68 {offsets = [24, 0], sizes = [24, 50], strides = [1, 1]} : vector<48x50xf32> to vector<24x50xf32>
    %71 = arith.maximumf %69, %70 : vector<24x50xf32>
    %c1_29 = arith.constant 1 : index
    %c0_30 = arith.constant 0 : index
    %c0_31 = arith.constant 0 : index
    %72 = vector.load %arg4[%c1_29, %c0_30, %c0_31] : memref<4x4x24xf32, #tpu.memory_space<vmem>>, vector<1x4x24xf32>
    %73 = vector.shape_cast %72 : vector<1x4x24xf32> to vector<4x24xf32>
    %cst_32 = arith.constant dense<0.000000e+00> : vector<4x50xf32>
    %74 = tpu.matmul %73, %71, %cst_32 {dimension_numbers = #tpu.dot_dimension_numbers<[1], [0], [0], [1], [0, 0, 1, 1], [], []>} : vector<4x24xf32>, vector<24x50xf32>, vector<4x50xf32> -> vector<4x50xf32>
    %75 = arith.addf %45, %74 : vector<4x50xf32>
    %c2_33 = arith.constant 2 : index
    %c0_34 = arith.constant 0 : index
    %76 = memref.load %arg9[%c2_33, %c0_34] : memref<4x3xf32, #tpu.memory_space<smem>>
    %c2_35 = arith.constant 2 : index
    %c1_36 = arith.constant 1 : index
    %77 = memref.load %arg9[%c2_35, %c1_36] : memref<4x3xf32, #tpu.memory_space<smem>>
    %c2_37 = arith.constant 2 : index
    %c2_38 = arith.constant 2 : index
    %78 = memref.load %arg9[%c2_37, %c2_38] : memref<4x3xf32, #tpu.memory_space<smem>>
    %79 = vector.broadcast %76 : f32 to vector<144x50xf32>
    %80 = arith.mulf %15, %79 : vector<144x50xf32>
    %81 = vector.broadcast %77 : f32 to vector<144x50xf32>
    %82 = arith.mulf %16, %81 : vector<144x50xf32>
    %83 = arith.addf %80, %82 : vector<144x50xf32>
    %84 = vector.broadcast %78 : f32 to vector<144x50xf32>
    %85 = arith.addf %83, %84 : vector<144x50xf32>
    %cst_39 = arith.constant 0.000000e+00 : f32
    %86 = vector.broadcast %cst_39 : f32 to vector<144x50xf32>
    %87 = arith.cmpf ogt, %85, %86 : vector<144x50xf32>
    %cst_40 = arith.constant 0.000000e+00 : f32
    %88 = vector.broadcast %cst_40 : f32 to vector<144x50xf32>
    %89 = arith.minimumf %85, %88 : vector<144x50xf32>
    %90 = math.exp %89 : vector<144x50xf32>
    %cst_41 = arith.constant 1.000000e+00 : f32
    %91 = vector.broadcast %cst_41 : f32 to vector<144x50xf32>
    %92 = arith.subf %90, %91 : vector<144x50xf32>
    %93 = arith.select %87, %85, %92 : vector<144x50xi1>, vector<144x50xf32>
    %94 = vector.extract_strided_slice %93 {offsets = [0, 0], sizes = [48, 50], strides = [1, 1]} : vector<144x50xf32> to vector<48x50xf32>
    %95 = vector.extract_strided_slice %93 {offsets = [48, 0], sizes = [48, 50], strides = [1, 1]} : vector<144x50xf32> to vector<48x50xf32>
    %96 = arith.maximumf %94, %95 : vector<48x50xf32>
    %97 = vector.extract_strided_slice %93 {offsets = [96, 0], sizes = [48, 50], strides = [1, 1]} : vector<144x50xf32> to vector<48x50xf32>
    %98 = arith.maximumf %96, %97 : vector<48x50xf32>
    %99 = vector.extract_strided_slice %98 {offsets = [0, 0], sizes = [24, 50], strides = [1, 1]} : vector<48x50xf32> to vector<24x50xf32>
    %100 = vector.extract_strided_slice %98 {offsets = [24, 0], sizes = [24, 50], strides = [1, 1]} : vector<48x50xf32> to vector<24x50xf32>
    %101 = arith.maximumf %99, %100 : vector<24x50xf32>
    %c2_42 = arith.constant 2 : index
    %c0_43 = arith.constant 0 : index
    %c0_44 = arith.constant 0 : index
    %102 = vector.load %arg4[%c2_42, %c0_43, %c0_44] : memref<4x4x24xf32, #tpu.memory_space<vmem>>, vector<1x4x24xf32>
    %103 = vector.shape_cast %102 : vector<1x4x24xf32> to vector<4x24xf32>
    %cst_45 = arith.constant dense<0.000000e+00> : vector<4x50xf32>
    %104 = tpu.matmul %103, %101, %cst_45 {dimension_numbers = #tpu.dot_dimension_numbers<[1], [0], [0], [1], [0, 0, 1, 1], [], []>} : vector<4x24xf32>, vector<24x50xf32>, vector<4x50xf32> -> vector<4x50xf32>
    %105 = arith.addf %75, %104 : vector<4x50xf32>
    %c3 = arith.constant 3 : index
    %c0_46 = arith.constant 0 : index
    %106 = memref.load %arg9[%c3, %c0_46] : memref<4x3xf32, #tpu.memory_space<smem>>
    %c3_47 = arith.constant 3 : index
    %c1_48 = arith.constant 1 : index
    %107 = memref.load %arg9[%c3_47, %c1_48] : memref<4x3xf32, #tpu.memory_space<smem>>
    %c3_49 = arith.constant 3 : index
    %c2_50 = arith.constant 2 : index
    %108 = memref.load %arg9[%c3_49, %c2_50] : memref<4x3xf32, #tpu.memory_space<smem>>
    %109 = vector.broadcast %106 : f32 to vector<144x50xf32>
    %110 = arith.mulf %15, %109 : vector<144x50xf32>
    %111 = vector.broadcast %107 : f32 to vector<144x50xf32>
    %112 = arith.mulf %16, %111 : vector<144x50xf32>
    %113 = arith.addf %110, %112 : vector<144x50xf32>
    %114 = vector.broadcast %108 : f32 to vector<144x50xf32>
    %115 = arith.addf %113, %114 : vector<144x50xf32>
    %cst_51 = arith.constant 0.000000e+00 : f32
    %116 = vector.broadcast %cst_51 : f32 to vector<144x50xf32>
    %117 = arith.cmpf ogt, %115, %116 : vector<144x50xf32>
    %cst_52 = arith.constant 0.000000e+00 : f32
    %118 = vector.broadcast %cst_52 : f32 to vector<144x50xf32>
    %119 = arith.minimumf %115, %118 : vector<144x50xf32>
    %120 = math.exp %119 : vector<144x50xf32>
    %cst_53 = arith.constant 1.000000e+00 : f32
    %121 = vector.broadcast %cst_53 : f32 to vector<144x50xf32>
    %122 = arith.subf %120, %121 : vector<144x50xf32>
    %123 = arith.select %117, %115, %122 : vector<144x50xi1>, vector<144x50xf32>
    %124 = vector.extract_strided_slice %123 {offsets = [0, 0], sizes = [48, 50], strides = [1, 1]} : vector<144x50xf32> to vector<48x50xf32>
    %125 = vector.extract_strided_slice %123 {offsets = [48, 0], sizes = [48, 50], strides = [1, 1]} : vector<144x50xf32> to vector<48x50xf32>
    %126 = arith.maximumf %124, %125 : vector<48x50xf32>
    %127 = vector.extract_strided_slice %123 {offsets = [96, 0], sizes = [48, 50], strides = [1, 1]} : vector<144x50xf32> to vector<48x50xf32>
    %128 = arith.maximumf %126, %127 : vector<48x50xf32>
    %129 = vector.extract_strided_slice %128 {offsets = [0, 0], sizes = [24, 50], strides = [1, 1]} : vector<48x50xf32> to vector<24x50xf32>
    %130 = vector.extract_strided_slice %128 {offsets = [24, 0], sizes = [24, 50], strides = [1, 1]} : vector<48x50xf32> to vector<24x50xf32>
    %131 = arith.maximumf %129, %130 : vector<24x50xf32>
    %c3_54 = arith.constant 3 : index
    %c0_55 = arith.constant 0 : index
    %c0_56 = arith.constant 0 : index
    %132 = vector.load %arg4[%c3_54, %c0_55, %c0_56] : memref<4x4x24xf32, #tpu.memory_space<vmem>>, vector<1x4x24xf32>
    %133 = vector.shape_cast %132 : vector<1x4x24xf32> to vector<4x24xf32>
    %cst_57 = arith.constant dense<0.000000e+00> : vector<4x50xf32>
    %134 = tpu.matmul %133, %131, %cst_57 {dimension_numbers = #tpu.dot_dimension_numbers<[1], [0], [0], [1], [0, 0, 1, 1], [], []>} : vector<4x24xf32>, vector<24x50xf32>, vector<4x50xf32> -> vector<4x50xf32>
    %135 = arith.addf %105, %134 : vector<4x50xf32>
    %c0_58 = arith.constant 0 : index
    %c0_59 = arith.constant 0 : index
    %136 = vector.load %arg5[%c0_58, %c0_59] : memref<4x1xf32, #tpu.memory_space<vmem>>, vector<4x1xf32>
    %137 = vector.broadcast %136 : vector<4x1xf32> to vector<4x50xf32>
    %138 = arith.addf %135, %137 : vector<4x50xf32>
    %cst_60 = arith.constant 0.000000e+00 : f32
    %139 = vector.broadcast %cst_60 : f32 to vector<4x50xf32>
    %140 = arith.cmpf ogt, %138, %139 : vector<4x50xf32>
    %cst_61 = arith.constant 0.000000e+00 : f32
    %141 = vector.broadcast %cst_61 : f32 to vector<4x50xf32>
    %142 = arith.minimumf %138, %141 : vector<4x50xf32>
    %143 = math.exp %142 : vector<4x50xf32>
    %cst_62 = arith.constant 1.000000e+00 : f32
    %144 = vector.broadcast %cst_62 : f32 to vector<4x50xf32>
    %145 = arith.subf %143, %144 : vector<4x50xf32>
    %146 = arith.select %140, %138, %145 : vector<4x50xi1>, vector<4x50xf32>
    %c0_63 = arith.constant 0 : index
    %c0_64 = arith.constant 0 : index
    %c0_65 = arith.constant 0 : index
    %147 = vector.load %arg6[%c0_63, %c0_64, %c0_65] : memref<5x50x10xf32, #tpu.memory_space<vmem>>, vector<1x50x10xf32>
    %148 = vector.shape_cast %147 : vector<1x50x10xf32> to vector<50x10xf32>
    %cst_66 = arith.constant dense<0.000000e+00> : vector<4x10xf32>
    %149 = tpu.matmul %146, %148, %cst_66 {dimension_numbers = #tpu.dot_dimension_numbers<[1], [0], [0], [1], [0, 0, 1, 1], [], []>} : vector<4x50xf32>, vector<50x10xf32>, vector<4x10xf32> -> vector<4x10xf32>
    %c1_67 = arith.constant 1 : index
    %c0_68 = arith.constant 0 : index
    %c0_69 = arith.constant 0 : index
    %150 = vector.load %arg6[%c1_67, %c0_68, %c0_69] : memref<5x50x10xf32, #tpu.memory_space<vmem>>, vector<1x50x10xf32>
    %151 = vector.shape_cast %150 : vector<1x50x10xf32> to vector<50x10xf32>
    %cst_70 = arith.constant dense<0.000000e+00> : vector<4x10xf32>
    %152 = tpu.matmul %146, %151, %cst_70 {dimension_numbers = #tpu.dot_dimension_numbers<[1], [0], [0], [1], [0, 0, 1, 1], [], []>} : vector<4x50xf32>, vector<50x10xf32>, vector<4x10xf32> -> vector<4x10xf32>
    %153 = arith.maximumf %149, %152 : vector<4x10xf32>
    %c2_71 = arith.constant 2 : index
    %c0_72 = arith.constant 0 : index
    %c0_73 = arith.constant 0 : index
    %154 = vector.load %arg6[%c2_71, %c0_72, %c0_73] : memref<5x50x10xf32, #tpu.memory_space<vmem>>, vector<1x50x10xf32>
    %155 = vector.shape_cast %154 : vector<1x50x10xf32> to vector<50x10xf32>
    %cst_74 = arith.constant dense<0.000000e+00> : vector<4x10xf32>
    %156 = tpu.matmul %146, %155, %cst_74 {dimension_numbers = #tpu.dot_dimension_numbers<[1], [0], [0], [1], [0, 0, 1, 1], [], []>} : vector<4x50xf32>, vector<50x10xf32>, vector<4x10xf32> -> vector<4x10xf32>
    %157 = arith.maximumf %153, %156 : vector<4x10xf32>
    %c3_75 = arith.constant 3 : index
    %c0_76 = arith.constant 0 : index
    %c0_77 = arith.constant 0 : index
    %158 = vector.load %arg6[%c3_75, %c0_76, %c0_77] : memref<5x50x10xf32, #tpu.memory_space<vmem>>, vector<1x50x10xf32>
    %159 = vector.shape_cast %158 : vector<1x50x10xf32> to vector<50x10xf32>
    %cst_78 = arith.constant dense<0.000000e+00> : vector<4x10xf32>
    %160 = tpu.matmul %146, %159, %cst_78 {dimension_numbers = #tpu.dot_dimension_numbers<[1], [0], [0], [1], [0, 0, 1, 1], [], []>} : vector<4x50xf32>, vector<50x10xf32>, vector<4x10xf32> -> vector<4x10xf32>
    %161 = arith.maximumf %157, %160 : vector<4x10xf32>
    %c4 = arith.constant 4 : index
    %c0_79 = arith.constant 0 : index
    %c0_80 = arith.constant 0 : index
    %162 = vector.load %arg6[%c4, %c0_79, %c0_80] : memref<5x50x10xf32, #tpu.memory_space<vmem>>, vector<1x50x10xf32>
    %163 = vector.shape_cast %162 : vector<1x50x10xf32> to vector<50x10xf32>
    %cst_81 = arith.constant dense<0.000000e+00> : vector<4x10xf32>
    %164 = tpu.matmul %146, %163, %cst_81 {dimension_numbers = #tpu.dot_dimension_numbers<[1], [0], [0], [1], [0, 0, 1, 1], [], []>} : vector<4x50xf32>, vector<50x10xf32>, vector<4x10xf32> -> vector<4x10xf32>
    %165 = arith.maximumf %161, %164 : vector<4x10xf32>
    %c0_82 = arith.constant 0 : index
    %c0_83 = arith.constant 0 : index
    %c0_84 = arith.constant 0 : index
    %166 = vector.load %arg8[%c0_82, %c0_83, %c0_84] : memref<2x4x10xf32, #tpu.memory_space<vmem>>, vector<1x4x10xf32>
    %167 = vector.shape_cast %166 : vector<1x4x10xf32> to vector<4x10xf32>
    %168 = arith.mulf %165, %167 : vector<4x10xf32>
    %c0_85 = arith.constant 0 : index
    %c0_86 = arith.constant 0 : index
    %169 = vector.load %arg7[%c0_85, %c0_86] : memref<10x2xf32, #tpu.memory_space<vmem>>, vector<10x2xf32>
    %cst_87 = arith.constant dense<0.000000e+00> : vector<4x2xf32>
    %170 = tpu.matmul %168, %169, %cst_87 {dimension_numbers = #tpu.dot_dimension_numbers<[1], [0], [0], [1], [0, 0, 1, 1], [], []>} : vector<4x10xf32>, vector<10x2xf32>, vector<4x2xf32> -> vector<4x2xf32>
    %cst_88 = arith.constant dense<0.000000e+00> : vector<2xf32>
    %171 = vector.multi_reduction <add>, %170, %cst_88 [0] : vector<4x2xf32> to vector<2xf32>
    %172 = vector.shape_cast %171 : vector<2xf32> to vector<1x2xf32>
    %c0_89 = arith.constant 0 : index
    %173 = memref.load %arg10[%c0_89] : memref<2xf32, #tpu.memory_space<smem>>
    %174 = vector.broadcast %173 : f32 to vector<1x2xf32>
    %175 = arith.addf %172, %174 : vector<1x2xf32>
    %c1_90 = arith.constant 1 : index
    %c0_91 = arith.constant 0 : index
    %c0_92 = arith.constant 0 : index
    %176 = vector.load %arg8[%c1_90, %c0_91, %c0_92] : memref<2x4x10xf32, #tpu.memory_space<vmem>>, vector<1x4x10xf32>
    %177 = vector.shape_cast %176 : vector<1x4x10xf32> to vector<4x10xf32>
    %178 = arith.mulf %165, %177 : vector<4x10xf32>
    %c0_93 = arith.constant 0 : index
    %c0_94 = arith.constant 0 : index
    %179 = vector.load %arg7[%c0_93, %c0_94] : memref<10x2xf32, #tpu.memory_space<vmem>>, vector<10x2xf32>
    %cst_95 = arith.constant dense<0.000000e+00> : vector<4x2xf32>
    %180 = tpu.matmul %178, %179, %cst_95 {dimension_numbers = #tpu.dot_dimension_numbers<[1], [0], [0], [1], [0, 0, 1, 1], [], []>} : vector<4x10xf32>, vector<10x2xf32>, vector<4x2xf32> -> vector<4x2xf32>
    %cst_96 = arith.constant dense<0.000000e+00> : vector<2xf32>
    %181 = vector.multi_reduction <add>, %180, %cst_96 [0] : vector<4x2xf32> to vector<2xf32>
    %182 = vector.shape_cast %181 : vector<2xf32> to vector<1x2xf32>
    %c1_97 = arith.constant 1 : index
    %183 = memref.load %arg10[%c1_97] : memref<2xf32, #tpu.memory_space<smem>>
    %184 = vector.broadcast %183 : f32 to vector<1x2xf32>
    %185 = arith.addf %182, %184 : vector<1x2xf32>
    %186 = arith.maximumf %175, %185 : vector<1x2xf32>
    %187 = arith.subf %175, %186 : vector<1x2xf32>
    %188 = math.exp %187 : vector<1x2xf32>
    %189 = arith.subf %185, %186 : vector<1x2xf32>
    %190 = math.exp %189 : vector<1x2xf32>
    %191 = arith.addf %188, %190 : vector<1x2xf32>
    %cst_98 = arith.constant 1.000000e+00 : f32
    %192 = vector.broadcast %cst_98 : f32 to vector<1x2xf32>
    %193 = arith.divf %192, %191 : vector<1x2xf32>
    %194 = arith.mulf %188, %193 : vector<1x2xf32>
    %c0_99 = arith.constant 0 : index
    %c0_100 = arith.constant 0 : index
    %c0_101 = arith.constant 0 : index
    %195 = vector.load %arg11[%c0_99, %c0_100, %c0_101] : memref<1x2x2xf32, #tpu.memory_space<vmem>>, vector<1x1x2xf32>
    %196 = vector.shape_cast %195 : vector<1x1x2xf32> to vector<1x2xf32>
    %197 = vector.shape_cast %194 : vector<1x2xf32> to vector<1x1x2xf32>
    tpu.vector_store %arg11[%c0_99, %c0_100, %c0_101], %197 {strides = array<i32>} : memref<1x2x2xf32, #tpu.memory_space<vmem>>, vector<1x1x2xf32>,
    %198 = arith.mulf %190, %193 : vector<1x2xf32>
    %c0_102 = arith.constant 0 : index
    %c1_103 = arith.constant 1 : index
    %c0_104 = arith.constant 0 : index
    %199 = vector.load %arg11[%c0_102, %c1_103, %c0_104] : memref<1x2x2xf32, #tpu.memory_space<vmem>>, vector<1x1x2xf32>
    %200 = vector.shape_cast %199 : vector<1x1x2xf32> to vector<1x2xf32>
    %201 = vector.shape_cast %198 : vector<1x2xf32> to vector<1x1x2xf32>
    tpu.vector_store %arg11[%c0_102, %c1_103, %c0_104], %201 {strides = array<i32>} : memref<1x2x2xf32, #tpu.memory_space<vmem>>, vector<1x1x2xf32>,
    return
  }
  func.func @transform_0(%arg0: i32) -> (i32, i32, i32) {
    %c0_i32 = arith.constant 0 : i32
    %c0_i32_0 = arith.constant 0 : i32
    %c0_i32_1 = arith.constant 0 : i32
    return %arg0, %c0_i32, %c0_i32_0 : i32, i32, i32
  }
  func.func @transform_1(%arg0: i32) -> (i32, i32) {
    %c0_i32 = arith.constant 0 : i32
    %c0_i32_0 = arith.constant 0 : i32
    %c0_i32_1 = arith.constant 0 : i32
    return %c0_i32, %c0_i32_0 : i32, i32
  }
  func.func @transform_2(%arg0: i32) -> (i32, i32) {
    %c0_i32 = arith.constant 0 : i32
    %c0_i32_0 = arith.constant 0 : i32
    %c0_i32_1 = arith.constant 0 : i32
    return %c0_i32, %c0_i32_0 : i32, i32
  }
  func.func @transform_3(%arg0: i32) -> (i32, i32, i32) {
    %c0_i32 = arith.constant 0 : i32
    %c0_i32_0 = arith.constant 0 : i32
    %c0_i32_1 = arith.constant 0 : i32
    %c0_i32_2 = arith.constant 0 : i32
    return %c0_i32, %c0_i32_0, %c0_i32_1 : i32, i32, i32
  }
  func.func @transform_4(%arg0: i32) -> (i32, i32) {
    %c0_i32 = arith.constant 0 : i32
    %c0_i32_0 = arith.constant 0 : i32
    %c0_i32_1 = arith.constant 0 : i32
    return %c0_i32, %c0_i32_0 : i32, i32
  }
  func.func @transform_5(%arg0: i32) -> (i32, i32, i32) {
    %c0_i32 = arith.constant 0 : i32
    %c0_i32_0 = arith.constant 0 : i32
    %c0_i32_1 = arith.constant 0 : i32
    %c0_i32_2 = arith.constant 0 : i32
    return %c0_i32, %c0_i32_0, %c0_i32_1 : i32, i32, i32
  }
  func.func @transform_6(%arg0: i32) -> (i32, i32) {
    %c0_i32 = arith.constant 0 : i32
    %c0_i32_0 = arith.constant 0 : i32
    %c0_i32_1 = arith.constant 0 : i32
    return %c0_i32, %c0_i32_0 : i32, i32
  }
  func.func @transform_7(%arg0: i32) -> (i32, i32, i32) {
    %c0_i32 = arith.constant 0 : i32
    %c0_i32_0 = arith.constant 0 : i32
    %c0_i32_1 = arith.constant 0 : i32
    %c0_i32_2 = arith.constant 0 : i32
    return %c0_i32, %c0_i32_0, %c0_i32_1 : i32, i32, i32
  }
  func.func @transform_8(%arg0: i32) -> (i32, i32) {
    %c0_i32 = arith.constant 0 : i32
    %c0_i32_0 = arith.constant 0 : i32
    %c0_i32_1 = arith.constant 0 : i32
    return %c0_i32, %c0_i32_0 : i32, i32
  }
  func.func @transform_9(%arg0: i32) -> i32 {
    %c0_i32 = arith.constant 0 : i32
    %c0_i32_0 = arith.constant 0 : i32
    return %c0_i32 : i32
  }
  func.func @transform_10(%arg0: i32) -> (i32, i32, i32) {
    %c0_i32 = arith.constant 0 : i32
    %c0_i32_0 = arith.constant 0 : i32
    %c0_i32_1 = arith.constant 0 : i32
    return %arg0, %c0_i32, %c0_i32_0 : i32, i32, i32
  }
}

</mosaic_0001>

<bundles_post_ra>
// kernel: tile.7
= control target key start
LH: loop header
LB: loop body
LE: loop exit
PB: predicated region body
PF: predicated region fallthrough
CT: control target
= control target key end

     0   :  { %vm36_vm0 = vcmask 1047556   ;;  %vm38_vm1 = vcmask 39936   ;;  %vm50_vm2 = vcmask 80936   ;;  %s116_s0 = inlined_call_operand.vmem [shape: f32[2,4,2,5], index: 0, kind: input, shape index: {}]   ;;  %s117_s1 = inlined_call_operand.vmem [shape: f32[2,4,10], index: 1, kind: output, shape index: {}]  }
   0x1   :  { %v66_v0 = vld [vmem:[%s116_s0 + $0xe] sm:$0x3]  ;;  %v67_v1 = vld [vmem:[%s116_s0 + $0xc] sm:$0x3]  ;;  %v68_v2 = vld [vmem:[%s116_s0 + $0xa] sm:$0x3] }
   0x2   :  { %7 = vst [vmem:[#allocation1 + $0x38] sm:$0x3] %v66_v0  ;;  %v69_v3 = vld [vmem:[%s116_s0 + $0x8] sm:$0x3]  ;;  %v70_v4 = vld [vmem:[%s116_s0 + $0x6] sm:$0x3] }
   0x3   :  { %11 = vst [vmem:[#allocation1 + $0x30] sm:$0x3] %v67_v1  ;;  %v71_v5 = vld [vmem:[%s116_s0 + $0x4] sm:$0x3]  ;;  %v72_v6 = vld [vmem:[%s116_s0 + $0x2] sm:$0x3] }
   0x4   :  { %15 = vst [vmem:[#allocation1 + $0x28] sm:$0x3] %v68_v2  ;;  %v32_v7 = vld [vmem:[%s116_s0] sm:$0x3]  ;;  %s75_s0 = smov 5  }
   0x5   :  { %19 = vst [vmem:[#allocation1 + $0x20] sm:$0x3] %v69_v3 }
   0x6   :  { %23 = vst [vmem:[#allocation1 + $0x18] sm:$0x3] %v70_v4 }
   0x7   :  { %27 = vst [vmem:[#allocation1 + $0x10] sm:$0x3] %v71_v5 }
   0x8   :  { %31 = vst [vmem:[#allocation1 + $0x8] sm:$0x3] %v72_v6 }
   0x9   :  { %33 = vst [vmem:[#allocation1] sm:$0x3] %v32_v7 }
   0xc   :  { %v35_v8 = vld [vmem:[#allocation1] ss:$8 sm:$0xf0]   ;;  %v45_v9 = vld [vmem:[#allocation1 + $0x1] ss:$8 sm:$0xf0]  }
  0x10   :  { %v34_v10 = vld [vmem:[#allocation1] ss:$8 sm:$0xf]   ;;  %v43_v11 = vld [vmem:[#allocation1 + $0x1] ss:$8 sm:$0xf]  }
  0x11   :  { %v37_v12 = vsel %vm36_vm0, %v35_v8, %v34_v10  ;;  %v47_v13 = vsel %vm36_vm0, %v45_v9, %v43_v11 }
  0x12   :  { %48 = vrot.lane.b32.xlu0 %v47_v13, %s75_s0  ;;  %39 = vst.msk [vmem:[#allocation0] sm:$0xf] %vm38_vm1, %v37_v12  }
  0x13   :  { %41 = vst.msk [vmem:[#allocation0 + $0x4] sm:$0xf0] %vm38_vm1, %v37_v12  }
  0x84   :  { %v49_v14 = vpop.permute.xlu0 %48  }
  0x85   :  { %51 = vst.msk [vmem:[#allocation0] sm:$0xf] %vm50_vm2, %v49_v14  }
  0x86   :  { %53 = vst.msk [vmem:[#allocation0 + $0x4] sm:$0xf0] %vm50_vm2, %v49_v14  }
  0x8c   :  { %v56_v15 = vld [vmem:[#allocation0] sm:$0xf] }
  0x8d   :  { %59 = vst [vmem:[%s117_s1] sm:$0xf] %v56_v15  ;;  %v61_v16 = vld [vmem:[#allocation0 + $0x8] sm:$0xf] }
  0x8e   :  { %73 = vst [vmem:[%s117_s1 + $0x4] sm:$0xf] %v61_v16 }

// kernel: brainnet_forward.1
= control target key start
LH: loop header
LB: loop body
LE: loop exit
PB: predicated region body
PF: predicated region fallthrough
CT: control target
= control target key end

     0   :  { %15 = vsyncpa [#allocation3], 0  ;;  %s4405_s0 = inlined_call_operand.vmem [shape: f32[1,120,50], index: 0, kind: input, shape index: {}]   ;;  %s4406_s1 = inlined_call_operand.vmem [shape: f32[288,120], index: 1, kind: input, shape index: {}]   ;;  %s4407_s2 = inlined_call_operand.vmem [shape: f32[288,1], index: 2, kind: input, shape index: {}]   ;;  %s4408_s3 = inlined_call_operand.vmem [shape: f32[4,4,24], index: 3, kind: input, shape index: {}]   ;;  %s4409_s4 = inlined_call_operand.vmem [shape: f32[4,1], index: 4, kind: input, shape index: {}]   ;;  %s4410_s5 = inlined_call_operand.vmem [shape: f32[5,50,10], index: 5, kind: input, shape index: {}]   ;;  %s4411_s6 = inlined_call_operand.vmem [shape: f32[10,2], index: 6, kind: input, shape index: {}]   ;;  %s4412_s7 = inlined_call_operand.vmem [shape: f32[2,4,10], index: 7, kind: input, shape index: {}]   ;;  %s4413_s8 = inlined_call_operand.vmem [shape: f32[4,3], index: 8, kind: input, shape index: {}]   ;;  %s4414_s9 = inlined_call_operand.vmem [shape: f32[2], index: 9, kind: input, shape index: {}]   ;;  %s4415_s10 = inlined_call_operand.vmem [shape: f32[1,2,2], index: 10, kind: output, shape index: {}]  }
   0x1   :  { %s38_s15 = sshll.u32 %s4413_s8, 4  ;;  %s39_s15 = int_to_ptr.vmem [resolvable:$true] %s38_s15 }
   0x2   :  { %16 = vsyncpa [#allocation5], 0  ;;  %s47_s18 = sshll.u32 %s4414_s9, 4  ;;  %s2481_s19 = smov [#allocation2]   ;;  %s48_s18 = int_to_ptr.vmem [resolvable:$true] %s47_s18 }
   0x3   :  { %41 = dma.vmem_to_smem %s39_s15, 64, %s2481_s19, [#allocation3]  }
   0x4   :  { %s2482_s20 = smov [#allocation4]  }
   0x5   :  { %50 = dma.vmem_to_smem %s48_s18, 16, %s2482_s20, [#allocation5]  }
   0x6   :  { %2477 = dma.done.wait [#allocation3], 64  }
   0x7   :  { %2478 = vsyncadd [#allocation3], 4294967232 }
   0x8   :  { %2479 = dma.done.wait [#allocation5], 16  }
   0x9   :  { %2480 = vsyncadd [#allocation5], 4294967280 }
   0xa   :  { %59 = sfence }
   0xb   :  { %v74_v0 = vld [vmem:[%s4405_s0 + $0x70] sm:$0xff]  ;;  %v2483_v1 = vmov 0   ;;  %v119_v2 = vld [vmem:[%s4407_s2 + $0x40] sm:$0xff]  ;;  %v73_v4 = vld [vmem:[%s4405_s0 + $0x68] sm:$0xff]  ;;  %vm327_vm0 = vcmask 982016   ;;  %s2890_s14 = sld [smem:[#allocation2 + $0x100]] }
   0xc   :  { %2227 = vset.pattern.permute.xlu1 %v2483_v1  ;;  %2226 = vset.pattern.permute.xlu0 %v2483_v1  ;;  %v113_v3 = vld [vmem:[%s4407_s2 + $0x10] sm:$0xff]  ;;  %v72_v5 = vld [vmem:[%s4405_s0 + $0x60] sm:$0xff]  ;;  %v71_v6 = vld [vmem:[%s4405_s0 + $0x58] sm:$0xff]  ;;  %s2892_s15 = sld [smem:[#allocation2 + $0x180]] }
   0xd   :  { %437 = vmatpush.msra.mxu0 %v74_v0  ;;  %2178 = vmatpush.msra.mxu1 %v74_v0  ;;  %v70_v7 = vld [vmem:[%s4405_s0 + $0x50] sm:$0xff]  ;;  %v122_v8 = vld [vmem:[%s4407_s2 + $0x58] sm:$0xff]  ;;  %v116_v9 = vld [vmem:[%s4407_s2 + $0x28] sm:$0xff]  ;;  %s2896_s16 = sld [smem:[#allocation2 + $0x1]] }
   0xe   :  { %2179 = vmatpush.msra.mxu2 %v74_v0  ;;  %2180 = vmatpush.msra.mxu3 %v74_v0  ;;  %v69_v10 = vld [vmem:[%s4405_s0 + $0x48] sm:$0xff]  ;;  %v68_v11 = vld [vmem:[%s4405_s0 + $0x40] sm:$0xff]  ;;  %v67_v12 = vld [vmem:[%s4405_s0 + $0x38] sm:$0xff]  ;;  %s2899_s17 = sld [smem:[#allocation2 + $0x81]] }
   0xf   :  { %189 = vperm.xlu1 %2227, %v119_v2   ;;  %159 = vperm.xlu0 %2226, %v113_v3   ;;  %v66_v13 = vld [vmem:[%s4405_s0 + $0x30] sm:$0xff]  ;;  %v131_v14 = vld [vmem:[%s4407_s2 + $0xa0] sm:$0xff]  ;;  %v140_v15 = vld [vmem:[%s4407_s2 + $0xe8] sm:$0xff]  ;;  %s2901_s18 = sld [smem:[#allocation2 + $0x101]] }
  0x10   :  { %438 = vmatpush.msra.mxu0 %v73_v4  ;;  %2181 = vmatpush.msra.mxu1 %v73_v4  ;;  %v137_v16 = vld [vmem:[%s4407_s2 + $0xd0] sm:$0xff]  ;;  %v65_v17 = vld [vmem:[%s4405_s0 + $0x28] sm:$0xff]  ;;  %v64_v18 = vld [vmem:[%s4405_s0 + $0x20] sm:$0xff]  ;;  %s2909_s19 = sld [smem:[#allocation2 + $0x181]] }
  0x11   :  { %2182 = vmatpush.msra.mxu2 %v73_v4  ;;  %2183 = vmatpush.msra.mxu3 %v73_v4  ;;  %v63_v19 = vld [vmem:[%s4405_s0 + $0x18] sm:$0xff]  ;;  %v62_v21 = vld [vmem:[%s4405_s0 + $0x10] sm:$0xff]  ;;  %v115_v23 = vld [vmem:[%s4407_s2 + $0x20] sm:$0xff]  ;;  %s2917_s20 = sld [smem:[#allocation2 + $0x182]] }
  0x12   :  { %439 = vmatpush.msra.mxu0 %v72_v5  ;;  %2184 = vmatpush.msra.mxu1 %v72_v5  ;;  %v134_v20 = vld [vmem:[%s4407_s2 + $0xb8] sm:$0xff]  ;;  %v61_v24 = vld [vmem:[%s4405_s0 + $0x8] sm:$0xff]  ;;  %v60_v25 = vld [vmem:[%s4405_s0] sm:$0xff]  ;;  %s3506_s21 = sld [smem:[#allocation2 + $0x82]] }
  0x13   :  { %2185 = vmatpush.msra.mxu2 %v72_v5  ;;  %2186 = vmatpush.msra.mxu3 %v72_v5  ;;  %v118_v22 = vld [vmem:[%s4407_s2 + $0x38] sm:$0xff]  ;;  %v75_v26 = vld [vmem:[%s4406_s1] sm:$0xff]  ;;  %v112_v30 = vld [vmem:[%s4407_s2 + $0x8] sm:$0xff]  ;;  %s3516_s22 = sld [smem:[#allocation2 + $0x2]] }
  0x14   :  { %440 = vmatpush.msra.mxu0 %v71_v6  ;;  %2187 = vmatpush.msra.mxu1 %v71_v6  ;;  %v87_v27 = vld [vmem:[%s4406_s1 + $0x60] sm:$0xff]  ;;  %v128_v31 = vld [vmem:[%s4407_s2 + $0x88] sm:$0xff]  ;;  %v125_v32 = vld [vmem:[%s4407_s2 + $0x70] sm:$0xff]  ;;  %s3714_s8 = sld [smem:[#allocation2 + $0x102]] }
  0x15   :  { %2188 = vmatpush.msra.mxu2 %v71_v6  ;;  %2189 = vmatpush.msra.mxu3 %v71_v6  ;;  %v95_v28 = vld [vmem:[%s4406_s1 + $0xa0] sm:$0xff]  ;;  %v76_v33 = vld [vmem:[%s4406_s1 + $0x8] sm:$0xff]  ;;  %v121_v37 = vld [vmem:[%s4407_s2 + $0x50] sm:$0xff]  ;;  %s1898_s25 = sld [smem:[#allocation4]] }
  0x16   :  { %441 = vmatpush.msra.mxu0 %v70_v7  ;;  %2190 = vmatpush.msra.mxu1 %v70_v7  ;;  %v103_v29 = vld [vmem:[%s4406_s1 + $0xe0] sm:$0xff]  ;;  %v88_v34 = vld [vmem:[%s4406_s1 + $0x68] sm:$0xff]  ;;  %v133_v39 = vld [vmem:[%s4407_s2 + $0xb0] sm:$0xff]  ;;  %s2177_s26 = sld [smem:[#allocation4 + $0x1]] }
  0x17   :  { %2191 = vmatpush.msra.mxu2 %v70_v7  ;;  %2192 = vmatpush.msra.mxu3 %v70_v7  ;;  %v96_v35 = vld [vmem:[%s4406_s1 + $0xa8] sm:$0xff]  ;;  %v77_v40 = vld [vmem:[%s4406_s1 + $0x10] sm:$0xff]  ;;  %v130_v44 = vld [vmem:[%s4407_s2 + $0x98] sm:$0xff] }
  0x18   :  { %204 = vperm.xlu1 %2227, %v122_v8   ;;  %174 = vperm.xlu0 %2226, %v116_v9   ;;  %v104_v36 = vld [vmem:[%s4406_s1 + $0xe8] sm:$0xff]  ;;  %v89_v41 = vld [vmem:[%s4406_s1 + $0x70] sm:$0xff]  ;;  %v146_v45 = vld [vmem:[%s4407_s2 + $0x118] sm:$0xff] }
  0x19   :  { %442 = vmatpush.msra.mxu0 %v69_v10  ;;  %2193 = vmatpush.msra.mxu1 %v69_v10  ;;  %v136_v38 = vld [vmem:[%s4407_s2 + $0xc8] sm:$0xff]  ;;  %v97_v42 = vld [vmem:[%s4406_s1 + $0xb0] sm:$0xff]  ;;  %v143_v46 = vld [vmem:[%s4407_s2 + $0x100] sm:$0xff] }
  0x1a   :  { %2194 = vmatpush.msra.mxu2 %v69_v10  ;;  %2195 = vmatpush.msra.mxu3 %v69_v10  ;;  %v105_v43 = vld [vmem:[%s4406_s1 + $0xf0] sm:$0xff]  ;;  %v78_v47 = vld [vmem:[%s4406_s1 + $0x18] sm:$0xff]  ;;  %v139_v51 = vld [vmem:[%s4407_s2 + $0xe0] sm:$0xff] }
  0x1b   :  { %443 = vmatpush.msra.mxu0 %v68_v11  ;;  %2196 = vmatpush.msra.mxu1 %v68_v11  ;;  %v90_v48 = vld [vmem:[%s4406_s1 + $0x78] sm:$0xff]  ;;  %v117_v52 = vld [vmem:[%s4407_s2 + $0x30] sm:$0xff]  ;;  %v79_v54 = vld [vmem:[%s4406_s1 + $0x20] sm:$0xff] }
  0x1c   :  { %2197 = vmatpush.msra.mxu2 %v68_v11  ;;  %2198 = vmatpush.msra.mxu3 %v68_v11  ;;  %v98_v49 = vld [vmem:[%s4406_s1 + $0xb8] sm:$0xff]  ;;  %v91_v55 = vld [vmem:[%s4406_s1 + $0x80] sm:$0xff]  ;;  %v124_v60 = vld [vmem:[%s4407_s2 + $0x68] sm:$0xff] }
  0x1d   :  { %444 = vmatpush.msra.mxu0 %v67_v12  ;;  %2199 = vmatpush.msra.mxu1 %v67_v12  ;;  %v106_v50 = vld [vmem:[%s4406_s1 + $0xf8] sm:$0xff]  ;;  %v99_v56 = vld [vmem:[%s4406_s1 + $0xc0] sm:$0xff]  ;;  %v80_v61 = vld [vmem:[%s4406_s1 + $0x28] sm:$0xff] }
  0x1e   :  { %2200 = vmatpush.msra.mxu2 %v67_v12  ;;  %2201 = vmatpush.msra.mxu3 %v67_v12  ;;  %v114_v53 = vld [vmem:[%s4407_s2 + $0x18] sm:$0xff]  ;;  %v107_v57 = vld [vmem:[%s4406_s1 + $0x100] sm:$0xff]  ;;  %v92_v62 = vld [vmem:[%s4406_s1 + $0x88] sm:$0xff] }
  0x1f   :  { %2228 = vset.pattern.permute.xlu2 %v2483_v1  ;;  %445 = vmatpush.msra.mxu0 %v66_v13  ;;  %v111_v58 = vld [vmem:[%s4407_s2] sm:$0xff]  ;;  %v100_v63 = vld [vmem:[%s4406_s1 + $0xc8] sm:$0xff]  ;;  %v81_v4 = vld [vmem:[%s4406_s1 + $0x30] sm:$0xff] }
  0x20   :  { %249 = vperm.xlu2 %2228, %v131_v14   ;;  %2202 = vmatpush.msra.mxu1 %v66_v13  ;;  %v127_v59 = vld [vmem:[%s4407_s2 + $0x80] sm:$0xff]  ;;  %v108_v0 = vld [vmem:[%s4406_s1 + $0x108] sm:$0xff]  ;;  %v93_v5 = vld [vmem:[%s4406_s1 + $0x90] sm:$0xff] }
  0x21   :  { %2203 = vmatpush.msra.mxu2 %v66_v13  ;;  %2204 = vmatpush.msra.mxu3 %v66_v13  ;;  %v120_v1 = vld [vmem:[%s4407_s2 + $0x48] sm:$0xff]  ;;  %v135_v2 = vld [vmem:[%s4407_s2 + $0xc0] sm:$0xff]  ;;  %v101_v6 = vld [vmem:[%s4406_s1 + $0xd0] sm:$0xff] }
  0x22   :  { %294 = vperm.xlu1 %2227, %v140_v15   ;;  %279 = vperm.xlu0 %2226, %v137_v16   ;;  %v132_v3 = vld [vmem:[%s4407_s2 + $0xa8] sm:$0xff]  ;;  %v109_v7 = vld [vmem:[%s4406_s1 + $0x110] sm:$0xff]  ;;  %v142_v10 = vld [vmem:[%s4407_s2 + $0xf8] sm:$0xff] }
  0x23   :  { %446 = vmatpush.msra.mxu0 %v65_v17  ;;  %2205 = vmatpush.msra.mxu1 %v65_v17  ;;  %v129_v8 = vld [vmem:[%s4407_s2 + $0x90] sm:$0xff]  ;;  %v82_v11 = vld [vmem:[%s4406_s1 + $0x38] sm:$0xff] }
  0x24   :  { %2206 = vmatpush.msra.mxu2 %v65_v17  ;;  %2207 = vmatpush.msra.mxu3 %v65_v17  ;;  %v145_v9 = vld [vmem:[%s4407_s2 + $0x110] sm:$0xff]  ;;  %v94_v12 = vld [vmem:[%s4406_s1 + $0x98] sm:$0xff] }
  0x25   :  { %447 = vmatpush.msra.mxu0 %v64_v18  ;;  %2208 = vmatpush.msra.mxu1 %v64_v18  ;;  %v102_v13 = vld [vmem:[%s4406_s1 + $0xd8] sm:$0xff]  ;;  %v141_v16 = vld [vmem:[%s4407_s2 + $0xf0] sm:$0xff] }
  0x26   :  { %2209 = vmatpush.msra.mxu2 %v64_v18  ;;  %2210 = vmatpush.msra.mxu3 %v64_v18  ;;  %v110_v14 = vld [vmem:[%s4406_s1 + $0x118] sm:$0xff]  ;;  %v83_v18 = vld [vmem:[%s4406_s1 + $0x40] sm:$0xff] }
  0x27   :  { %448 = vmatpush.msra.mxu0 %v63_v19  ;;  %2211 = vmatpush.msra.mxu1 %v63_v19  ;;  %v138_v15 = vld [vmem:[%s4407_s2 + $0xd8] sm:$0xff] }
  0x28   :  { %2212 = vmatpush.msra.mxu2 %v63_v19  ;;  %2213 = vmatpush.msra.mxu3 %v63_v19  ;;  %v126_v17 = vld [vmem:[%s4407_s2 + $0x78] sm:$0xff]  ;;  %v123_v19 = vld [vmem:[%s4407_s2 + $0x60] sm:$0xff] }
  0x29   :  { %264 = vperm.xlu2 %2228, %v134_v20   ;;  %449 = vmatpush.msra.mxu0 %v62_v21  ;;  %v1683_v20 = vld [vmem:[%s4409_s4] sm:$0xf] }
  0x2a   :  { %2214 = vmatpush.msra.mxu1 %v62_v21  ;;  %2215 = vmatpush.msra.mxu2 %v62_v21 }
  0x2b   :  { %2216 = vmatpush.msra.mxu3 %v62_v21  ;;  %184 = vperm.xlu1 %2227, %v118_v22   ;;  %v84_v21 = vld [vmem:[%s4406_s1 + $0x48] sm:$0xff] }
  0x2c   :  { %169 = vperm.xlu0 %2226, %v115_v23   ;;  %450 = vmatpush.msra.mxu0 %v61_v24  ;;  %v144_v22 = vld [vmem:[%s4407_s2 + $0x108] sm:$0xff]  ;;  %s2887_s2 = sld [smem:[#allocation2 + $0x80]] }
  0x2d   :  { %2217 = vmatpush.msra.mxu1 %v61_v24  ;;  %2218 = vmatpush.msra.mxu2 %v61_v24 }
  0x2e   :  { %2219 = vmatpush.msra.mxu3 %v61_v24  ;;  %451 = vmatpush.msra.mxu0 %v60_v25  ;;  %v85_v24 = vld [vmem:[%s4406_s1 + $0x50] sm:$0xff] }
  0x2f   :  { %2220 = vmatpush.msra.mxu1 %v60_v25  ;;  %2221 = vmatpush.msra.mxu2 %v60_v25 }
  0x30   :  { %2222 = vmatpush.msra.mxu3 %v60_v25  ;;  %1971 = vmatmul.msk.f32.vlgmr.msra.gmra.mxu0 %vm327_vm0, %v75_v26 }
  0x31   :  { %1983 = vmatmul.msk.f32.vlgmr.msra.gmra.mxu1 %vm327_vm0, %v87_v27  ;;  %1991 = vmatmul.msk.f32.vlgmr.msra.gmra.mxu2 %vm327_vm0, %v95_v28  ;;  %v86_v28 = vld [vmem:[%s4406_s1 + $0x58] sm:$0xff]  ;;  %s2883_s1 = sld [smem:[#allocation2]] }
  0x32   :  { %1999 = vmatmul.msk.f32.vlgmr.msra.gmra.mxu3 %vm327_vm0, %v103_v29  ;;  %154 = vperm.xlu2 %2228, %v112_v30  }
  0x33   :  { %234 = vperm.xlu1 %2227, %v128_v31  }
  0x34   :  { %219 = vperm.xlu0 %2226, %v125_v32  }
  0x38   :  { %1972 = vmatmul.msk.f32.gmra.mxu0 %vm327_vm0, %v76_v33 }
  0x39   :  { %1984 = vmatmul.msk.f32.gmra.mxu1 %vm327_vm0, %v88_v34  ;;  %1992 = vmatmul.msk.f32.gmra.mxu2 %vm327_vm0, %v96_v35 }
  0x3a   :  { %2000 = vmatmul.msk.f32.gmra.mxu3 %vm327_vm0, %v104_v36  ;;  %199 = vperm.xlu2 %2228, %v121_v37  }
  0x3b   :  { %274 = vperm.xlu1 %2227, %v136_v38  }
  0x3c   :  { %259 = vperm.xlu0 %2226, %v133_v39  }
  0x40   :  { %1973 = vmatmul.msk.f32.gmra.mxu0 %vm327_vm0, %v77_v40 }
  0x41   :  { %1985 = vmatmul.msk.f32.gmra.mxu1 %vm327_vm0, %v89_v41  ;;  %1993 = vmatmul.msk.f32.gmra.mxu2 %vm327_vm0, %v97_v42 }
  0x42   :  { %2001 = vmatmul.msk.f32.gmra.mxu3 %vm327_vm0, %v105_v43  ;;  %244 = vperm.xlu2 %2228, %v130_v44  }
  0x43   :  { %324 = vperm.xlu1 %2227, %v146_v45  }
  0x44   :  { %309 = vperm.xlu0 %2226, %v143_v46  }
  0x48   :  { %1974 = vmatmul.msk.f32.gmra.mxu0 %vm327_vm0, %v78_v47 }
  0x49   :  { %1986 = vmatmul.msk.f32.gmra.mxu1 %vm327_vm0, %v90_v48  ;;  %1994 = vmatmul.msk.f32.gmra.mxu2 %vm327_vm0, %v98_v49 }
  0x4a   :  { %2002 = vmatmul.msk.f32.gmra.mxu3 %vm327_vm0, %v106_v50  ;;  %289 = vperm.xlu2 %2228, %v139_v51  }
  0x4b   :  { %179 = vperm.xlu1 %2227, %v117_v52  }
  0x4c   :  { %164 = vperm.xlu0 %2226, %v114_v53  }
  0x50   :  { %1975 = vmatmul.msk.f32.gmra.mxu0 %vm327_vm0, %v79_v54 }
  0x51   :  { %1987 = vmatmul.msk.f32.gmra.mxu1 %vm327_vm0, %v91_v55  ;;  %1995 = vmatmul.msk.f32.gmra.mxu2 %vm327_vm0, %v99_v56 }
  0x52   :  { %2003 = vmatmul.msk.f32.gmra.mxu3 %vm327_vm0, %v107_v57  ;;  %149 = vperm.xlu2 %2228, %v111_v58  }
  0x53   :  { %229 = vperm.xlu1 %2227, %v127_v59  }
  0x54   :  { %214 = vperm.xlu0 %2226, %v124_v60  }
  0x58   :  { %1976 = vmatmul.msk.f32.gmra.mxu0 %vm327_vm0, %v80_v61 }
  0x59   :  { %1988 = vmatmul.msk.f32.gmra.mxu1 %vm327_vm0, %v92_v62  ;;  %1996 = vmatmul.msk.f32.gmra.mxu2 %vm327_vm0, %v100_v63 }
  0x5a   :  { %2004 = vmatmul.msk.f32.gmra.mxu3 %vm327_vm0, %v108_v0  ;;  %194 = vperm.xlu2 %2228, %v120_v1  }
  0x5b   :  { %269 = vperm.xlu1 %2227, %v135_v2  }
  0x5c   :  { %254 = vperm.xlu0 %2226, %v132_v3  }
  0x60   :  { %1977 = vmatmul.msk.f32.gmra.mxu0 %vm327_vm0, %v81_v4 }
  0x61   :  { %1989 = vmatmul.msk.f32.gmra.mxu1 %vm327_vm0, %v93_v5  ;;  %1997 = vmatmul.msk.f32.gmra.mxu2 %vm327_vm0, %v101_v6 }
  0x62   :  { %2005 = vmatmul.msk.f32.gmra.mxu3 %vm327_vm0, %v109_v7  ;;  %239 = vperm.xlu2 %2228, %v129_v8  }
  0x63   :  { %319 = vperm.xlu1 %2227, %v145_v9  }
  0x64   :  { %304 = vperm.xlu0 %2226, %v142_v10  }
  0x68   :  { %1978 = vmatmul.msk.f32.gmra.mxu0 %vm327_vm0, %v82_v11 }
  0x69   :  { %1990 = vmatmul.msk.f32.gmra.mxu1 %vm327_vm0, %v94_v12  ;;  %1998 = vmatmul.msk.f32.gmra.mxu2 %vm327_vm0, %v102_v13 }
  0x6a   :  { %2006 = vmatmul.msk.f32.gmra.mxu3 %vm327_vm0, %v110_v14  ;;  %284 = vperm.xlu2 %2228, %v138_v15  }
  0x6b   :  { %299 = vperm.xlu1 %2227, %v141_v16  }
  0x6c   :  { %224 = vperm.xlu0 %2226, %v126_v17   ;;  %v2921_v17 = vstv %s2883_s1 }
  0x70   :  { %1979 = vmatmul.msk.f32.gmra.mxu0 %vm327_vm0, %v83_v18 }
  0x72   :  { %209 = vperm.xlu2 %2228, %v123_v19  }
  0x74   :  { %1686 = vperm.xlu0 %2226, %v1683_v20  }
  0x78   :  { %1980 = vmatmul.msk.f32.gmra.mxu0 %vm327_vm0, %v84_v21  ;;  %v2924_v21 = vstv %s2887_s2 }
  0x7a   :  { %v250_v23 = vpop.permute.xlu2 %249  ;;  %314 = vperm.xlu2 %2228, %v144_v22   ;;  %v2927_v22 = vstv %s2890_s14 }
  0x80   :  { %1981 = vmatmul.msk.f32.gmra.mxu0 %vm327_vm0, %v85_v24  ;;  %v2933_v24 = vstv %s2892_s15 }
  0x81   :  { %v160_v25 = vpop.permute.xlu0 %159  ;;  %v2843_v27 = vpop.permute.xlu1 %189 }
  0x83   :  { %v2841_v26 = vpop.permute.xlu2 %264 }
  0x88   :  { %1982 = vmatmul.msk.f32.gmra.mxu0 %vm327_vm0, %v86_v28 }
  0x8a   :  { %v2849_v29 = vpop.permute.xlu0 %174  ;;  %v2851_v31 = vpop.permute.xlu1 %204 }
  0x8b   :  { %4432 = vst [vmem:[#allocation8_spill] sm:$0xff] %v2851_v31 }
  0x8c   :  { %v155_v30 = vpop.permute.xlu2 %154 }
  0x94   :  { %v2853_v32 = vpop.permute.xlu2 %199  ;;  %v2855_v33 = vpop.permute.xlu0 %279 }
  0x95   :  { %4433 = vst [vmem:[#allocation9_spill] sm:$0xff] %v2853_v32  ;;  %v295_v34 = vpop.permute.xlu1 %294 }
  0x9c   :  { %v2857_v35 = vpop.permute.xlu2 %244 }
  0x9d   :  { %v2861_v37 = vpop.permute.xlu1 %184 }
  0x9e   :  { %v2859_v36 = vpop.permute.xlu0 %169 }
  0xa4   :  { %v290_v38 = vpop.permute.xlu2 %289 }
  0xa5   :  { %v2863_v41 = vpop.permute.xlu1 %234 }
  0xa6   :  { %v220_v39 = vpop.permute.xlu0 %219 }
  0xac   :  { %v150_v40 = vpop.permute.xlu2 %149 }
  0xad   :  { %v453_v42 = vpop.f32.mrf.mxu0  ;;  %v2878_v55 = vpop.permute.xlu1 %274 }
  0xae   :  { %v2865_v43 = vpop.f32.mrf.mxu1  ;;  %v260_v44 = vpop.permute.xlu0 %259  ;;  %v2867_v45 = vadd.f32 %v453_v42, %v150_v40  ;;  %v2943_v40 = vstv %s2901_s18  ;;  %v2946_v42 = vstv %s2909_s19 }
  0xb0   :  { %v597_v46 = vmin.f32 %v2867_v45, 0.0  ;;  %vm561_vm1 = vcmp.gt.f32.partialorder %v2867_v45, 0.0 }
  0xb2   :  { %v633_v54 = vmul.f32 1.442695, %v597_v46 }
  0xb4   :  { %v513_v47 = vpop.f32.mrf.mxu2  ;;  %v2876_v53 = vpop.permute.xlu2 %194  ;;  %2229 = vpow2.f32 %v633_v54 }
  0xb5   :  { %v2870_v48 = vadd.f32 %v513_v47, %v250_v23  ;;  %v537_v49 = vpop.f32.mrf.mxu3  ;;  %v456_v50 = vpop.f32.mrf.mxu0  ;;  %4434 = vst [vmem:[#allocation10_spill] sm:$0xff] %v2876_v53 }
  0xb6   :  { %v2872_v51 = vadd.f32 %v537_v49, %v290_v38  ;;  %v2874_v52 = vpop.f32.mrf.mxu1  ;;  %v2880_v56 = vpop.permute.xlu0 %309  ;;  %v2885_v58 = vadd.f32 %v456_v50, %v155_v30  ;;  %v2956_v50 = vstv %s2917_s20 }
  0xb7   :  { %v617_v57 = vmin.f32 %v2870_v48, 0.0  ;;  %v2913_v10 = vpop.permute.xlu1 %324  ;;  %vm581_vm2 = vcmp.gt.f32.partialorder %v2870_v48, 0.0 }
  0xb8   :  { %v625_v59 = vmin.f32 %v2872_v51, 0.0  ;;  %v598_v62 = vmin.f32 %v2885_v58, 0.0  ;;  %vm589_vm3 = vcmp.gt.f32.partialorder %v2872_v51, 0.0  ;;  %vm562_vm4 = vcmp.gt.f32.partialorder %v2885_v58, 0.0 }
  0xb9   :  { %v673_v60 = vmul.f32 1.442695, %v617_v57 }
  0xba   :  { %v689_v1 = vmul.f32 1.442695, %v625_v59  ;;  %v2230_v8 = vpop.eup %2229  ;;  %v635_v9 = vmul.f32 1.442695, %v598_v62 }
  0xbb   :  { %2231 = vpow2.f32 %v673_v60  ;;  %v2007_v15 = vadd.f32 -1.0, %v2230_v8 }
  0xbc   :  { %v2894_v61 = vpop.f32.mrf.mxu2  ;;  %v2911_v7 = vpop.permute.xlu2 %239  ;;  %2233 = vpow2.f32 %v689_v1 }
  0xbd   :  { %v540_v63 = vpop.f32.mrf.mxu3  ;;  %v459_v0 = vpop.f32.mrf.mxu0  ;;  %2235 = vpow2.f32 %v635_v9  ;;  %v741_v38 = vsel %vm561_vm1, %v2867_v45, %v2007_v15 }
  0xbe   :  { %v495_v2 = vpop.f32.mrf.mxu1  ;;  %v2903_v3 = vadd.f32 %v540_v63, %v295_v34  ;;  %v2905_v4 = vadd.f32 %v459_v0, %v160_v25  ;;  %v165_v6 = vpop.permute.xlu0 %164  ;;  %v2936_v25 = vstv %s2896_s16  ;;  %v2977_v9 = vmul.f32 %v2927_v22, %v741_v38 }
  0xbf   :  { %v2907_v5 = vadd.f32 %v495_v2, %v220_v39  ;;  %v2940_v39 = vstv %s2899_s17  ;;  %v2965_v62 = vpop.permute.xlu1 %179  ;;  %v2969_v2 = vmul.f32 %v2921_v17, %v741_v38  ;;  %v2986_v15 = vmul.f32 %v2933_v24, %v741_v38 }
  0xc0   :  { %v626_v11 = vmin.f32 %v2903_v3, 0.0  ;;  %v599_v12 = vmin.f32 %v2905_v4, 0.0  ;;  %vm590_vm5 = vcmp.gt.f32.partialorder %v2903_v3, 0.0  ;;  %vm563_vm6 = vcmp.gt.f32.partialorder %v2905_v4, 0.0 }
  0xc1   :  { %v611_v14 = vmin.f32 %v2907_v5, 0.0  ;;  %v2232_v20 = vpop.eup %2231  ;;  %vm575_vm7 = vcmp.gt.f32.partialorder %v2907_v5, 0.0 }
  0xc2   :  { %v691_v13 = vmul.f32 1.442695, %v626_v11  ;;  %v637_v18 = vmul.f32 1.442695, %v599_v12  ;;  %v2234_v34 = vpop.eup %2233 }
  0xc3   :  { %v661_v28 = vmul.f32 1.442695, %v611_v14  ;;  %v2236_v59 = vpop.eup %2235  ;;  %v2035_v60 = vadd.f32 -1.0, %v2234_v34 }
  0xc4   :  { %v519_v16 = vpop.f32.mrf.mxu2  ;;  %2237 = vpow2.f32 %v691_v13  ;;  %v2963_v57 = vpop.permute.xlu2 %284 }
  0xc5   :  { %v462_v19 = vpop.f32.mrf.mxu0  ;;  %v2929_v23 = vadd.f32 %v519_v16, %v260_v44  ;;  %v2027_v44 = vadd.f32 -1.0, %v2232_v20  ;;  %2239 = vpow2.f32 %v637_v18  ;;  %v2958_v45 = vpop.f32.mrf.mxu3  ;;  %v2008_v16 = vadd.f32 -1.0, %v2236_v59 }
  0xc6   :  { %v215_v30 = vpop.permute.xlu0 %214  ;;  %v2949_v47 = vadd.f32 %v462_v19, %v165_v6  ;;  %v2951_v49 = vpop.f32.mrf.mxu1  ;;  %2241 = vpow2.f32 %v661_v28  ;;  %v2972_v6 = vmul.f32 %v2924_v21, %v741_v38  ;;  %v769_v19 = vsel %vm589_vm3, %v2872_v51, %v2035_v60 }
  0xc7   :  { %v619_v46 = vmin.f32 %v2929_v23, 0.0  ;;  %v2961_v54 = vadd.f32 %v2874_v52, %v215_v30  ;;  %v761_v11 = vsel %vm581_vm2, %v2870_v48, %v2027_v44  ;;  %v3003_v59 = vmul.f32 %v2936_v25, %v769_v19 }
  0xc8   :  { %v600_v0 = vmin.f32 %v2949_v47, 0.0  ;;  %v802_v48 = vmul.f32 %v2936_v25, %v761_v11  ;;  %v1004_v28 = vmul.f32 %v2940_v39, %v761_v11  ;;  %v1254_v44 = vmul.f32 %v2943_v40, %v761_v11 }
  0xc9   :  { %v677_v63 = vmul.f32 1.442695, %v619_v46  ;;  %v610_v52 = vmin.f32 %v2961_v54, 0.0  ;;  %v1481_v46 = vmul.f32 %v2946_v42, %v761_v11  ;;  %4435 = vst [vmem:[#allocation11_spill] sm:$0xff] %v3003_v59  ;;  %v3009_v60 = vmul.f32 %v2943_v40, %v769_v19 }
  0xca   :  { %v2238_v1 = vpop.eup %2237  ;;  %v639_v12 = vmul.f32 1.442695, %v600_v0  ;;  %v3015_v0 = vmul.f32 %v2946_v42, %v769_v19  ;;  %vm583_vm8 = vcmp.gt.f32.partialorder %v2929_v23, 0.0  ;;  %vm564_vm9 = vcmp.gt.f32.partialorder %v2949_v47, 0.0 }
  0xcb   :  { %v2240_v18 = vpop.eup %2239  ;;  %v2036_v20 = vadd.f32 -1.0, %v2238_v1  ;;  %2243 = vpow2.f32 %v677_v63  ;;  %v659_v30 = vmul.f32 1.442695, %v610_v52  ;;  %4437 = vst [vmem:[#allocation13_spill] sm:$0xff] %v3009_v60  ;;  %v742_v63 = vsel %vm562_vm4, %v2885_v58, %v2008_v16 }
  0xcc   :  { %v522_v8 = vpop.f32.mrf.mxu2  ;;  %v2242_v38 = vpop.eup %2241  ;;  %v2009_v51 = vadd.f32 -1.0, %v2240_v18  ;;  %2245 = vpow2.f32 %v639_v12  ;;  %4438 = vst [vmem:[#allocation14_spill] sm:$0xff] %v3015_v0  ;;  %vm574_vm11 = vcmp.gt.f32.partialorder %v2961_v54, 0.0 }
  0xcd   :  { %v2983_v13 = vadd.f32 %v522_v8, %v2841_v26  ;;  %v465_v14 = vpop.f32.mrf.mxu0  ;;  %v770_v1 = vsel %vm590_vm5, %v2903_v3, %v2036_v20  ;;  %v2021_v18 = vadd.f32 -1.0, %v2242_v38  ;;  %2247 = vpow2.f32 %v659_v30  ;;  %v3025_v16 = vpop.f32.mrf.mxu3 }
  0xce   :  { %v2995_v26 = vadd.f32 %v465_v14, %v2859_v36  ;;  %v3006_v36 = vmul.f32 %v2940_v39, %v769_v19  ;;  %v743_v52 = vsel %vm563_vm6, %v2905_v4, %v2009_v51  ;;  %v501_v11 = vpop.f32.mrf.mxu1  ;;  %v255_v12 = vpop.permute.xlu0 %254  ;;  %v3031_v3 = vmul.f32 %v2924_v21, %v742_v63 }
  0xcf   :  { %v620_v34 = vmin.f32 %v2983_v13, 0.0  ;;  %v1462_v14 = vmul.f32 %v2933_v24, %v743_v52  ;;  %v210_v19 = vpop.permute.xlu2 %209  ;;  %v3034_v4 = vmul.f32 %v2927_v22, %v742_v63  ;;  %v3037_v20 = vmul.f32 %v2933_v24, %v742_v63  ;;  %v230_v51 = vpop.permute.xlu1 %229 }
  0xd0   :  { %4436 = vst [vmem:[#allocation12_spill] sm:$0xff] %v3006_v36  ;;  %v601_v8 = vmin.f32 %v2995_v26, 0.0  ;;  %v3028_v36 = vmul.f32 %v2921_v17, %v742_v63  ;;  %v3040_v30 = vadd.f32 %v501_v11, %v230_v51  ;;  %v3046_v0 = vmul.f32 %v2936_v25, %v770_v1 }
  0xd1   :  { %v679_v58 = vmul.f32 1.442695, %v620_v34  ;;  %v2244_v60 = vpop.eup %2243  ;;  %4440 = vst [vmem:[#allocation16_spill] sm:$0xff] %v3031_v3  ;;  %v1499_v38 = vadd.f32 %v1481_v46, %v1462_v14  ;;  %v3043_v34 = vadd.f32 %v2894_v61, %v255_v12  ;;  %v3053_v63 = vmul.f32 %v2940_v39, %v770_v1 }
  0xd2   :  { %4439 = vst [vmem:[#allocation15_spill] sm:$0xff] %v3028_v36  ;;  %v2246_v59 = vpop.eup %2245  ;;  %v641_v3 = vmul.f32 1.442695, %v601_v8  ;;  %v755_v46 = vsel %vm575_vm7, %v2907_v5, %v2021_v18  ;;  %v2029_v11 = vadd.f32 -1.0, %v2244_v60  ;;  %v783_v61 = vmul.f32 %v2921_v17, %v743_v52 }
  0xd3   :  { %4441 = vst [vmem:[#allocation17_spill] sm:$0xff] %v3034_v4  ;;  %v3050_v4 = vadd.f32 %v2865_v43, %v210_v19  ;;  %2249 = vpow2.f32 %v679_v58  ;;  %v985_v12 = vmul.f32 %v2924_v21, %v743_v52  ;;  %v1235_v14 = vmul.f32 %v2927_v22, %v743_v52  ;;  %v2248_v8 = vpop.eup %2247 }
  0xd4   :  { %4442 = vst [vmem:[#allocation18_spill] sm:$0xff] %v3037_v20  ;;  %2251 = vpow2.f32 %v641_v3  ;;  %v3062_v43 = vadd.f32 %v2956_v50, %v1499_v38  ;;  %v2010_v19 = vadd.f32 -1.0, %v2246_v59  ;;  %v613_v51 = vmin.f32 %v3040_v30, 0.0 }
  0xd5   :  { %4443 = vst [vmem:[#allocation19_spill] sm:$0xff] %v3046_v0  ;;  %v618_v0 = vmin.f32 %v3043_v34, 0.0  ;;  %v3067_v5 = vmul.f32 %v2943_v40, %v770_v1  ;;  %v3070_v60 = vmul.f32 %v2946_v42, %v770_v1  ;;  %v3073_v18 = vmul.f32 %v2921_v17, %v755_v46 }
  0xd6   :  { %4444 = vst [vmem:[#allocation20_spill] sm:$0xff] %v3053_v63  ;;  %vm565_vm10 = vcmp.gt.f32.partialorder %v2995_v26, 0.0  ;;  %v3077_v52 = vmul.f32 %v2924_v21, %v755_v46  ;;  %v3080_v59 = vmul.f32 %v2927_v22, %v755_v46  ;;  %v3083_v58 = vmul.f32 %v2933_v24, %v755_v46 }
  0xd7   :  { %4445 = vst [vmem:[#allocation21_spill] sm:$0xff] %v3062_v43  ;;  %v763_v3 = vsel %vm583_vm8, %v2929_v23, %v2029_v11  ;;  %v3088_v1 = vadd.f32 %v802_v48, %v783_v61  ;;  %v3090_v38 = vadd.f32 %v1004_v28, %v985_v12  ;;  %v744_v46 = vsel %vm564_vm9, %v2949_v47, %v2010_v19  ;;  %v549_v11 = vpop.f32.mrf.mxu3  ;;  %v468_v28 = vpop.f32.mrf.mxu0 }
  0xd8   :  { %4446 = vst [vmem:[#allocation22_spill] sm:$0xff] %v3067_v5  ;;  %v3092_v5 = vadd.f32 %v1254_v44, %v1235_v14  ;;  %vm584_vm12 = vcmp.gt.f32.partialorder %v2983_v13, 0.0  ;;  %v665_v23 = vmul.f32 1.442695, %v613_v51  ;;  %v675_v48 = vmul.f32 1.442695, %v618_v0 }
  0xd9   :  { %4447 = vst [vmem:[#allocation23_spill] sm:$0xff] %v3070_v60  ;;  %v525_v60 = vpop.f32.mrf.mxu2  ;;  %v2250_v63 = vpop.eup %2249  ;;  %v804_v44 = vmul.f32 %v2936_v25, %v763_v3  ;;  %v1006_v12 = vmul.f32 %v2940_v39, %v763_v3  ;;  %v1256_v14 = vmul.f32 %v2943_v40, %v763_v3  ;;  %v609_v47 = vmin.f32 %v3050_v4, 0.0 }
  0xda   :  { %4448 = vst [vmem:[#allocation24_spill] sm:$0xff] %v3073_v18  ;;  %v2020_v18 = vadd.f32 -1.0, %v2248_v8  ;;  %v2252_v61 = vpop.eup %2251  ;;  %v1483_v8 = vmul.f32 %v2946_v42, %v763_v3  ;;  %2253 = vpow2.f32 %v665_v23  ;;  %v2030_v0 = vadd.f32 -1.0, %v2250_v63 }
  0xdb   :  { %4449 = vst [vmem:[#allocation25_spill] sm:$0xff] %v3077_v52  ;;  %2255 = vpow2.f32 %v675_v48  ;;  %v3108_v51 = vadd.f32 %v549_v11, %v2880_v56  ;;  %v3111_v36 = vadd.f32 %v468_v28, %v2849_v29  ;;  %vm582_vm13 = vcmp.gt.f32.partialorder %v3043_v34, 0.0 }
  0xdc   :  { %4450 = vst [vmem:[#allocation26_spill] sm:$0xff] %v3080_v59  ;;  %v1554_v59 = vmin.f32 %v3062_v43, 0.0  ;;  %v270_v43 = vpop.permute.xlu1 %269  ;;  %v784_v48 = vmul.f32 %v2921_v17, %v744_v46  ;;  %v754_v52 = vsel %vm574_vm11, %v2961_v54, %v2020_v18  ;;  %vm577_vm14 = vcmp.gt.f32.partialorder %v3040_v30, 0.0 }
  0xdd   :  { %4451 = vst [vmem:[#allocation27_spill] sm:$0xff] %v3088_v1  ;;  %v2011_v1 = vadd.f32 -1.0, %v2252_v61  ;;  %v3105_v19 = vadd.f32 %v525_v60, %v270_v43  ;;  %v657_v61 = vmul.f32 1.442695, %v609_v47  ;;  %vm573_vm15 = vcmp.gt.f32.partialorder %v3050_v4, 0.0 }
  0xde   :  { %4452 = vst [vmem:[#allocation28_spill] sm:$0xff] %v3090_v38  ;;  %v1574_v38 = vmul.f32 1.442695, %v1554_v59  ;;  %vm593_vm1 = vcmp.gt.f32.partialorder %v3108_v51, 0.0  ;;  %vm566_vm2 = vcmp.gt.f32.partialorder %v3111_v36, 0.0 }
  0xdf   :  { %4453 = vst [vmem:[#allocation29_spill] sm:$0xff] %v3092_v5  ;;  %v504_v5 = vpop.f32.mrf.mxu1  ;;  %v745_v3 = vsel %vm565_vm10, %v2995_v26, %v2011_v1  ;;  %v621_v23 = vmin.f32 %v3105_v19, 0.0  ;;  %2257 = vpow2.f32 %v657_v61  ;;  %v629_v1 = vmin.f32 %v3108_v51, 0.0  ;;  %v471_v18 = vpop.f32.mrf.mxu0 }
  0xe0   :  { %v3119_v43 = vadd.f32 %v504_v5, %v2863_v41  ;;  %v785_v63 = vmul.f32 %v2921_v17, %v745_v3  ;;  %v987_v56 = vmul.f32 %v2924_v21, %v745_v3  ;;  %v1237_v60 = vmul.f32 %v2927_v22, %v745_v3  ;;  %v2254_v47 = vpop.eup %2253 }
  0xe1   :  { %v1464_v29 = vmul.f32 %v2933_v24, %v745_v3  ;;  %v681_v26 = vmul.f32 1.442695, %v621_v23  ;;  %v697_v3 = vmul.f32 1.442695, %v629_v1  ;;  %v602_v61 = vmin.f32 %v3111_v36, 0.0  ;;  %v305_v23 = vpop.permute.xlu0 %304  ;;  %v2256_v20 = vpop.eup %2255 }
  0xe2   :  { %v3127_v11 = vadd.f32 %v804_v44, %v785_v63  ;;  %v3129_v28 = vadd.f32 %v1006_v12, %v987_v56  ;;  %v3131_v41 = vadd.f32 %v1256_v14, %v1237_v60  ;;  %v986_v44 = vmul.f32 %v2924_v21, %v744_v46 }
  0xe3   :  { %v1501_v5 = vadd.f32 %v1483_v8, %v1464_v29  ;;  %v764_v12 = vsel %vm584_vm12, %v2983_v13, %v2030_v0  ;;  %2259 = vpow2.f32 %v681_v26  ;;  %v614_v59 = vmin.f32 %v3119_v43, 0.0 }
  0xe4   :  { %4454 = vst [vmem:[#allocation30_spill] sm:$0xff] %v3127_v11  ;;  %v1236_v14 = vmul.f32 %v2927_v22, %v744_v46  ;;  %v2028_v8 = vadd.f32 -1.0, %v2256_v20  ;;  %2261 = vpow2.f32 %v697_v3  ;;  %v643_v54 = vmul.f32 1.442695, %v602_v61  ;;  %v3177_v11 = vpop.permute.xlu1 %319 }
  0xe5   :  { %4455 = vst [vmem:[#allocation31_spill] sm:$0xff] %v3129_v28  ;;  %v1463_v63 = vmul.f32 %v2933_v24, %v744_v46  ;;  %v3146_v56 = vmul.f32 %v2921_v17, %v754_v52  ;;  %v3149_v60 = vmul.f32 %v2924_v21, %v754_v52  ;;  %v3153_v13 = vadd.f32 %v3025_v16, %v305_v23  ;;  %v2258_v0 = vpop.eup %2257 }
  0xe6   :  { %4456 = vst [vmem:[#allocation32_spill] sm:$0xff] %v3131_v41  ;;  %2263 = vpow2.f32 %v1574_v38  ;;  %v3156_v20 = vmul.f32 %v2927_v22, %v754_v52  ;;  %v3159_v29 = vmul.f32 %v2933_v24, %v754_v52  ;;  %v3162_v46 = vmul.f32 %v2936_v25, %v764_v12 }
  0xe7   :  { %4457 = vst [vmem:[#allocation33_spill] sm:$0xff] %v3146_v56  ;;  %v2023_v26 = vadd.f32 -1.0, %v2254_v47  ;;  %v762_v1 = vsel %vm582_vm13, %v3043_v34, %v2028_v8  ;;  %2265 = vpow2.f32 %v643_v54  ;;  %v667_v3 = vmul.f32 1.442695, %v614_v59  ;;  %v528_v59 = vpop.f32.mrf.mxu2 }
  0xe8   :  { %4458 = vst [vmem:[#allocation34_spill] sm:$0xff] %v3149_v60  ;;  %v803_v16 = vmul.f32 %v2936_v25, %v762_v1  ;;  %v1005_v38 = vmul.f32 %v2940_v39, %v762_v1  ;;  %v1255_v61 = vmul.f32 %v2943_v40, %v762_v1  ;;  %v1482_v23 = vmul.f32 %v2946_v42, %v762_v1 }
  0xe9   :  { %4459 = vst [vmem:[#allocation35_spill] sm:$0xff] %v3156_v20  ;;  %v2260_v52 = vpop.eup %2259  ;;  %v3172_v41 = vmul.f32 %v2940_v39, %v764_v12  ;;  %v3175_v47 = vmul.f32 %v2943_v40, %v764_v12  ;;  %v2019_v20 = vadd.f32 -1.0, %v2258_v0  ;;  %v628_v34 = vmin.f32 %v3153_v13, 0.0 }
  0xea   :  { %v2262_v8 = vpop.eup %2261  ;;  %v3180_v54 = vadd.f32 %v803_v16, %v784_v48  ;;  %v3182_v56 = vadd.f32 %v1005_v38, %v986_v44  ;;  %v3184_v28 = vadd.f32 %v1255_v61, %v1236_v14  ;;  %v1500_v1 = vadd.f32 %v1482_v23, %v1463_v63 }
  0xeb   :  { %v1484_v60 = vmul.f32 %v2946_v42, %v764_v12  ;;  %v757_v31 = vsel %vm577_vm14, %v3040_v30, %v2023_v26  ;;  %vm585_vm0 = vcmp.gt.f32.partialorder %v3105_v19, 0.0  ;;  %2267 = vpow2.f32 %v667_v3 }
  0xec   :  { %4460 = vst [vmem:[#allocation36_spill] sm:$0xff] %v3180_v54  ;;  %v3191_v0 = vpop.eup %2263  ;;  %v2031_v32 = vadd.f32 -1.0, %v2260_v52  ;;  %v2039_v53 = vadd.f32 -1.0, %v2262_v8  ;;  %v695_v48 = vmul.f32 1.442695, %v628_v34  ;;  %v3194_v44 = vadd.f32 %v528_v59, %v2878_v55  ;;  %v3208_v55 = vpop.f32.mrf.mxu0 }
  0xed   :  { %4461 = vst [vmem:[#allocation37_spill] sm:$0xff] %v3182_v56  ;;  %v2266_v14 = vpop.eup %2265  ;;  %v3197_v63 = vadd.f32 %v2956_v50, %v1501_v5  ;;  %v3202_v30 = vadd.f32 %v471_v18, %v2965_v62  ;;  %v753_v12 = vsel %vm573_vm15, %v3050_v4, %v2019_v20  ;;  %v3211_v5 = vmul.f32 %v2921_v17, %v757_v31  ;;  %v552_v52 = vpop.f32.mrf.mxu3 }
  0xee   :  { %4462 = vst [vmem:[#allocation38_spill] sm:$0xff] %v3184_v28  ;;  %v773_v26 = vsel %vm593_vm1, %v3108_v51, %v2039_v53  ;;  %v2012_v3 = vadd.f32 -1.0, %v2266_v14  ;;  %2269 = vpow2.f32 %v695_v48  ;;  %v3214_v16 = vmul.f32 %v2924_v21, %v757_v31  ;;  %v507_v48 = vpop.f32.mrf.mxu1  ;;  %v300_v14 = vpop.permute.xlu1 %299 }
  0xef   :  { %4463 = vst [vmem:[#allocation39_spill] sm:$0xff] %v3191_v0  ;;  %v1493_v38 = vmul.f32 %v2946_v42, %v773_v26  ;;  %vm578_vm3 = vcmp.gt.f32.partialorder %v3119_v43, 0.0  ;;  %v3219_v62 = vmul.f32 %v2927_v22, %v757_v31  ;;  %v765_v53 = vsel %vm585_vm0, %v3105_v19, %v2031_v32 }
  0xf0   :  { %4464 = vst [vmem:[#allocation40_spill] sm:$0xff] %v3197_v63  ;;  %v746_v4 = vsel %vm566_vm2, %v3111_v36, %v2012_v3  ;;  %v622_v51 = vmin.f32 %v3194_v44, 0.0  ;;  %v3227_v20 = vmul.f32 %v2933_v24, %v757_v31  ;;  %v3230_v61 = vmul.f32 %v2921_v17, %v753_v12 }
  0xf1   :  { %4465 = vst [vmem:[#allocation41_spill] sm:$0xff] %v3211_v5  ;;  %v2268_v18 = vpop.eup %2267  ;;  %v1511_v23 = vadd.f32 %v1493_v38, %v3083_v58  ;;  %vm592_vm4 = vcmp.gt.f32.partialorder %v3153_v13, 0.0  ;;  %v3235_v34 = vmul.f32 %v2924_v21, %v753_v12  ;;  %v3238_v32 = vmul.f32 %v2927_v22, %v753_v12 }
  0xf2   :  { %4466 = vst [vmem:[#allocation42_spill] sm:$0xff] %v3219_v62  ;;  %v1465_v36 = vmul.f32 %v2933_v24, %v746_v4  ;;  %v603_v19 = vmin.f32 %v3202_v30, 0.0  ;;  %v3243_v31 = vadd.f32 %v2956_v50, %v1500_v1  ;;  %v3246_v59 = vmul.f32 %v2933_v24, %v753_v12  ;;  %v225_v1 = vpop.permute.xlu0 %224 }
  0xf3   :  { %4467 = vst [vmem:[#allocation43_spill] sm:$0xff] %v3230_v61  ;;  %v3249_v58 = vmul.f32 %v2936_v25, %v765_v53  ;;  %v3252_v8 = vmul.f32 %v2940_v39, %v765_v53  ;;  %v3255_v38 = vmul.f32 %v2943_v40, %v765_v53  ;;  %v2024_v0 = vadd.f32 -1.0, %v2268_v18 }
  0xf4   :  { %4468 = vst [vmem:[#allocation44_spill] sm:$0xff] %v3235_v34  ;;  %v2270_v3 = vpop.eup %2269  ;;  %v1502_v63 = vadd.f32 %v1484_v60, %v1465_v36  ;;  %v683_v28 = vmul.f32 1.442695, %v622_v51  ;;  %v3261_v12 = vmul.f32 %v2936_v25, %v773_v26  ;;  %v786_v61 = vmul.f32 %v2921_v17, %v746_v4  ;;  %v531_v51 = vpop.f32.mrf.mxu2 }
  0xf5   :  { %4469 = vst [vmem:[#allocation45_spill] sm:$0xff] %v3238_v32  ;;  %v3264_v32 = vmul.f32 %v2940_v39, %v773_v26  ;;  %v2038_v54 = vadd.f32 -1.0, %v2270_v3  ;;  %v645_v56 = vmul.f32 1.442695, %v603_v19  ;;  %v3268_v34 = vadd.f32 %v507_v48, %v2911_v7  ;;  %v315_v19 = vpop.permute.xlu2 %314 }
  0xf6   :  { %4470 = vst [vmem:[#allocation46_spill] sm:$0xff] %v3243_v31  ;;  %v3258_v31 = vmul.f32 %v2946_v42, %v765_v53  ;;  %v3271_v60 = vadd.f32 %v2958_v45, %v300_v14  ;;  %v3274_v53 = vmul.f32 %v2943_v40, %v773_v26  ;;  %v988_v18 = vmul.f32 %v2924_v21, %v746_v4  ;;  %v3289_v26 = vpop.f32.mrf.mxu0 }
  0xf7   :  { %v772_v36 = vsel %vm592_vm4, %v3153_v13, %v2038_v54  ;;  %v3281_v3 = vadd.f32 %v2951_v49, %v225_v1  ;;  %v1238_v7 = vmul.f32 %v2927_v22, %v746_v4  ;;  %v758_v45 = vsel %vm578_vm3, %v3119_v43, %v2024_v0  ;;  %v555_v1 = vpop.f32.mrf.mxu3 }
  0xf8   :  { %2271 = vpow2.f32 %v683_v28  ;;  %v3287_v48 = vadd.f32 %v552_v52, %v315_v19  ;;  %v1492_v14 = vmul.f32 %v2946_v42, %v772_v36  ;;  %vm567_vm5 = vcmp.gt.f32.partialorder %v3202_v30, 0.0 }
  0xf9   :  { %2273 = vpow2.f32 %v645_v56  ;;  %v615_v49 = vmin.f32 %v3268_v34, 0.0  ;;  %v3295_v13 = vadd.f32 %v531_v51, %v2855_v33  ;;  %v3298_v54 = vadd.f32 %v2956_v50, %v1511_v23 }
  0xfa   :  { %v3301_v43 = vadd.f32 %v3162_v46, %v786_v61  ;;  %v3304_v28 = vadd.f32 %v2956_v50, %v1502_v63  ;;  %v627_v0 = vmin.f32 %v3271_v60, 0.0  ;;  %v3308_v4 = vadd.f32 %v3172_v41, %v988_v18 }
  0xfb   :  { %4471 = vst [vmem:[#allocation47_spill] sm:$0xff] %v3298_v54  ;;  %v3311_v56 = vadd.f32 %v1492_v14, %v3159_v29  ;;  %v669_v52 = vmul.f32 1.442695, %v615_v49  ;;  %v612_v33 = vmin.f32 %v3281_v3, 0.0  ;;  %v3315_v23 = vadd.f32 %v3175_v47, %v1238_v7 }
  0xfc   :  { %4472 = vst [vmem:[#allocation48_spill] sm:$0xff] %v3304_v28  ;;  %v3318_v46 = vmul.f32 %v2921_v17, %v758_v45  ;;  %v693_v63 = vmul.f32 1.442695, %v627_v0  ;;  %v630_v61 = vmin.f32 %v3287_v48, 0.0  ;;  %v3322_v51 = vmul.f32 %v2924_v21, %v758_v45 }
  0xfd   :  { %4473 = vst [vmem:[#allocation49_spill] sm:$0xff] %v3311_v56  ;;  %vm586_vm6 = vcmp.gt.f32.partialorder %v3194_v44, 0.0  ;;  %2275 = vpow2.f32 %v669_v52  ;;  %v663_v41 = vmul.f32 1.442695, %v612_v33  ;;  %v623_v29 = vmin.f32 %v3295_v13, 0.0 }
  0xfe   :  { %v2272_v18 = vpop.eup %2271  ;;  %v1557_v19 = vmin.f32 %v3304_v28, 0.0  ;;  %2277 = vpow2.f32 %v693_v63  ;;  %v699_v47 = vmul.f32 1.442695, %v630_v61  ;;  %v3328_v7 = vadd.f32 %v555_v1, %v3177_v11 }
  0xff   :  { %v2274_v14 = vpop.eup %2273  ;;  %v3332_v0 = vmul.f32 %v2927_v22, %v758_v45  ;;  %v3335_v56 = vmul.f32 %v2933_v24, %v758_v45  ;;  %v3338_v52 = vmul.f32 %v2936_v25, %v772_v36  ;;  %v3341_v33 = vmul.f32 %v2940_v39, %v772_v36 }
 0x100   :  { %v2013_v63 = vadd.f32 -1.0, %v2274_v14  ;;  %2279 = vpow2.f32 %v663_v41  ;;  %v685_v61 = vmul.f32 1.442695, %v623_v29  ;;  %v3344_v11 = vmul.f32 %v2943_v40, %v772_v36  ;;  %v3355_v41 = vpop.f32.mrf.mxu0 }
 0x101   :  { %4474 = vst [vmem:[#allocation50_spill] sm:$0xff] %v3338_v52  ;;  %2281 = vpow2.f32 %v699_v47  ;;  %v631_v1 = vmin.f32 %v3328_v7, 0.0  ;;  %v3349_v49 = vadd.f32 %v3208_v55, %v2861_v37  ;;  %v1580_v45 = vmul.f32 1.442695, %v1557_v19 }
 0x102   :  { %4475 = vst [vmem:[#allocation51_spill] sm:$0xff] %v3344_v11  ;;  %v2032_v54 = vadd.f32 -1.0, %v2272_v18  ;;  %v747_v28 = vsel %vm567_vm5, %v3202_v30, %v2013_v63  ;;  %vm579_vm7 = vcmp.gt.f32.partialorder %v3268_v34, 0.0  ;;  %2283 = vpow2.f32 %v685_v61 }
 0x103   :  { %v2276_v29 = vpop.eup %2275  ;;  %v787_v36 = vmul.f32 %v2921_v17, %v747_v28  ;;  %v989_v47 = vmul.f32 %v2924_v21, %v747_v28  ;;  %v1239_v14 = vmul.f32 %v2927_v22, %v747_v28  ;;  %v1466_v37 = vmul.f32 %v2933_v24, %v747_v28 }
 0x104   :  { %v2278_v55 = vpop.eup %2277  ;;  %v2025_v19 = vadd.f32 -1.0, %v2276_v29  ;;  %v701_v18 = vmul.f32 1.442695, %v631_v1  ;;  %v604_v62 = vmin.f32 %v3349_v49, 0.0  ;;  %v766_v28 = vsel %vm586_vm6, %v3194_v44, %v2032_v54 }
 0x105   :  { %v3363_v30 = vadd.f32 %v3249_v58, %v787_v36  ;;  %v3366_v63 = vadd.f32 %v3252_v8, %v989_v47  ;;  %v3369_v11 = vadd.f32 %v3255_v38, %v1239_v14  ;;  %v1503_v5 = vadd.f32 %v3258_v31, %v1466_v37  ;;  %v510_v47 = vpop.f32.mrf.mxu1  ;;  %v534_v14 = vpop.f32.mrf.mxu2 }
 0x106   :  { %v2280_v52 = vpop.eup %2279  ;;  %v759_v61 = vsel %vm579_vm7, %v3268_v34, %v2025_v19  ;;  %v2037_v1 = vadd.f32 -1.0, %v2278_v55  ;;  %2285 = vpow2.f32 %v701_v18  ;;  %vm591_vm8 = vcmp.gt.f32.partialorder %v3271_v60, 0.0  ;;  %v558_v55 = vpop.f32.mrf.mxu3 }
 0x107   :  { %4476 = vst [vmem:[#allocation52_spill] sm:$0xff] %v3363_v30  ;;  %v2282_v58 = vpop.eup %2281  ;;  %vm576_vm9 = vcmp.gt.f32.partialorder %v3281_v3, 0.0  ;;  %vm594_vm10 = vcmp.gt.f32.partialorder %v3287_v48, 0.0  ;;  %v647_v8 = vmul.f32 1.442695, %v604_v62  ;;  %2287 = vpow2.f32 %v1580_v45 }
 0x108   :  { %4477 = vst [vmem:[#allocation53_spill] sm:$0xff] %v3366_v63  ;;  %v771_v31 = vsel %vm591_vm8, %v3271_v60, %v2037_v1  ;;  %v2022_v38 = vadd.f32 -1.0, %v2280_v52  ;;  %v2040_v29 = vadd.f32 -1.0, %v2282_v58  ;;  %v3383_v44 = vmul.f32 %v2936_v25, %v766_v28  ;;  %v2284_v37 = vpop.eup %2283  ;;  %v483_v30 = vpop.f32.mrf.mxu0 }
 0x109   :  { %4478 = vst [vmem:[#allocation54_spill] sm:$0xff] %v3369_v11  ;;  %v3386_v34 = vmul.f32 %v2940_v39, %v766_v28  ;;  %v3389_v54 = vmul.f32 %v2943_v40, %v766_v28  ;;  %v1479_v36 = vmul.f32 %v2946_v42, %v759_v61  ;;  %v1486_v62 = vmul.f32 %v2946_v42, %v766_v28 }
 0x10a   :  { %v800_v60 = vmul.f32 %v2936_v25, %v759_v61  ;;  %v1002_v52 = vmul.f32 %v2940_v39, %v759_v61  ;;  %v1491_v45 = vmul.f32 %v2946_v42, %v771_v31  ;;  %vm587_vm11 = vcmp.gt.f32.partialorder %v3295_v13, 0.0 }
 0x10b   :  { %v1252_v19 = vmul.f32 %v2943_v40, %v759_v61  ;;  %v756_v18 = vsel %vm576_vm9, %v3281_v3, %v2022_v38  ;;  %v774_v1 = vsel %vm594_vm10, %v3287_v48, %v2040_v29  ;;  %2289 = vpow2.f32 %v647_v8 }
 0x10c   :  { %v2286_v28 = vpop.eup %2285  ;;  %v3405_v58 = vadd.f32 %v1491_v45, %v3246_v59  ;;  %vm595_vm12 = vcmp.gt.f32.partialorder %v3328_v7, 0.0  ;;  %v3409_v11 = vadd.f32 %v510_v47, %v2857_v35  ;;  %v3412_v61 = vadd.f32 %v534_v14, %v2963_v57 }
 0x10d   :  { %v1497_v3 = vadd.f32 %v1479_v36, %v2986_v15  ;;  %v1475_v38 = vmul.f32 %v2933_v24, %v756_v18  ;;  %vm568_vm13 = vcmp.gt.f32.partialorder %v3349_v49, 0.0  ;;  %v3418_v48 = vadd.f32 %v558_v55, %v2913_v10  ;;  %v3420_v59 = vpop.eup %2287 }
 0x10e   :  { %4479 = vst [vmem:[#allocation55_spill] sm:$0xff] %v3405_v58  ;;  %v3423_v8 = vadd.f32 %v2956_v50, %v1503_v5  ;;  %v3426_v35 = vadd.f32 %v800_v60, %v2969_v2  ;;  %v1494_v57 = vmul.f32 %v2946_v42, %v774_v1  ;;  %v2041_v29 = vadd.f32 -1.0, %v2286_v28 }
 0x10f   :  { %4480 = vst [vmem:[#allocation56_spill] sm:$0xff] %v3420_v59  ;;  %v3430_v15 = vadd.f32 %v1002_v52, %v2972_v6  ;;  %v3433_v36 = vadd.f32 %v1252_v19, %v2977_v9  ;;  %v3436_v10 = vmul.f32 %v2936_v25, %v771_v31  ;;  %v2033_v47 = vadd.f32 -1.0, %v2284_v37 }
 0x110   :  { %4481 = vst [vmem:[#allocation57_spill] sm:$0xff] %v3423_v8  ;;  %v3439_v14 = vmul.f32 %v2940_v39, %v771_v31  ;;  %v3441_v5 = vadd.f32 %v1494_v57, %v1475_v38  ;;  %v775_v2 = vsel %vm595_vm12, %v3328_v7, %v2041_v29  ;;  %v616_v60 = vmin.f32 %v3409_v11, 0.0 }
 0x111   :  { %4482 = vst [vmem:[#allocation58_spill] sm:$0xff] %v3426_v35  ;;  %v2290_v6 = vpop.eup %2289  ;;  %v3448_v52 = vadd.f32 %v2956_v50, %v1497_v3  ;;  %v3451_v9 = vmul.f32 %v2943_v40, %v771_v31  ;;  %v3454_v37 = vmul.f32 %v2921_v17, %v756_v18  ;;  %v1495_v45 = vmul.f32 %v2946_v42, %v775_v2 }
 0x112   :  { %4483 = vst [vmem:[#allocation59_spill] sm:$0xff] %v3433_v36  ;;  %v3458_v55 = vmul.f32 %v2924_v21, %v756_v18  ;;  %v2014_v19 = vadd.f32 -1.0, %v2290_v6  ;;  %v671_v28 = vmul.f32 1.442695, %v616_v60  ;;  %v624_v7 = vmin.f32 %v3412_v61, 0.0  ;;  %v4490_v6 = vld [vmem:[#allocation10_spill] sm:$0xff] }
 0x113   :  { %4484 = vst [vmem:[#allocation60_spill] sm:$0xff] %v3436_v10  ;;  %v767_v3 = vsel %vm587_vm11, %v3295_v13, %v2033_v47  ;;  %v3465_v38 = vadd.f32 %v1495_v45, %v3227_v20  ;;  %v632_v31 = vmin.f32 %v3418_v48, 0.0  ;;  %v3470_v57 = vadd.f32 %v3289_v26, %v2843_v27 }
 0x114   :  { %4485 = vst [vmem:[#allocation61_spill] sm:$0xff] %v3441_v5  ;;  %v748_v29 = vsel %vm568_vm13, %v3349_v49, %v2014_v19  ;;  %2291 = vpow2.f32 %v671_v28  ;;  %v687_v60 = vmul.f32 1.442695, %v624_v7  ;;  %v3477_v8 = vadd.f32 %v3355_v41, %v4490_v6  ;;  %v486_v19 = vpop.f32.mrf.mxu0  ;;  %v4494_v5 = vld [vmem:[#allocation9_spill] sm:$0xff] }
 0x115   :  { %4486 = vst [vmem:[#allocation62_spill] sm:$0xff] %v3448_v52  ;;  %v3480_v13 = vmul.f32 %v2927_v22, %v756_v18  ;;  %v3483_v20 = vmul.f32 %v2936_v25, %v774_v1  ;;  %v3486_v47 = vmul.f32 %v2940_v39, %v774_v1  ;;  %v1467_v27 = vmul.f32 %v2933_v24, %v748_v29 }
 0x116   :  { %4487 = vst [vmem:[#allocation63_spill] sm:$0xff] %v3451_v9  ;;  %v3490_v26 = vmul.f32 %v2943_v40, %v774_v1  ;;  %v3493_v49 = vmul.f32 %v2936_v25, %v767_v3  ;;  %v703_v45 = vmul.f32 1.442695, %v632_v31  ;;  %v605_v41 = vmin.f32 %v3470_v57, 0.0 }
 0x117   :  { %4488 = vst [vmem:[#allocation64_spill] sm:$0xff] %v3454_v37  ;;  %v3497_v18 = vmul.f32 %v2940_v39, %v767_v3  ;;  %v3500_v28 = vmul.f32 %v2943_v40, %v767_v3  ;;  %v1504_v7 = vadd.f32 %v1486_v62, %v1467_v27  ;;  %2293 = vpow2.f32 %v687_v60 }
 0x118   :  { %4489 = vst [vmem:[#allocation65_spill] sm:$0xff] %v3465_v38  ;;  %v3503_v6 = vmul.f32 %v2946_v42, %v767_v3  ;;  %2295 = vpow2.f32 %v703_v45  ;;  %v649_v1 = vmul.f32 1.442695, %v605_v41  ;;  %v606_v52 = vmin.f32 %v3477_v8, 0.0  ;;  %v4495_v38 = vld [vmem:[#allocation8_spill] sm:$0xff] }
 0x119   :  { %4491 = vst [vmem:[#allocation10_spill] sm:$0xff] %v3480_v13  ;;  %v788_v31 = vmul.f32 %v2921_v17, %v748_v29  ;;  %vm580_vm14 = vcmp.gt.f32.partialorder %v3409_v11, 0.0  ;;  %v3511_v58 = vadd.f32 %v483_v30, %v4494_v5  ;;  %v3514_v59 = vadd.f32 %v486_v19, %v4495_v38 }
 0x11a   :  { %4492 = vst [vmem:[#allocation66_spill] sm:$0xff] %v3483_v20  ;;  %v2292_v62 = vpop.eup %2291  ;;  %v990_v3 = vmul.f32 %v2924_v21, %v748_v29  ;;  %v1240_v60 = vmul.f32 %v2927_v22, %v748_v29  ;;  %2297 = vpow2.f32 %v649_v1  ;;  %v651_v27 = vmul.f32 1.442695, %v606_v52  ;;  %v4501_v20 = vld [vmem:[#allocation16_spill] sm:$0xff] }
 0x11b   :  { %4493 = vst [vmem:[#allocation67_spill] sm:$0xff] %v3490_v26  ;;  %v3521_v45 = vmul.f32 %v2936_v25, %v775_v2  ;;  %v3524_v41 = vmul.f32 %v2940_v39, %v775_v2  ;;  %v2026_v30 = vadd.f32 -1.0, %v2292_v62  ;;  %v607_v5 = vmin.f32 %v3511_v58, 0.0 }
 0x11c   :  { %v3528_v38 = vmul.f32 %v2943_v40, %v775_v2  ;;  %vm588_vm15 = vcmp.gt.f32.partialorder %v3412_v61, 0.0  ;;  %2299 = vpow2.f32 %v651_v27  ;;  %v608_v19 = vmin.f32 %v3514_v59, 0.0 }
 0x11d   :  { %v2294_v29 = vpop.eup %2293  ;;  %v760_v52 = vsel %vm580_vm14, %v3409_v11, %v2026_v30  ;;  %vm596_vm0 = vcmp.gt.f32.partialorder %v3418_v48, 0.0  ;;  %vm569_vm1 = vcmp.gt.f32.partialorder %v3470_v57, 0.0  ;;  %v653_v1 = vmul.f32 1.442695, %v607_v5 }
 0x11e   :  { %v2296_v62 = vpop.eup %2295  ;;  %v3538_v2 = vadd.f32 %v3383_v44, %v788_v31  ;;  %v3541_v27 = vadd.f32 %v3386_v34, %v990_v3  ;;  %v3544_v36 = vadd.f32 %v3389_v54, %v1240_v60  ;;  %v1480_v26 = vmul.f32 %v2946_v42, %v760_v52  ;;  %v4497_v44 = vld [vmem:[#allocation18_spill] sm:$0xff]  ;;  %v4498_v3 = vld [vmem:[#allocation25_spill] sm:$0xff] }
 0x11f   :  { %v2042_v11 = vadd.f32 -1.0, %v2296_v62  ;;  %vm570_vm2 = vcmp.gt.f32.partialorder %v3477_v8, 0.0  ;;  %2301 = vpow2.f32 %v653_v1  ;;  %v655_v30 = vmul.f32 1.442695, %v608_v19 }
 0x120   :  { %v2298_v13 = vpop.eup %2297  ;;  %v3549_v5 = vadd.f32 %v2956_v50, %v1504_v7  ;;  %v1498_v31 = vadd.f32 %v1480_v26, %v4497_v44  ;;  %v2034_v9 = vadd.f32 -1.0, %v2294_v29  ;;  %v3553_v35 = vstv %s3506_s21  ;;  %v4499_v44 = vld [vmem:[#allocation28_spill] sm:$0xff] }
 0x121   :  { %v801_v34 = vmul.f32 %v2936_v25, %v760_v52  ;;  %v1003_v54 = vmul.f32 %v2940_v39, %v760_v52  ;;  %v1034_v60 = vadd.f32 %v3264_v32, %v4498_v3  ;;  %v3560_v62 = vstv %s3516_s22  ;;  %v4500_v3 = vld [vmem:[#allocation15_spill] sm:$0xff] }
 0x122   :  { %4496 = vst [vmem:[#allocation9_spill] sm:$0xff] %v3549_v5  ;;  %v2300_v1 = vpop.eup %2299  ;;  %v1253_v19 = vmul.f32 %v2943_v40, %v760_v52  ;;  %v776_v7 = vsel %vm596_vm0, %v3418_v48, %v2042_v11  ;;  %v2015_v26 = vadd.f32 -1.0, %v2298_v13  ;;  %2303 = vpow2.f32 %v655_v30 }
 0x123   :  { %v1496_v29 = vmul.f32 %v2946_v42, %v776_v7  ;;  %vm571_vm3 = vcmp.gt.f32.partialorder %v3511_v58, 0.0  ;;  %vm572_vm4 = vcmp.gt.f32.partialorder %v3514_v59, 0.0  ;;  %v3571_v32 = vadd.f32 %v3553_v35, %v4499_v44 }
 0x124   :  { %v768_v52 = vsel %vm588_vm15, %v3412_v61, %v2034_v9  ;;  %v749_v48 = vsel %vm569_vm1, %v3470_v57, %v2015_v26  ;;  %v2016_v13 = vadd.f32 -1.0, %v2300_v1  ;;  %v3581_v11 = vadd.f32 %v3553_v35, %v3308_v4  ;;  %v4502_v9 = vld [vmem:[#allocation17_spill] sm:$0xff] }
 0x125   :  { %v2302_v30 = vpop.eup %2301  ;;  %v3584_v5 = vadd.f32 %v801_v34, %v4500_v3  ;;  %v3587_v44 = vadd.f32 %v1003_v54, %v4501_v20  ;;  %v1514_v37 = vadd.f32 %v1496_v29, %v3335_v56  ;;  %v3591_v61 = vadd.f32 %v3553_v35, %v1034_v60 }
 0x126   :  { %v3594_v10 = vadd.f32 %v1253_v19, %v4502_v9  ;;  %v991_v57 = vmul.f32 %v2924_v21, %v749_v48  ;;  %v1468_v4 = vmul.f32 %v2933_v24, %v749_v48  ;;  %v2017_v1 = vadd.f32 -1.0, %v2302_v30 }
 0x127   :  { %v809_v26 = vmul.f32 %v2936_v25, %v768_v52  ;;  %v1011_v34 = vmul.f32 %v2940_v39, %v768_v52  ;;  %v1019_v20 = vmul.f32 %v2940_v39, %v776_v7  ;;  %v750_v56 = vsel %vm570_vm2, %v3477_v8, %v2016_v13 }
 0x128   :  { %v2304_v54 = vpop.eup %2303  ;;  %v1261_v60 = vmul.f32 %v2943_v40, %v768_v52  ;;  %v1488_v19 = vmul.f32 %v2946_v42, %v768_v52  ;;  %v789_v29 = vmul.f32 %v2921_v17, %v749_v48  ;;  %v1505_v3 = vadd.f32 %v3503_v6, %v1468_v4 }
 0x129   :  { %v3609_v30 = vadd.f32 %v2956_v50, %v1514_v37  ;;  %v1241_v9 = vmul.f32 %v2927_v22, %v749_v48  ;;  %v751_v39 = vsel %vm571_vm3, %v3511_v58, %v2017_v1  ;;  %v2018_v63 = vadd.f32 -1.0, %v2304_v54 }
 0x12a   :  { %v3616_v8 = vadd.f32 %v2956_v50, %v1498_v31  ;;  %v1028_v13 = vadd.f32 %v3497_v18, %v991_v57  ;;  %v3620_v42 = vadd.f32 %v2956_v50, %v1505_v3  ;;  %v790_v6 = vmul.f32 %v2921_v17, %v750_v56 }
 0x12b   :  { %4503 = vst [vmem:[#allocation8_spill] sm:$0xff] %v3609_v30  ;;  %v817_v37 = vmul.f32 %v2936_v25, %v776_v7  ;;  %v3625_v52 = vmul.f32 %v2943_v40, %v776_v7  ;;  %v992_v48 = vmul.f32 %v2924_v21, %v750_v56  ;;  %v1037_v58 = vadd.f32 %v1019_v20, %v3322_v51  ;;  %v4506_v20 = vld [vmem:[#allocation14_spill] sm:$0xff]  ;;  %v4512_v30 = vld [vmem:[#allocation27_spill] sm:$0xff] }
 0x12c   :  { %4504 = vst [vmem:[#allocation18_spill] sm:$0xff] %v3616_v8  ;;  %v1242_v4 = vmul.f32 %v2927_v22, %v750_v56  ;;  %v1469_v31 = vmul.f32 %v2933_v24, %v750_v56  ;;  %v1470_v18 = vmul.f32 %v2933_v24, %v751_v39  ;;  %v752_v57 = vsel %vm572_vm4, %v3514_v59, %v2018_v63 }
 0x12d   :  { %4505 = vst [vmem:[#allocation25_spill] sm:$0xff] %v3620_v42  ;;  %v826_v25 = vadd.f32 %v3493_v49, %v789_v29  ;;  %v3638_v40 = vadd.f32 %v3500_v28, %v1241_v9  ;;  %v1560_v7 = vmin.f32 %v3620_v42, 0.0  ;;  %v3641_v51 = vadd.f32 %v809_v26, %v790_v6  ;;  %v4508_v6 = vld [vmem:[#allocation20_spill] sm:$0xff] }
 0x12e   :  { %v3644_v54 = vadd.f32 %v4506_v20, %v1470_v18  ;;  %v994_v56 = vmul.f32 %v2924_v21, %v752_v57  ;;  %v3648_v3 = vadd.f32 %v3553_v35, %v1028_v13  ;;  %v3650_v63 = vadd.f32 %v1011_v34, %v992_v48  ;;  %v4509_v48 = vld [vmem:[#allocation23_spill] sm:$0xff] }
 0x12f   :  { %v792_v59 = vmul.f32 %v2921_v17, %v752_v57  ;;  %v1471_v49 = vmul.f32 %v2933_v24, %v752_v57  ;;  %v3655_v28 = vadd.f32 %v3553_v35, %v1037_v58  ;;  %v3657_v29 = vadd.f32 %v1261_v60, %v1242_v4  ;;  %v4510_v4 = vld [vmem:[#allocation19_spill] sm:$0xff] }
 0x130   :  { %v3659_v26 = vadd.f32 %v1488_v19, %v1469_v31  ;;  %v791_v9 = vmul.f32 %v2921_v17, %v751_v39  ;;  %v1031_v18 = vadd.f32 %v4508_v6, %v994_v56  ;;  %v1586_v20 = vmul.f32 1.442695, %v1560_v7  ;;  %v4511_v6 = vld [vmem:[#allocation24_spill] sm:$0xff] }
 0x131   :  { %v993_v13 = vmul.f32 %v2924_v21, %v751_v39  ;;  %v1243_v34 = vmul.f32 %v2927_v22, %v751_v39  ;;  %v1508_v1 = vadd.f32 %v4509_v48, %v1471_v49  ;;  %v1077_v58 = vmin.f32 %v3571_v32, 0.0 }
 0x132   :  { %4507 = vst [vmem:[#allocation28_spill] sm:$0xff] %v3659_v26  ;;  %v3667_v24 = vadd.f32 %v3553_v35, %v1031_v18  ;;  %v1080_v60 = vmin.f32 %v3581_v11, 0.0  ;;  %v1083_v19 = vmin.f32 %v3648_v3, 0.0  ;;  %v829_v17 = vadd.f32 %v4510_v4, %v792_v59 }
 0x133   :  { %v3674_v31 = vadd.f32 %v2956_v50, %v1508_v1  ;;  %v1089_v21 = vmin.f32 %v3591_v61, 0.0  ;;  %v1092_v39 = vmin.f32 %v3655_v28, 0.0  ;;  %v1097_v56 = vmul.f32 1.442695, %v1077_v58 }
 0x134   :  { %v1086_v7 = vmin.f32 %v3667_v24, 0.0  ;;  %v1103_v49 = vmul.f32 1.442695, %v1080_v60  ;;  %v832_v18 = vadd.f32 %v3261_v12, %v4511_v6  ;;  %v1244_v48 = vmul.f32 %v2927_v22, %v752_v57 }
 0x135   :  { %v1563_v26 = vmin.f32 %v3674_v31, 0.0  ;;  %v1109_v8 = vmul.f32 1.442695, %v1083_v19  ;;  %v835_v59 = vadd.f32 %v817_v37, %v3318_v46  ;;  %2305 = vpow2.f32 %v1097_v56  ;;  %v4514_v19 = vld [vmem:[#allocation12_spill] sm:$0xff] }
 0x136   :  { %v1115_v1 = vmul.f32 1.442695, %v1086_v7  ;;  %v1121_v4 = vmul.f32 1.442695, %v1089_v21  ;;  %v1127_v42 = vmul.f32 1.442695, %v1092_v39  ;;  %2307 = vpow2.f32 %v1103_v49 }
 0x137   :  { %vm1059_vm5 = vcmp.gt.f32.partialorder %v3571_v32, 0.0  ;;  %v3687_v58 = vadd.f32 %v3560_v62, %v4512_v30  ;;  %v3691_v12 = vadd.f32 %v3560_v62, %v3301_v43  ;;  %v3694_v22 = vadd.f32 %v3560_v62, %v826_v25  ;;  %v4513_v30 = vld [vmem:[#allocation11_spill] sm:$0xff]  ;;  %v4515_v21 = vld [vmem:[#allocation13_spill] sm:$0xff] }
 0x138   :  { %2309 = vpow2.f32 %v1109_v8  ;;  %v3697_v46 = vadd.f32 %v3560_v62, %v829_v17  ;;  %v3700_v37 = vadd.f32 %v3560_v62, %v832_v18  ;;  %v3703_v57 = vadd.f32 %v3560_v62, %v835_v59  ;;  %v4516_v8 = vld [vmem:[#allocation22_spill] sm:$0xff] }
 0x139   :  { %2311 = vpow2.f32 %v1586_v20  ;;  %v3706_v60 = vadd.f32 %v4513_v30, %v791_v9  ;;  %v3709_v43 = vadd.f32 %v4514_v19, %v993_v13  ;;  %v3712_v25 = vadd.f32 %v4515_v21, %v1243_v34 }
 0x13a   :  { %v3717_v17 = vadd.f32 %v4516_v8, %v1244_v48  ;;  %v1592_v39 = vmul.f32 1.442695, %v1563_v26  ;;  %vm1062_vm6 = vcmp.gt.f32.partialorder %v3581_v11, 0.0  ;;  %vm1065_vm7 = vcmp.gt.f32.partialorder %v3648_v3, 0.0 }
 0x13b   :  { %2313 = vpow2.f32 %v1115_v1  ;;  %v875_v9 = vmin.f32 %v3687_v58, 0.0  ;;  %v878_v20 = vmin.f32 %v3691_v12, 0.0  ;;  %v881_v13 = vmin.f32 %v3694_v22, 0.0  ;;  %v2306_v34 = vpop.eup %2305 }
 0x13c   :  { %2315 = vpow2.f32 %v1121_v4  ;;  %vm1071_vm8 = vcmp.gt.f32.partialorder %v3591_v61, 0.0  ;;  %v884_v7 = vmin.f32 %v3697_v46, 0.0  ;;  %v887_v26 = vmin.f32 %v3700_v37, 0.0  ;;  %v2308_v49 = vpop.eup %2307 }
 0x13d   :  { %2317 = vpow2.f32 %v1127_v42  ;;  %v890_v56 = vmin.f32 %v3703_v57, 0.0  ;;  %vm1074_vm9 = vcmp.gt.f32.partialorder %v3655_v28, 0.0  ;;  %v2068_v6 = vadd.f32 -1.0, %v2306_v34 }
 0x13e   :  { %v895_v18 = vmul.f32 1.442695, %v875_v9  ;;  %v901_v48 = vmul.f32 1.442695, %v878_v20  ;;  %v2310_v59 = vpop.eup %2309  ;;  %2319 = vpow2.f32 %v1592_v39  ;;  %vm1068_vm10 = vcmp.gt.f32.partialorder %v3667_v24, 0.0 }
 0x13f   :  { %v907_v1 = vmul.f32 1.442695, %v881_v13  ;;  %v913_v4 = vmul.f32 1.442695, %v884_v7  ;;  %v3730_v30 = vpop.eup %2311  ;;  %v2071_v42 = vadd.f32 -1.0, %v2308_v49  ;;  %v2074_v19 = vadd.f32 -1.0, %v2310_v59 }
 0x140   :  { %vm857_vm11 = vcmp.gt.f32.partialorder %v3687_v58, 0.0  ;;  %2321 = vpow2.f32 %v895_v18  ;;  %v919_v21 = vmul.f32 1.442695, %v887_v26  ;;  %v1149_v9 = vsel %vm1059_vm5, %v3571_v32, %v2068_v6  ;;  %v4517_v32 = vld [vmem:[#allocation26_spill] sm:$0xff] }
 0x141   :  { %v2314_v8 = vpop.eup %2313  ;;  %vm860_vm12 = vcmp.gt.f32.partialorder %v3691_v12, 0.0  ;;  %2323 = vpow2.f32 %v901_v48  ;;  %v925_v39 = vmul.f32 1.442695, %v890_v56  ;;  %v1155_v34 = vsel %vm1065_vm7, %v3648_v3, %v2074_v19  ;;  %v4518_v19 = vld [vmem:[#allocation29_spill] sm:$0xff] }
 0x142   :  { %v2316_v20 = vpop.eup %2315  ;;  %v2077_v13 = vadd.f32 -1.0, %v2314_v8  ;;  %vm863_vm13 = vcmp.gt.f32.partialorder %v3694_v22, 0.0  ;;  %2325 = vpow2.f32 %v907_v1  ;;  %v3742_v7 = vstv %s3714_s8 }
 0x143   :  { %v2318_v26 = vpop.eup %2317  ;;  %v2080_v49 = vadd.f32 -1.0, %v2316_v20  ;;  %v1167_v18 = vmax.f32 %v1149_v9, %v1155_v34  ;;  %vm866_vm14 = vcmp.gt.f32.partialorder %v3697_v46, 0.0  ;;  %2327 = vpow2.f32 %v913_v4 }
 0x144   :  { %v1284_v56 = vadd.f32 %v3274_v53, %v4517_v32  ;;  %v2083_v6 = vadd.f32 -1.0, %v2318_v26  ;;  %v1152_v48 = vsel %vm1062_vm6, %v3581_v11, %v2071_v42  ;;  %v1158_v3 = vsel %vm1068_vm10, %v3667_v24, %v2077_v13  ;;  %v3753_v59 = vpop.eup %2319 }
 0x145   :  { %2329 = vpow2.f32 %v919_v21  ;;  %v1170_v1 = vmax.f32 %v1152_v48, %v1158_v3  ;;  %v1287_v4 = vadd.f32 %v3625_v52, %v3332_v0  ;;  %v3759_v53 = vadd.f32 %v3742_v7, %v4518_v19 }
 0x146   :  { %2331 = vpow2.f32 %v925_v39  ;;  %v2322_v8 = vpop.eup %2321  ;;  %v1161_v11 = vsel %vm1071_vm8, %v3591_v61, %v2080_v49  ;;  %v1164_v24 = vsel %vm1074_vm9, %v3655_v28, %v2083_v6  ;;  %v3769_v42 = vadd.f32 %v3742_v7, %v3315_v23 }
 0x147   :  { %v3773_v0 = vadd.f32 %v3742_v7, %v3638_v40  ;;  %v2324_v52 = vpop.eup %2323  ;;  %v1173_v21 = vmax.f32 %v1167_v18, %v1161_v11  ;;  %v1176_v9 = vmax.f32 %v1170_v1, %v1164_v24  ;;  %v2047_v39 = vadd.f32 -1.0, %v2322_v8 }
 0x148   :  { %v3777_v20 = vadd.f32 %v3742_v7, %v3717_v17  ;;  %v2326_v61 = vpop.eup %2325  ;;  %vm869_vm15 = vcmp.gt.f32.partialorder %v3700_v37, 0.0  ;;  %vm872_vm0 = vcmp.gt.f32.partialorder %v3703_v57, 0.0  ;;  %v2050_v28 = vadd.f32 -1.0, %v2324_v52 }
 0x149   :  { %v3782_v23 = vadd.f32 %v3742_v7, %v1284_v56  ;;  %v2328_v13 = vpop.eup %2327  ;;  %v1179_v40 = vmax.f32 %v1173_v21, %v1176_v9  ;;  %v2053_v34 = vadd.f32 -1.0, %v2326_v61  ;;  %v947_v26 = vsel %vm857_vm11, %v3687_v58, %v2047_v39 }
 0x14a   :  { %v3788_v49 = vadd.f32 %v3742_v7, %v1287_v4  ;;  %v2056_v18 = vadd.f32 -1.0, %v2328_v13  ;;  %v950_v32 = vsel %vm860_vm12, %v3691_v12, %v2050_v28  ;;  %v1327_v6 = vmin.f32 %v3759_v53, 0.0 }
 0x14b   :  { %v2330_v17 = vpop.eup %2329  ;;  %v1330_v56 = vmin.f32 %v3769_v42, 0.0  ;;  %1199 = vmatpush.msrb.mxu1 %v1179_v40  ;;  %v953_v58 = vsel %vm863_vm13, %v3694_v22, %v2053_v34  ;;  %v1333_v1 = vmin.f32 %v3773_v0, 0.0  ;;  %v1336_v4 = vmin.f32 %v3777_v20, 0.0 }
 0x14c   :  { %v2332_v48 = vpop.eup %2331  ;;  %v2059_v3 = vadd.f32 -1.0, %v2330_v17  ;;  %v956_v12 = vsel %vm866_vm14, %v3697_v46, %v2056_v18  ;;  %v965_v8 = vmax.f32 %v947_v26, %v953_v58  ;;  %v1339_v11 = vmin.f32 %v3782_v23, 0.0  ;;  %v4519_v26 = vld [vmem:[#allocation34_spill] sm:$0xff] }
 0x14d   :  { %v2062_v19 = vadd.f32 -1.0, %v2332_v48  ;;  %v968_v52 = vmax.f32 %v950_v32, %v956_v12  ;;  %v1342_v21 = vmin.f32 %v3788_v49, 0.0  ;;  %v1347_v22 = vmul.f32 1.442695, %v1327_v6  ;;  %v4520_v32 = vld [vmem:[#allocation31_spill] sm:$0xff] }
 0x14e   :  { %v959_v24 = vsel %vm869_vm15, %v3700_v37, %v2059_v3  ;;  %v1353_v61 = vmul.f32 1.442695, %v1330_v56  ;;  %v1359_v28 = vmul.f32 1.442695, %v1333_v1  ;;  %v1365_v46 = vmul.f32 1.442695, %v1336_v4 }
 0x14f   :  { %v962_v9 = vsel %vm872_vm0, %v3703_v57, %v2062_v19  ;;  %v971_v39 = vmax.f32 %v965_v8, %v959_v24  ;;  %2333 = vpow2.f32 %v1347_v22  ;;  %v1371_v40 = vmul.f32 1.442695, %v1339_v11 }
 0x150   :  { %v974_v13 = vmax.f32 %v968_v52, %v962_v9  ;;  %2335 = vpow2.f32 %v1353_v61  ;;  %v1377_v34 = vmul.f32 1.442695, %v1342_v21  ;;  %v1033_v37 = vadd.f32 %v3341_v33, %v4519_v26  ;;  %v4521_v52 = vld [vmem:[#allocation33_spill] sm:$0xff]  ;;  %v4522_v21 = vld [vmem:[#allocation50_spill] sm:$0xff] }
 0x151   :  { %v1036_v17 = vadd.f32 %v3524_v41, %v3214_v16  ;;  %2337 = vpow2.f32 %v1359_v28  ;;  %v3817_v57 = vadd.f32 %v3553_v35, %v3587_v44  ;;  %v3821_v6 = vadd.f32 %v3553_v35, %v4520_v32 }
 0x152   :  { %v977_v18 = vmax.f32 %v971_v39, %v974_v13  ;;  %2339 = vpow2.f32 %v1365_v46  ;;  %v3825_v56 = vadd.f32 %v3553_v35, %v3541_v27  ;;  %v3829_v33 = vadd.f32 %v3553_v35, %v3709_v43 }
 0x153   :  { %v3832_v16 = vadd.f32 %v3553_v35, %v1033_v37  ;;  %vm1309_vm1 = vcmp.gt.f32.partialorder %v3759_v53, 0.0  ;;  %vm1312_vm2 = vcmp.gt.f32.partialorder %v3769_v42, 0.0  ;;  %2341 = vpow2.f32 %v1371_v40 }
 0x154   :  { %1222 = vmatpush.msrb.mxu0 %v977_v18  ;;  %v3837_v41 = vadd.f32 %v3553_v35, %v1036_v17  ;;  %vm1315_vm3 = vcmp.gt.f32.partialorder %v3773_v0, 0.0  ;;  %vm1318_vm4 = vcmp.gt.f32.partialorder %v3777_v20, 0.0  ;;  %vm1321_vm5 = vcmp.gt.f32.partialorder %v3782_v23, 0.0 }
 0x155   :  { %2343 = vpow2.f32 %v1377_v34  ;;  %v2334_v27 = vpop.eup %2333  ;;  %vm1324_vm6 = vcmp.gt.f32.partialorder %v3788_v49, 0.0  ;;  %v1076_v44 = vmin.f32 %v3817_v57, 0.0  ;;  %v1079_v43 = vmin.f32 %v3821_v6, 0.0 }
 0x156   :  { %v1082_v48 = vmin.f32 %v3825_v56, 0.0  ;;  %v2336_v3 = vpop.eup %2335  ;;  %v2092_v58 = vadd.f32 -1.0, %v2334_v27  ;;  %v1085_v1 = vmin.f32 %v3829_v33, 0.0  ;;  %v1088_v4 = vmin.f32 %v3832_v16, 0.0 }
 0x157   :  { %v1091_v19 = vmin.f32 %v3837_v41, 0.0  ;;  %v2338_v12 = vpop.eup %2337  ;;  %v2095_v8 = vadd.f32 -1.0, %v2336_v3  ;;  %v1095_v11 = vmul.f32 1.442695, %v1076_v44  ;;  %v1101_v24 = vmul.f32 1.442695, %v1079_v43 }
 0x158   :  { %v831_v22 = vadd.f32 %v4522_v21, %v4521_v52  ;;  %v2340_v9 = vpop.eup %2339  ;;  %v2098_v39 = vadd.f32 -1.0, %v2338_v12  ;;  %v1399_v61 = vsel %vm1309_vm1, %v3759_v53, %v2092_v58  ;;  %v1107_v28 = vmul.f32 1.442695, %v1082_v48  ;;  %v4523_v48 = vld [vmem:[#allocation41_spill] sm:$0xff] }
 0x159   :  { %v1113_v13 = vmul.f32 1.442695, %v1085_v1  ;;  %v2342_v46 = vpop.eup %2341  ;;  %v2101_v40 = vadd.f32 -1.0, %v2340_v9  ;;  %v1402_v34 = vsel %vm1312_vm2, %v3769_v42, %v2095_v8  ;;  %2345 = vpow2.f32 %v1095_v11 }
 0x15a   :  { %v1119_v26 = vmul.f32 1.442695, %v1088_v4  ;;  %v2104_v17 = vadd.f32 -1.0, %v2342_v46  ;;  %v1405_v18 = vsel %vm1315_vm3, %v3773_v0, %v2098_v39  ;;  %2347 = vpow2.f32 %v1101_v24 }
 0x15b   :  { %v2344_v37 = vpop.eup %2343  ;;  %v1125_v32 = vmul.f32 1.442695, %v1091_v19  ;;  %v1408_v53 = vsel %vm1318_vm4, %v3777_v20, %v2101_v40  ;;  %v1417_v44 = vmax.f32 %v1399_v61, %v1405_v18  ;;  %2349 = vpow2.f32 %v1107_v28 }
 0x15c   :  { %v2107_v27 = vadd.f32 -1.0, %v2344_v37  ;;  %v1411_v42 = vsel %vm1321_vm5, %v3782_v23, %v2104_v17  ;;  %v1420_v43 = vmax.f32 %v1402_v34, %v1408_v53  ;;  %2351 = vpow2.f32 %v1113_v13  ;;  %v4524_v23 = vld [vmem:[#allocation30_spill] sm:$0xff] }
 0x15d   :  { %v834_v3 = vadd.f32 %v3521_v45, %v4523_v48  ;;  %v1423_v58 = vmax.f32 %v1417_v44, %v1411_v42  ;;  %vm1058_vm7 = vcmp.gt.f32.partialorder %v3817_v57, 0.0  ;;  %2353 = vpow2.f32 %v1119_v26 }
 0x15e   :  { %v1414_v0 = vsel %vm1324_vm6, %v3788_v49, %v2107_v27  ;;  %2355 = vpow2.f32 %v1125_v32  ;;  %v3874_v1 = vadd.f32 %v3560_v62, %v3584_v5  ;;  %v3878_v4 = vadd.f32 %v3560_v62, %v4524_v23  ;;  %v4526_v23 = vld [vmem:[#allocation51_spill] sm:$0xff] }
 0x15f   :  { %v1426_v20 = vmax.f32 %v1420_v43, %v1414_v0  ;;  %v2346_v19 = vpop.eup %2345  ;;  %vm1061_vm8 = vcmp.gt.f32.partialorder %v3821_v6, 0.0  ;;  %vm1064_vm9 = vcmp.gt.f32.partialorder %v3825_v56, 0.0  ;;  %v3884_v45 = vadd.f32 %v3560_v62, %v3538_v2 }
 0x160   :  { %v3888_v49 = vadd.f32 %v3560_v62, %v3706_v60  ;;  %v2348_v12 = vpop.eup %2347  ;;  %v2067_v8 = vadd.f32 -1.0, %v2346_v19  ;;  %v3891_v11 = vadd.f32 %v3560_v62, %v831_v22  ;;  %v3894_v24 = vadd.f32 %v3560_v62, %v834_v3 }
 0x161   :  { %v1429_v5 = vmax.f32 %v1423_v58, %v1426_v20  ;;  %v2350_v52 = vpop.eup %2349  ;;  %vm1067_vm10 = vcmp.gt.f32.partialorder %v3829_v33, 0.0  ;;  %vm1070_vm11 = vcmp.gt.f32.partialorder %v3832_v16, 0.0  ;;  %vm1073_vm12 = vcmp.gt.f32.partialorder %v3837_v41, 0.0  ;;  %v4525_v20 = vld [vmem:[#allocation35_spill] sm:$0xff] }
 0x162   :  { %v2070_v2 = vadd.f32 -1.0, %v2348_v12  ;;  %v2352_v21 = vpop.eup %2351  ;;  %v2073_v60 = vadd.f32 -1.0, %v2350_v52  ;;  %v1148_v9 = vsel %vm1058_vm7, %v3817_v57, %v2067_v8  ;;  %v874_v22 = vmin.f32 %v3874_v1, 0.0  ;;  %v4527_v12 = vld [vmem:[#allocation42_spill] sm:$0xff] }
 0x163   :  { %1448 = vmatpush.msrb.mxu3 %v1429_v5  ;;  %v877_v39 = vmin.f32 %v3878_v4, 0.0  ;;  %v2354_v61 = vpop.eup %2353  ;;  %v2076_v28 = vadd.f32 -1.0, %v2352_v21  ;;  %v880_v46 = vmin.f32 %v3884_v45, 0.0  ;;  %v883_v40 = vmin.f32 %v3888_v49, 0.0 }
 0x164   :  { %v1151_v13 = vsel %vm1061_vm8, %v3821_v6, %v2070_v2  ;;  %v2356_v34 = vpop.eup %2355  ;;  %v2079_v26 = vadd.f32 -1.0, %v2354_v61  ;;  %v1154_v57 = vsel %vm1064_vm9, %v3825_v56, %v2073_v60  ;;  %v886_v37 = vmin.f32 %v3891_v11, 0.0 }
 0x165   :  { %v889_v17 = vmin.f32 %v3894_v24, 0.0  ;;  %v2082_v18 = vadd.f32 -1.0, %v2356_v34  ;;  %v1157_v32 = vsel %vm1067_vm10, %v3829_v33, %v2076_v28  ;;  %v1166_v6 = vmax.f32 %v1148_v9, %v1154_v57 }
 0x166   :  { %v893_v27 = vmul.f32 1.442695, %v874_v22  ;;  %v1160_v53 = vsel %vm1070_vm11, %v3832_v16, %v2079_v26  ;;  %v1169_v44 = vmax.f32 %v1151_v13, %v1157_v32  ;;  %v899_v42 = vmul.f32 1.442695, %v877_v39 }
 0x167   :  { %v905_v43 = vmul.f32 1.442695, %v880_v46  ;;  %v1163_v56 = vsel %vm1073_vm12, %v3837_v41, %v2082_v18  ;;  %v1172_v48 = vmax.f32 %v1166_v6, %v1160_v53  ;;  %v911_v3 = vmul.f32 1.442695, %v883_v40  ;;  %v4528_v41 = vld [vmem:[#allocation32_spill] sm:$0xff] }
 0x168   :  { %2357 = vpow2.f32 %v893_v27  ;;  %v1175_v0 = vmax.f32 %v1169_v44, %v1163_v56  ;;  %v917_v58 = vmul.f32 1.442695, %v886_v37  ;;  %v923_v33 = vmul.f32 1.442695, %v889_v17 }
 0x169   :  { %2359 = vpow2.f32 %v899_v42  ;;  %v1283_v19 = vadd.f32 %v4526_v23, %v4525_v20  ;;  %v1286_v16 = vadd.f32 %v3528_v38, %v4527_v12  ;;  %v3929_v5 = vadd.f32 %v3742_v7, %v3594_v10  ;;  %v4529_v20 = vld [vmem:[#allocation44_spill] sm:$0xff]  ;;  %v4530_v12 = vld [vmem:[#allocation37_spill] sm:$0xff] }
 0x16a   :  { %2361 = vpow2.f32 %v905_v43  ;;  %v1178_v8 = vmax.f32 %v1172_v48, %v1175_v0  ;;  %v3933_v52 = vadd.f32 %v3742_v7, %v4528_v41  ;;  %v3937_v2 = vadd.f32 %v3742_v7, %v3544_v36 }
 0x16b   :  { %2363 = vpow2.f32 %v911_v3  ;;  %v3941_v21 = vadd.f32 %v3742_v7, %v3712_v25  ;;  %v3944_v38 = vadd.f32 %v3742_v7, %v1283_v19  ;;  %v3947_v10 = vadd.f32 %v3742_v7, %v1286_v16 }
 0x16c   :  { %2365 = vpow2.f32 %v917_v58  ;;  %1200 = vmatpush.msrb.mxu1 %v1178_v8  ;;  %vm856_vm13 = vcmp.gt.f32.partialorder %v3874_v1, 0.0  ;;  %vm859_vm14 = vcmp.gt.f32.partialorder %v3878_v4, 0.0  ;;  %vm862_vm15 = vcmp.gt.f32.partialorder %v3884_v45, 0.0 }
 0x16d   :  { %2367 = vpow2.f32 %v923_v33  ;;  %vm865_vm0 = vcmp.gt.f32.partialorder %v3888_v49, 0.0  ;;  %vm868_vm1 = vcmp.gt.f32.partialorder %v3891_v11, 0.0  ;;  %vm871_vm2 = vcmp.gt.f32.partialorder %v3894_v24, 0.0 }
 0x16e   :  { %v2358_v36 = vpop.eup %2357  ;;  %v1326_v25 = vmin.f32 %v3929_v5, 0.0  ;;  %v1329_v22 = vmin.f32 %v3933_v52, 0.0  ;;  %v1332_v39 = vmin.f32 %v3937_v2, 0.0  ;;  %v1335_v61 = vmin.f32 %v3941_v21, 0.0 }
 0x16f   :  { %v2360_v60 = vpop.eup %2359  ;;  %v2046_v9 = vadd.f32 -1.0, %v2358_v36  ;;  %v1338_v46 = vmin.f32 %v3944_v38, 0.0  ;;  %v1341_v40 = vmin.f32 %v3947_v10, 0.0  ;;  %v1032_v23 = vadd.f32 %v3439_v14, %v4529_v20  ;;  %v4531_v36 = vld [vmem:[#allocation53_spill] sm:$0xff]  ;;  %v4536_v20 = vld [vmem:[#allocation58_spill] sm:$0xff] }
 0x170   :  { %v2362_v28 = vpop.eup %2361  ;;  %v2049_v13 = vadd.f32 -1.0, %v2360_v60  ;;  %v1345_v34 = vmul.f32 1.442695, %v1326_v25  ;;  %v1351_v17 = vmul.f32 1.442695, %v1329_v22  ;;  %vm1308_vm3 = vcmp.gt.f32.partialorder %v3929_v5, 0.0 }
 0x171   :  { %v2364_v26 = vpop.eup %2363  ;;  %v2052_v57 = vadd.f32 -1.0, %v2362_v28  ;;  %v946_v37 = vsel %vm856_vm13, %v3874_v1, %v2046_v9  ;;  %v1357_v18 = vmul.f32 1.442695, %v1332_v39  ;;  %v1363_v53 = vmul.f32 1.442695, %v1335_v61 }
 0x172   :  { %v2366_v32 = vpop.eup %2365  ;;  %v2055_v6 = vadd.f32 -1.0, %v2364_v26  ;;  %v949_v27 = vsel %vm859_vm14, %v3878_v4, %v2049_v13  ;;  %2369 = vpow2.f32 %v1345_v34  ;;  %v1369_v56 = vmul.f32 1.442695, %v1338_v46 }
 0x173   :  { %v2368_v44 = vpop.eup %2367  ;;  %v2058_v42 = vadd.f32 -1.0, %v2366_v32  ;;  %v952_v43 = vsel %vm862_vm15, %v3884_v45, %v2052_v57  ;;  %2371 = vpow2.f32 %v1351_v17  ;;  %v1375_v58 = vmul.f32 1.442695, %v1341_v40 }
 0x174   :  { %v2061_v48 = vadd.f32 -1.0, %v2368_v44  ;;  %v955_v1 = vsel %vm865_vm0, %v3888_v49, %v2055_v6  ;;  %v964_v3 = vmax.f32 %v946_v37, %v952_v43  ;;  %2373 = vpow2.f32 %v1357_v18 }
 0x175   :  { %v958_v4 = vsel %vm868_vm1, %v3891_v11, %v2058_v42  ;;  %v967_v0 = vmax.f32 %v949_v27, %v955_v1  ;;  %2375 = vpow2.f32 %v1363_v53  ;;  %v1035_v49 = vadd.f32 %v3486_v47, %v3458_v55 }
 0x176   :  { %v961_v45 = vsel %vm871_vm2, %v3894_v24, %v2061_v48  ;;  %v970_v33 = vmax.f32 %v964_v3, %v958_v4  ;;  %2377 = vpow2.f32 %v1369_v56  ;;  %vm1311_vm4 = vcmp.gt.f32.partialorder %v3933_v52, 0.0  ;;  %v4532_v3 = vld [vmem:[#allocation43_spill] sm:$0xff]  ;;  %v4533_v4 = vld [vmem:[#allocation60_spill] sm:$0xff] }
 0x177   :  { %v973_v19 = vmax.f32 %v967_v0, %v961_v45  ;;  %2379 = vpow2.f32 %v1375_v58  ;;  %vm1314_vm5 = vcmp.gt.f32.partialorder %v3937_v2, 0.0  ;;  %v3988_v24 = vadd.f32 %v3553_v35, %v3430_v15  ;;  %v4534_v0 = vld [vmem:[#allocation64_spill] sm:$0xff]  ;;  %v4535_v58 = vld [vmem:[#allocation66_spill] sm:$0xff] }
 0x178   :  { %v2370_v11 = vpop.eup %2369  ;;  %v3992_v16 = vadd.f32 %v3553_v35, %v4530_v12  ;;  %v3996_v25 = vadd.f32 %v3553_v35, %v4531_v36  ;;  %v4000_v55 = vadd.f32 %v3553_v35, %v3650_v63  ;;  %vm1317_vm6 = vcmp.gt.f32.partialorder %v3941_v21, 0.0 }
 0x179   :  { %v2372_v14 = vpop.eup %2371  ;;  %v976_v8 = vmax.f32 %v970_v33, %v973_v19  ;;  %v2091_v41 = vadd.f32 -1.0, %v2370_v11  ;;  %vm1320_vm7 = vcmp.gt.f32.partialorder %v3944_v38, 0.0  ;;  %v4005_v60 = vadd.f32 %v3553_v35, %v1032_v23  ;;  %v4537_v23 = vld [vmem:[#allocation36_spill] sm:$0xff] }
 0x17a   :  { %v2374_v47 = vpop.eup %2373  ;;  %v2094_v15 = vadd.f32 -1.0, %v2372_v14  ;;  %vm1323_vm8 = vcmp.gt.f32.partialorder %v3947_v10, 0.0  ;;  %v4012_v63 = vadd.f32 %v3553_v35, %v1035_v49  ;;  %v1075_v46 = vmin.f32 %v3988_v24, 0.0  ;;  %v4538_v49 = vld [vmem:[#allocation52_spill] sm:$0xff] }
 0x17b   :  { %v2376_v9 = vpop.eup %2375  ;;  %1223 = vmatpush.msrb.mxu0 %v976_v8  ;;  %v2097_v22 = vadd.f32 -1.0, %v2374_v47  ;;  %v1398_v39 = vsel %vm1308_vm3, %v3929_v5, %v2091_v41  ;;  %v1078_v40 = vmin.f32 %v3992_v16, 0.0  ;;  %v1081_v5 = vmin.f32 %v3996_v25, 0.0 }
 0x17c   :  { %v2378_v61 = vpop.eup %2377  ;;  %v2100_v28 = vadd.f32 -1.0, %v2376_v9  ;;  %v1401_v13 = vsel %vm1311_vm4, %v3933_v52, %v2094_v15  ;;  %v1084_v35 = vmin.f32 %v4000_v55, 0.0  ;;  %v1087_v18 = vmin.f32 %v4005_v60, 0.0 }
 0x17d   :  { %v2380_v34 = vpop.eup %2379  ;;  %v2103_v26 = vadd.f32 -1.0, %v2378_v61  ;;  %v1404_v57 = vsel %vm1314_vm5, %v3937_v2, %v2097_v22  ;;  %v1090_v27 = vmin.f32 %v4012_v63, 0.0  ;;  %v1093_v2 = vmul.f32 1.442695, %v1075_v46 }
 0x17e   :  { %v2106_v37 = vadd.f32 -1.0, %v2380_v34  ;;  %v1407_v17 = vsel %vm1317_vm6, %v3941_v21, %v2100_v28  ;;  %v1416_v52 = vmax.f32 %v1398_v39, %v1404_v57  ;;  %v1099_v42 = vmul.f32 1.442695, %v1078_v40  ;;  %v4539_v40 = vld [vmem:[#allocation45_spill] sm:$0xff]  ;;  %v4540_v34 = vld [vmem:[#allocation63_spill] sm:$0xff] }
 0x17f   :  { %v1410_v32 = vsel %vm1320_vm7, %v3944_v38, %v2103_v26  ;;  %v1419_v6 = vmax.f32 %v1401_v13, %v1407_v17  ;;  %v1105_v43 = vmul.f32 1.442695, %v1081_v5  ;;  %2381 = vpow2.f32 %v1093_v2 }
 0x180   :  { %v1413_v53 = vsel %vm1323_vm8, %v3947_v10, %v2106_v37  ;;  %v1422_v44 = vmax.f32 %v1416_v52, %v1410_v32  ;;  %v1111_v21 = vmul.f32 1.442695, %v1084_v35  ;;  %v1117_v48 = vmul.f32 1.442695, %v1087_v18 }
 0x181   :  { %v1425_v56 = vmax.f32 %v1419_v6, %v1413_v53  ;;  %2383 = vpow2.f32 %v1099_v42  ;;  %v1123_v1 = vmul.f32 1.442695, %v1090_v27  ;;  %v830_v38 = vadd.f32 %v4533_v4, %v4532_v3  ;;  %v4543_v4 = vld [vmem:[#allocation59_spill] sm:$0xff] }
 0x182   :  { %v833_v45 = vadd.f32 %v4535_v58, %v4534_v0  ;;  %2385 = vpow2.f32 %v1105_v43  ;;  %v4041_v10 = vadd.f32 %v3560_v62, %v4536_v20  ;;  %v4045_v19 = vadd.f32 %v3560_v62, %v4537_v23 }
 0x183   :  { %v1428_v33 = vmax.f32 %v1422_v44, %v1425_v56  ;;  %2387 = vpow2.f32 %v1111_v21  ;;  %v4049_v11 = vadd.f32 %v3560_v62, %v4538_v49  ;;  %v4053_v12 = vadd.f32 %v3560_v62, %v3641_v51  ;;  %v4541_v21 = vld [vmem:[#allocation10_spill] sm:$0xff] }
 0x184   :  { %v4056_v14 = vadd.f32 %v3560_v62, %v830_v38  ;;  %vm1057_vm9 = vcmp.gt.f32.partialorder %v3988_v24, 0.0  ;;  %vm1060_vm10 = vcmp.gt.f32.partialorder %v3992_v16, 0.0  ;;  %2389 = vpow2.f32 %v1117_v48  ;;  %v4542_v48 = vld [vmem:[#allocation67_spill] sm:$0xff] }
 0x185   :  { %1449 = vmatpush.msrb.mxu3 %v1428_v33  ;;  %v4061_v8 = vadd.f32 %v3560_v62, %v833_v45  ;;  %vm1063_vm11 = vcmp.gt.f32.partialorder %v3996_v25, 0.0  ;;  %vm1066_vm12 = vcmp.gt.f32.partialorder %v4000_v55, 0.0  ;;  %vm1069_vm13 = vcmp.gt.f32.partialorder %v4005_v60, 0.0  ;;  %v2382_v51 = vpop.eup %2381 }
 0x186   :  { %2391 = vpow2.f32 %v1123_v1  ;;  %vm1072_vm14 = vcmp.gt.f32.partialorder %v4012_v63, 0.0  ;;  %v873_v41 = vmin.f32 %v4041_v10, 0.0  ;;  %v876_v36 = vmin.f32 %v4045_v19, 0.0 }
 0x187   :  { %v879_v47 = vmin.f32 %v4049_v11, 0.0  ;;  %v2384_v15 = vpop.eup %2383  ;;  %v2066_v9 = vadd.f32 -1.0, %v2382_v51  ;;  %v882_v62 = vmin.f32 %v4053_v12, 0.0  ;;  %v885_v22 = vmin.f32 %v4056_v14, 0.0 }
 0x188   :  { %v888_v39 = vmin.f32 %v4061_v8, 0.0  ;;  %v2386_v61 = vpop.eup %2385  ;;  %v2069_v28 = vadd.f32 -1.0, %v2384_v15  ;;  %v891_v13 = vmul.f32 1.442695, %v873_v41  ;;  %v897_v46 = vmul.f32 1.442695, %v876_v36 }
 0x189   :  { %v1282_v26 = vadd.f32 %v4540_v34, %v4539_v40  ;;  %v2388_v57 = vpop.eup %2387  ;;  %v2072_v5 = vadd.f32 -1.0, %v2386_v61  ;;  %v1147_v35 = vsel %vm1057_vm9, %v3988_v24, %v2066_v9  ;;  %v903_v37 = vmul.f32 1.442695, %v879_v47 }
 0x18a   :  { %v909_v17 = vmul.f32 1.442695, %v882_v62  ;;  %v2390_v52 = vpop.eup %2389  ;;  %v2075_v18 = vadd.f32 -1.0, %v2388_v57  ;;  %v1150_v32 = vsel %vm1060_vm10, %v3992_v16, %v2069_v28  ;;  %2393 = vpow2.f32 %v891_v13 }
 0x18b   :  { %v915_v6 = vmul.f32 1.442695, %v885_v22  ;;  %v2078_v2 = vadd.f32 -1.0, %v2390_v52  ;;  %v1153_v53 = vsel %vm1063_vm11, %v3996_v25, %v2072_v5  ;;  %2395 = vpow2.f32 %v897_v46 }
 0x18c   :  { %v2392_v27 = vpop.eup %2391  ;;  %v921_v44 = vmul.f32 1.442695, %v888_v39  ;;  %v1156_v24 = vsel %vm1066_vm12, %v4000_v55, %v2075_v18  ;;  %v1165_v43 = vmax.f32 %v1147_v35, %v1153_v53  ;;  %2397 = vpow2.f32 %v903_v37 }
 0x18d   :  { %v2081_v42 = vadd.f32 -1.0, %v2392_v27  ;;  %v1159_v16 = vsel %vm1069_vm13, %v4005_v60, %v2078_v2  ;;  %v1168_v56 = vmax.f32 %v1150_v32, %v1156_v24  ;;  %2399 = vpow2.f32 %v909_v17  ;;  %v4544_v60 = vld [vmem:[#allocation38_spill] sm:$0xff] }
 0x18e   :  { %v1285_v1 = vadd.f32 %v4542_v48, %v4541_v21  ;;  %v1171_v3 = vmax.f32 %v1165_v43, %v1159_v16  ;;  %vm855_vm15 = vcmp.gt.f32.partialorder %v4041_v10, 0.0  ;;  %2401 = vpow2.f32 %v915_v6  ;;  %v4550_v16 = vld [vmem:[#allocation8_spill] sm:$0xff]  ;;  %v4552_v48 = vld [vmem:[#allocation39_spill] sm:$0xff] }
 0x18f   :  { %v1162_v25 = vsel %vm1072_vm14, %v4012_v63, %v2081_v42  ;;  %2403 = vpow2.f32 %v921_v44  ;;  %v4098_v38 = vadd.f32 %v3742_v7, %v4543_v4  ;;  %v4102_v0 = vadd.f32 %v3742_v7, %v4544_v60  ;;  %v4545_v63 = vld [vmem:[#allocation54_spill] sm:$0xff]  ;;  %v4546_v44 = vld [vmem:[#allocation21_spill] sm:$0xff]  ;;  %v4547_v42 = vld [vmem:[#allocation48_spill] sm:$0xff] }
 0x190   :  { %v1174_v55 = vmax.f32 %v1168_v56, %v1162_v25  ;;  %v2394_v58 = vpop.eup %2393  ;;  %vm858_vm0 = vcmp.gt.f32.partialorder %v4045_v19, 0.0  ;;  %vm861_vm1 = vcmp.gt.f32.partialorder %v4049_v11, 0.0  ;;  %v4108_v45 = vadd.f32 %v3742_v7, %v4545_v63  ;;  %v4553_v25 = vld [vmem:[#allocation56_spill] sm:$0xff]  ;;  %v4554_v4 = vld [vmem:[#allocation25_spill] sm:$0xff] }
 0x191   :  { %v4112_v33 = vadd.f32 %v3742_v7, %v3657_v29  ;;  %v2396_v20 = vpop.eup %2395  ;;  %v2045_v49 = vadd.f32 -1.0, %v2394_v58  ;;  %v4115_v51 = vadd.f32 %v3742_v7, %v1282_v26  ;;  %v4118_v41 = vadd.f32 %v3742_v7, %v1285_v1  ;;  %v978_v63 = vld [vmem:[%s4408_s3] sm:$0xf] }
 0x192   :  { %v1177_v23 = vmax.f32 %v1171_v3, %v1174_v55  ;;  %v2398_v36 = vpop.eup %2397  ;;  %vm864_vm2 = vcmp.gt.f32.partialorder %v4053_v12, 0.0  ;;  %vm867_vm3 = vcmp.gt.f32.partialorder %v4056_v14, 0.0  ;;  %vm870_vm4 = vcmp.gt.f32.partialorder %v4061_v8, 0.0 }
 0x193   :  { %v2048_v47 = vadd.f32 -1.0, %v2396_v20  ;;  %v2400_v15 = vpop.eup %2399  ;;  %v2051_v29 = vadd.f32 -1.0, %v2398_v36  ;;  %v945_v9 = vsel %vm855_vm15, %v4041_v10, %v2045_v49  ;;  %v1325_v62 = vmin.f32 %v4098_v38, 0.0 }
 0x194   :  { %1201 = vmatpush.msrb.mxu1 %v1177_v23  ;;  %v1328_v7 = vmin.f32 %v4102_v0, 0.0  ;;  %v2402_v22 = vpop.eup %2401  ;;  %v2054_v39 = vadd.f32 -1.0, %v2400_v15  ;;  %v1331_v28 = vmin.f32 %v4108_v45, 0.0  ;;  %v1334_v13 = vmin.f32 %v4112_v33, 0.0 }
 0x195   :  { %v948_v61 = vsel %vm858_vm0, %v4045_v19, %v2048_v47  ;;  %v2404_v46 = vpop.eup %2403  ;;  %v2057_v40 = vadd.f32 -1.0, %v2402_v22  ;;  %v951_v10 = vsel %vm861_vm1, %v4049_v11, %v2051_v29  ;;  %v1337_v34 = vmin.f32 %v4115_v51, 0.0 }
 0x196   :  { %v1340_v26 = vmin.f32 %v4118_v41, 0.0  ;;  %v2060_v57 = vadd.f32 -1.0, %v2404_v46  ;;  %v954_v5 = vsel %vm864_vm2, %v4053_v12, %v2054_v39  ;;  %v963_v19 = vmax.f32 %v945_v9, %v951_v10  ;;  %v2084_v12 = vld [vmem:[%s4408_s3 + $0x4] sm:$0xf]  ;;  %v4555_v46 = vld [vmem:[#allocation49_spill] sm:$0xff] }
 0x197   :  { %v1343_v35 = vmul.f32 1.442695, %v1325_v62  ;;  %v957_v37 = vsel %vm867_vm3, %v4056_v14, %v2057_v40  ;;  %v966_v17 = vmax.f32 %v948_v61, %v954_v5  ;;  %v1349_v52 = vmul.f32 1.442695, %v1328_v7 }
 0x198   :  { %v1355_v18 = vmul.f32 1.442695, %v1331_v28  ;;  %v960_v11 = vsel %vm870_vm4, %v4061_v8, %v2060_v57  ;;  %v969_v32 = vmax.f32 %v963_v19, %v957_v37  ;;  %v1361_v6 = vmul.f32 1.442695, %v1334_v13  ;;  %v4556_v37 = vld [vmem:[#allocation65_spill] sm:$0xff] }
 0x199   :  { %2405 = vpow2.f32 %v1343_v35  ;;  %v972_v27 = vmax.f32 %v966_v17, %v960_v11  ;;  %v1367_v2 = vmul.f32 1.442695, %v1337_v34  ;;  %v1373_v53 = vmul.f32 1.442695, %v1340_v26  ;;  %v4557_v11 = vld [vmem:[#allocation18_spill] sm:$0xff] }
 0x19a   :  { %2407 = vpow2.f32 %v1349_v52  ;;  %v4152_v14 = vadd.f32 %v2956_v50, %v3644_v54  ;;  %vm1307_vm5 = vcmp.gt.f32.partialorder %v4098_v38, 0.0  ;;  %vm1182_vm6 = vcmask 195584   ;;  %v4548_v54 = vld [vmem:[#allocation47_spill] sm:$0xff] }
 0x19b   :  { %2409 = vpow2.f32 %v1355_v18  ;;  %v975_v8 = vmax.f32 %v969_v32, %v972_v27  ;;  %vm1310_vm7 = vcmp.gt.f32.partialorder %v4102_v0, 0.0  ;;  %vm1313_vm8 = vcmp.gt.f32.partialorder %v4108_v45, 0.0  ;;  %2085 = vmatmul.msk.f32.vlgmr.msrb.gmra.mxu1 %vm1182_vm6, %v2084_v12  ;;  %v4559_v27 = vld [vmem:[#allocation9_spill] sm:$0xff] }
 0x19c   :  { %vm1316_vm9 = vcmp.gt.f32.partialorder %v4112_v33, 0.0  ;;  %2411 = vpow2.f32 %v1361_v6  ;;  %vm1536_vm10 = vcmp.gt.f32.partialorder %v4546_v44, 0.0  ;;  %vm1539_vm11 = vcmp.gt.f32.partialorder %v4547_v42, 0.0 }
 0x19d   :  { %2413 = vpow2.f32 %v1367_v2  ;;  %v4549_v24 = vmin.f32 %v4548_v54, 0.0  ;;  %1224 = vmatpush.msrb.mxu0 %v975_v8  ;;  %v4551_v56 = vmin.f32 %v4550_v16, 0.0  ;;  %v2115_v1 = vadd.f32 -1.0, %v4552_v48 }
 0x19e   :  { %2415 = vpow2.f32 %v1373_v53  ;;  %v2118_v3 = vadd.f32 -1.0, %v4553_v25  ;;  %vm1542_vm12 = vcmp.gt.f32.partialorder %v4554_v4, 0.0  ;;  %v2121_v60 = vadd.f32 -1.0, %v3730_v30  ;;  %2086 = vmatmul.msk.f32.vlgmr.msrb.gmra.mxu0 %vm1182_vm6, %v978_v63  ;;  %v4562_v63 = vld [vmem:[#allocation61_spill] sm:$0xff] }
 0x19f   :  { %v1598_v43 = vmul.f32 1.442695, %v4549_v24  ;;  %v1604_v21 = vmul.f32 1.442695, %v4551_v56  ;;  %v2406_v55 = vpop.eup %2405  ;;  %v2124_v58 = vadd.f32 -1.0, %v3753_v59  ;;  %vm1545_vm13 = vcmp.gt.f32.partialorder %v3674_v31, 0.0 }
 0x1a0   :  { %v2408_v20 = vpop.eup %2407  ;;  %v2090_v23 = vadd.f32 -1.0, %v2406_v55  ;;  %v1626_v49 = vsel %vm1536_vm10, %v4546_v44, %v2115_v1  ;;  %v1629_v30 = vsel %vm1539_vm11, %v4547_v42, %v2118_v3  ;;  %v1632_v59 = vsel %vm1542_vm12, %v4554_v4, %v2121_v60  ;;  %v2108_v24 = vld [vmem:[%s4408_s3 + $0x8] sm:$0xf]  ;;  %v4561_v4 = vld [vmem:[#allocation55_spill] sm:$0xff] }
 0x1a1   :  { %2417 = vpow2.f32 %v1598_v43  ;;  %v2410_v36 = vpop.eup %2409  ;;  %v2093_v47 = vadd.f32 -1.0, %v2408_v20  ;;  %v1635_v15 = vsel %vm1545_vm13, %v3674_v31, %v2124_v58  ;;  %v1644_v7 = vmax.f32 %v1626_v49, %v1632_v59 }
 0x1a2   :  { %2419 = vpow2.f32 %v1604_v21  ;;  %v2412_v29 = vpop.eup %2411  ;;  %v2096_v9 = vadd.f32 -1.0, %v2410_v36  ;;  %v1397_v62 = vsel %vm1307_vm5, %v4098_v38, %v2090_v23  ;;  %v1647_v22 = vmax.f32 %v1629_v30, %v1635_v15  ;;  %v4560_v21 = vld [vmem:[#allocation28_spill] sm:$0xff]  ;;  %v4563_v23 = vld [vmem:[#allocation62_spill] sm:$0xff]  ;;  %v4565_v30 = vld [vmem:[#allocation57_spill] sm:$0xff] }
 0x1a3   :  { %v2414_v39 = vpop.eup %2413  ;;  %vm1319_vm14 = vcmp.gt.f32.partialorder %v4115_v51, 0.0  ;;  %vm1322_vm15 = vcmp.gt.f32.partialorder %v4118_v41, 0.0  ;;  %v2099_v61 = vadd.f32 -1.0, %v2412_v29  ;;  %vm1548_vm0 = vcmp.gt.f32.partialorder %v4548_v54, 0.0  ;;  %v4564_v36 = vld [vmem:[#allocation46_spill] sm:$0xff] }
 0x1a4   :  { %v2416_v28 = vpop.eup %2415  ;;  %v2102_v13 = vadd.f32 -1.0, %v2414_v39  ;;  %v1403_v31 = vsel %vm1313_vm8, %v4108_v45, %v2096_v9  ;;  %vm1551_vm1 = vcmp.gt.f32.partialorder %v4550_v16, 0.0  ;;  %v4195_v38 = vadd.f32 %v2956_v50, %v4555_v46 }
 0x1a5   :  { %v2105_v10 = vadd.f32 -1.0, %v2416_v28  ;;  %v1400_v34 = vsel %vm1310_vm7, %v4102_v0, %v2093_v47  ;;  %v1406_v26 = vsel %vm1316_vm9, %v4112_v33, %v2099_v61  ;;  %v1415_v57 = vmax.f32 %v1397_v62, %v1403_v31 }
 0x1a6   :  { %v1409_v45 = vsel %vm1319_vm14, %v4115_v51, %v2102_v13  ;;  %v1418_v19 = vmax.f32 %v1400_v34, %v1406_v26  ;;  %v4206_v17 = vadd.f32 %v2956_v50, %v4556_v37  ;;  %v1553_v32 = vmin.f32 %v4557_v11, 0.0  ;;  %v4558_v51 = vld [vmem:[#allocation40_spill] sm:$0xff] }
 0x1a7   :  { %v2418_v40 = vpop.eup %2417  ;;  %v1412_v52 = vsel %vm1322_vm15, %v4118_v41, %v2105_v10  ;;  %v1421_v18 = vmax.f32 %v1415_v57, %v1409_v45  ;;  %v1556_v12 = vmin.f32 %v4558_v51, 0.0  ;;  %v1559_v2 = vmin.f32 %v4559_v27, 0.0 }
 0x1a8   :  { %v2420_v5 = vpop.eup %2419  ;;  %v2127_v35 = vadd.f32 -1.0, %v2418_v40  ;;  %v1424_v6 = vmax.f32 %v1418_v19, %v1412_v52  ;;  %v1562_v41 = vmin.f32 %v4152_v14, 0.0  ;;  %v1565_v44 = vmin.f32 %v4195_v38, 0.0 }
 0x1a9   :  { %v2130_v0 = vadd.f32 -1.0, %v2420_v5  ;;  %v1572_v56 = vmul.f32 1.442695, %v1553_v32  ;;  %v4228_v48 = vadd.f32 %v2956_v50, %v4560_v21  ;;  %v1578_v1 = vmul.f32 1.442695, %v1556_v12 }
 0x1aa   :  { %v1638_v33 = vsel %vm1548_vm0, %v4548_v54, %v2127_v35  ;;  %v1427_v42 = vmax.f32 %v1421_v18, %v1424_v6  ;;  %v1568_v54 = vmin.f32 %v4206_v17, 0.0  ;;  %v1590_v25 = vmul.f32 1.442695, %v1562_v41 }
 0x1ab   :  { %v1641_v53 = vsel %vm1551_vm1, %v4550_v16, %v2130_v0  ;;  %v1650_v8 = vmax.f32 %v1644_v7, %v1638_v33  ;;  %v1584_v16 = vmul.f32 1.442695, %v1559_v2  ;;  %2421 = vpow2.f32 %v1572_v56 }
 0x1ac   :  { %v1653_v43 = vmax.f32 %v1647_v22, %v1641_v53  ;;  %1450 = vmatpush.msrb.mxu3 %v1427_v42  ;;  %v1596_v55 = vmul.f32 1.442695, %v1565_v44  ;;  %v4232_v60 = vadd.f32 %v2956_v50, %v4561_v4  ;;  %2423 = vpow2.f32 %v1578_v1 }
 0x1ad   :  { %2109 = vmatmul.msk.f32.vlgmr.msrb.gmra.mxu3 %vm1182_vm6, %v2108_v24  ;;  %v1602_v58 = vmul.f32 1.442695, %v1568_v54  ;;  %v4237_v20 = vadd.f32 %v2956_v50, %v4562_v63  ;;  %2425 = vpow2.f32 %v1584_v16  ;;  %v1552_v49 = vmin.f32 %v4563_v23, 0.0 }
 0x1ae   :  { %v1656_v3 = vmax.f32 %v1650_v8, %v1653_v43  ;;  %2427 = vpow2.f32 %v1590_v25  ;;  %v1555_v47 = vmin.f32 %v4564_v36, 0.0  ;;  %v1558_v59 = vmin.f32 %v4565_v30, 0.0 }
 0x1af   :  { %2429 = vpow2.f32 %v1596_v55  ;;  %v1561_v15 = vmin.f32 %v4228_v48, 0.0  ;;  %v1564_v29 = vmin.f32 %v4232_v60, 0.0  ;;  %v1567_v9 = vmin.f32 %v4237_v20, 0.0 }
 0x1b0   :  { %1675 = vmatpush.msra.mxu1 %v1656_v3  ;;  %2431 = vpow2.f32 %v1602_v58  ;;  %v1570_v62 = vmul.f32 1.442695, %v1552_v49  ;;  %v1576_v50 = vmul.f32 1.442695, %v1555_v47  ;;  %v1582_v22 = vmul.f32 1.442695, %v1558_v59 }
 0x1b1   :  { %v2422_v7 = vpop.eup %2421  ;;  %v1588_v39 = vmul.f32 1.442695, %v1561_v15  ;;  %vm1535_vm2 = vcmp.gt.f32.partialorder %v4557_v11, 0.0  ;;  %v1594_v13 = vmul.f32 1.442695, %v1564_v29  ;;  %vm1538_vm3 = vcmp.gt.f32.partialorder %v4558_v51, 0.0 }
 0x1b2   :  { %v2424_v61 = vpop.eup %2423  ;;  %v2114_v28 = vadd.f32 -1.0, %v2422_v7  ;;  %2433 = vpow2.f32 %v1570_v62  ;;  %v1600_v40 = vmul.f32 1.442695, %v1567_v9  ;;  %vm1541_vm4 = vcmp.gt.f32.partialorder %v4559_v27, 0.0  ;;  %v2141_v49 = vld [vmem:[%s4410_s5 + $0x60] sm:$0xff]  ;;  %v2140_v47 = vld [vmem:[%s4410_s5 + $0x58] sm:$0xff] }
 0x1b3   :  { %v2426_v31 = vpop.eup %2425  ;;  %v2117_v46 = vadd.f32 -1.0, %v2424_v61  ;;  %2435 = vpow2.f32 %v1576_v50  ;;  %vm1544_vm5 = vcmp.gt.f32.partialorder %v4152_v14, 0.0  ;;  %vm1547_vm7 = vcmp.gt.f32.partialorder %v4195_v38, 0.0  ;;  %v2150_v59 = vld [vmem:[%s4410_s5 + $0x98] sm:$0xff]  ;;  %v2139_v29 = vld [vmem:[%s4410_s5 + $0x50] sm:$0xff]  ;;  %v2138_v7 = vld [vmem:[%s4410_s5 + $0x48] sm:$0xff] }
 0x1b4   :  { %v2428_v10 = vpop.eup %2427  ;;  %v2120_v34 = vadd.f32 -1.0, %v2426_v31  ;;  %v1625_v26 = vsel %vm1535_vm2, %v4557_v11, %v2114_v28  ;;  %2437 = vpow2.f32 %v1582_v22  ;;  %vm1550_vm8 = vcmp.gt.f32.partialorder %v4206_v17, 0.0  ;;  %v1699_v15 = vld [vmem:[%s4410_s5 + $0x18] sm:$0xff]  ;;  %v2149_v9 = vld [vmem:[%s4410_s5 + $0x90] sm:$0xff]  ;;  %v2148_v22 = vld [vmem:[%s4410_s5 + $0x88] sm:$0xff] }
 0x1b5   :  { %v2430_v57 = vpop.eup %2429  ;;  %v2123_v5 = vadd.f32 -1.0, %v2428_v10  ;;  %2439 = vpow2.f32 %v1588_v39  ;;  %v1628_v35 = vsel %vm1538_vm3, %v4558_v51, %v2117_v46  ;;  %vm1534_vm9 = vcmp.gt.f32.partialorder %v4563_v23, 0.0  ;;  %v1698_v50 = vld [vmem:[%s4410_s5 + $0x10] sm:$0xff]  ;;  %v1697_v61 = vld [vmem:[%s4410_s5 + $0x8] sm:$0xff]  ;;  %v2137_v28 = vld [vmem:[%s4410_s5 + $0x40] sm:$0xff] }
 0x1b6   :  { %v2432_v45 = vpop.eup %2431  ;;  %v2126_v19 = vadd.f32 -1.0, %v2430_v57  ;;  %v1631_v37 = vsel %vm1541_vm4, %v4559_v27, %v2120_v34  ;;  %2441 = vpow2.f32 %v1594_v13  ;;  %vm1537_vm10 = vcmp.gt.f32.partialorder %v4564_v36, 0.0  ;;  %v2147_v13 = vld [vmem:[%s4410_s5 + $0x80] sm:$0xff]  ;;  %v2160_v34 = vld [vmem:[%s4410_s5 + $0xd8] sm:$0x3] }
 0x1b7   :  { %v2129_v52 = vadd.f32 -1.0, %v2432_v45  ;;  %v1634_v18 = vsel %vm1544_vm5, %v4152_v14, %v2123_v5  ;;  %v1643_v0 = vmax.f32 %v1625_v26, %v1631_v37  ;;  %2443 = vpow2.f32 %v1600_v40  ;;  %v1696_v46 = vld [vmem:[%s4410_s5] sm:$0xff]  ;;  %v2136_v40 = vld [vmem:[%s4410_s5 + $0x38] sm:$0xff]  ;;  %v2169_v26 = vld [vmem:[%s4410_s5 + $0x110] sm:$0x3] }
 0x1b8   :  { %v2434_v11 = vpop.eup %2433  ;;  %v1637_v32 = vsel %vm1547_vm7, %v4195_v38, %v2126_v19  ;;  %v1646_v6 = vmax.f32 %v1628_v35, %v1634_v18  ;;  %vm1540_vm11 = vcmp.gt.f32.partialorder %v4565_v30, 0.0  ;;  %vm1543_vm12 = vcmp.gt.f32.partialorder %v4228_v48, 0.0  ;;  %v2146_v57 = vld [vmem:[%s4410_s5 + $0x78] sm:$0xff]  ;;  %v2159_v45 = vld [vmem:[%s4410_s5 + $0xd0] sm:$0xff]  ;;  %v2168_v19 = vld [vmem:[%s4410_s5 + $0x108] sm:$0xff] }
 0x1b9   :  { %v2436_v33 = vpop.eup %2435  ;;  %v1640_v12 = vsel %vm1550_vm8, %v4206_v17, %v2129_v52  ;;  %v1649_v2 = vmax.f32 %v1643_v0, %v1637_v32  ;;  %v2113_v53 = vadd.f32 -1.0, %v2434_v11  ;;  %vm1546_vm13 = vcmp.gt.f32.partialorder %v4232_v60, 0.0  ;;  %v2145_v35 = vld [vmem:[%s4410_s5 + $0x70] sm:$0xff]  ;;  %v2158_v37 = vld [vmem:[%s4410_s5 + $0xc8] sm:$0xff]  ;;  %v2167_v52 = vld [vmem:[%s4410_s5 + $0x100] sm:$0xff] }
 0x1ba   :  { %v2438_v51 = vpop.eup %2437  ;;  %v1652_v8 = vmax.f32 %v1646_v6, %v1640_v12  ;;  %v2116_v27 = vadd.f32 -1.0, %v2436_v33  ;;  %vm1549_vm14 = vcmp.gt.f32.partialorder %v4237_v20, 0.0  ;;  %vm1707_vm15 = vcmask 1041408   ;;  %v2157_v11 = vld [vmem:[%s4410_s5 + $0xc0] sm:$0xff]  ;;  %v2166_v32 = vld [vmem:[%s4410_s5 + $0xf8] sm:$0xff]  ;;  %v1687_v6 = vpop.permute.xlu0 %1686 }
 0x1bb   :  { %v2440_v41 = vpop.eup %2439  ;;  %v2119_v14 = vadd.f32 -1.0, %v2438_v51  ;;  %v1624_v44 = vsel %vm1534_vm9, %v4563_v23, %v2113_v53  ;;  %v2131_v23 = vld [vmem:[%s4408_s3 + $0xc] sm:$0xf]  ;;  %v2156_v12 = vld [vmem:[%s4410_s5 + $0xb8] sm:$0xff]  ;;  %v2155_v51 = vld [vmem:[%s4410_s5 + $0xb0] sm:$0xff]  ;;  %vm1863_vm1 = vcmask 80896  }
 0x1bc   :  { %v2442_v42 = vpop.eup %2441  ;;  %v1655_v24 = vmax.f32 %v1649_v2, %v1652_v8  ;;  %v2122_v38 = vadd.f32 -1.0, %v2440_v41  ;;  %v1627_v21 = vsel %vm1537_vm10, %v4564_v36, %v2116_v27  ;;  %v1700_v36 = vld [vmem:[%s4410_s5 + $0x20] sm:$0xff]  ;;  %v2165_v2 = vld [vmem:[%s4410_s5 + $0xf0] sm:$0xff]  ;;  %v2164_v8 = vld [vmem:[%s4410_s5 + $0xe8] sm:$0xff]  ;;  %vm1890_vm2 = vcmask 11264  }
 0x1bd   :  { %v2444_v43 = vpop.eup %2443  ;;  %v2125_v17 = vadd.f32 -1.0, %v2442_v42  ;;  %v1630_v54 = vsel %vm1540_vm11, %v4565_v30, %v2119_v14  ;;  %v2151_v30 = vld [vmem:[%s4410_s5 + $0xa0] sm:$0x3]  ;;  %v2154_v41 = vld [vmem:[%s4410_s5 + $0xa8] sm:$0xff]  ;;  %vm1961_vm8 = vcmask 8192  }
 0x1be   :  { %1676 = vmatpush.msra.mxu1 %v1655_v24  ;;  %v2128_v56 = vadd.f32 -1.0, %v2444_v43  ;;  %v1633_v1 = vsel %vm1543_vm12, %v4228_v48, %v2122_v38  ;;  %v1642_v16 = vmax.f32 %v1624_v44, %v1630_v54  ;;  %v1702_v48 = vld [vmem:[%s4410_s5 + $0x30] sm:$0x3]  ;;  %v2163_v14 = vld [vmem:[%s4410_s5 + $0xe0] sm:$0xff]  ;;  %v1862_v38 = vld [vmem:[%s4411_s6 + $0x8] sm:$0x3] }
 0x1bf   :  { %v1636_v25 = vsel %vm1546_vm13, %v4232_v60, %v2125_v17  ;;  %v1645_v3 = vmax.f32 %v1627_v21, %v1633_v1  ;;  %v2142_v60 = vld [vmem:[%s4410_s5 + $0x68] sm:$0x3]  ;;  %2134 = vmatpush.msk.msrb.mxu2 %vm1707_vm15, %v1702_v48  ;;  %v1861_v43 = vld [vmem:[%s4411_s6] sm:$0xff] }
 0x1c0   :  { %v1639_v55 = vsel %vm1549_vm14, %v4237_v20, %v2128_v56  ;;  %v1648_v4 = vmax.f32 %v1642_v16, %v1636_v25  ;;  %v1701_v20 = vld [vmem:[%s4410_s5 + $0x28] sm:$0xff]  ;;  %2143 = vmatpush.msk.msra.mxu3 %vm1707_vm15, %v2142_v60 }
 0x1c1   :  { %v1651_v58 = vmax.f32 %v1645_v3, %v1639_v55  ;;  %1721 = vmatpush.msrb.mxu2 %v1701_v20  ;;  %v1859_v55 = vld [vmem:[%s4412_s7] sm:$0xf] }
 0x1c2   :  { %1752 = vmatpush.msra.mxu3 %v2141_v49 }
 0x1c3   :  { %v1654_v63 = vmax.f32 %v1648_v4, %v1651_v58  ;;  %1722 = vmatpush.msrb.mxu2 %v1700_v36  ;;  %v2174_v4 = vld [vmem:[%s4412_s7 + $0x4] sm:$0xf] }
 0x1c4   :  { %1753 = vmatpush.msra.mxu3 %v2140_v47 }
 0x1c5   :  { %1677 = vmatpush.msra.mxu1 %v1654_v63  ;;  %1723 = vmatpush.msrb.mxu2 %v1699_v15 }
 0x1c6   :  { %2132 = vmatmul.msk.f32.vlgmr.msra.gmra.mxu1 %vm1182_vm6, %v2131_v23  ;;  %1754 = vmatpush.msra.mxu3 %v2139_v29  ;;  %vm1703_vm6 = vcmask 408576  }
 0x1c7   :  { %2152 = vmatpush.msk.msrb.mxu1 %vm1707_vm15, %v2151_v30  ;;  %1724 = vmatpush.msrb.mxu2 %v1698_v50 }
 0x1c8   :  { %1755 = vmatpush.msra.mxu3 %v2138_v7 }
 0x1c9   :  { %1784 = vmatpush.msrb.mxu1 %v2150_v59  ;;  %1725 = vmatpush.msrb.mxu2 %v1697_v61  ;;  %v1935_v61 = vstv %s2177_s26 }
 0x1ca   :  { %1756 = vmatpush.msra.mxu3 %v2137_v28 }
 0x1cb   :  { %1785 = vmatpush.msrb.mxu1 %v2149_v9  ;;  %1726 = vmatpush.msrb.mxu2 %v1696_v46 }
 0x1cc   :  { %1757 = vmatpush.msra.mxu3 %v2136_v40 }
 0x1cd   :  { %1786 = vmatpush.msrb.mxu1 %v2148_v22  ;;  %2161 = vmatpush.msk.msra.mxu2 %vm1707_vm15, %v2160_v34 }
 0x1ce   :  { %2170 = vmatpush.msk.msrb.mxu3 %vm1707_vm15, %v2169_v26 }
 0x1cf   :  { %1787 = vmatpush.msrb.mxu1 %v2147_v13  ;;  %1816 = vmatpush.msra.mxu2 %v2159_v45 }
 0x1d0   :  { %1848 = vmatpush.msrb.mxu3 %v2168_v19 }
 0x1d1   :  { %1788 = vmatpush.msrb.mxu1 %v2146_v57  ;;  %1817 = vmatpush.msra.mxu2 %v2158_v37 }
 0x1d2   :  { %1849 = vmatpush.msrb.mxu3 %v2167_v52 }
 0x1d3   :  { %1789 = vmatpush.msrb.mxu1 %v2145_v35  ;;  %1818 = vmatpush.msra.mxu2 %v2157_v11 }
 0x1d4   :  { %1850 = vmatpush.msrb.mxu3 %v2166_v32 }
 0x1d5   :  { %1819 = vmatpush.msra.mxu2 %v2156_v12  ;;  %2172 = vmatpush.msk.msra.mxu1 %vm1707_vm15, %v1862_v38 }
 0x1d6   :  { %1851 = vmatpush.msrb.mxu3 %v2165_v2 }
 0x1d7   :  { %1820 = vmatpush.msra.mxu2 %v2155_v51  ;;  %1885 = vmatpush.msra.mxu1 %v1861_v43 }
 0x1d8   :  { %1852 = vmatpush.msrb.mxu3 %v2164_v8 }
 0x1d9   :  { %1821 = vmatpush.msra.mxu2 %v2154_v41 }
 0x1da   :  { %1853 = vmatpush.msrb.mxu3 %v2163_v14 }
 0x218   :  { %v1203_v62 = vpop.f32.mrf.mxu1 }
 0x21b   :  { %v1226_v39 = vpop.f32.mrf.mxu0 }
 0x21c   :  { %v1227_v10 = vadd.f32 %v1226_v39, %v1203_v62  ;;  %v1899_v39 = vstv %s1898_s25 }
 0x230   :  { %v1452_v31 = vpop.f32.mrf.mxu3 }
 0x231   :  { %v1455_v5 = vadd.f32 %v1452_v31, %v1227_v10 }
 0x243   :  { %v1679_v18 = vpop.f32.mrf.mxu1 }
 0x244   :  { %v1682_v0 = vadd.f32 %v1679_v18, %v1455_v5 }
 0x246   :  { %v1689_v33 = vadd.f32 %v1687_v6, %v1682_v0 }
 0x248   :  { %v1691_v53 = vmin.f32 %v1689_v33, 0.0  ;;  %vm1690_vm0 = vcmp.gt.f32.partialorder %v1689_v33, 0.0 }
 0x24a   :  { %v1692_v27 = vmul.f32 1.442695, %v1691_v53 }
 0x24c   :  { %2445 = vpow2.f32 %v1692_v27 }
 0x252   :  { %v2446_v44 = vpop.eup %2445 }
 0x253   :  { %v2133_v42 = vadd.f32 -1.0, %v2446_v44 }
 0x255   :  { %v1695_v24 = vsel %vm1690_vm0, %v1689_v33, %v2133_v42 }
 0x256   :  { %2135 = vmatmul.msk.f32.vlgmr.msrb.gmra.mxu2 %vm1703_vm6, %v1695_v24  ;;  %2144 = vmatmul.msk.f32.vlgmr.msra.gmra.mxu3 %vm1703_vm6, %v1695_v24 }
 0x257   :  { %2153 = vmatmul.msk.f32.vlgmr.msrb.gmra.mxu1 %vm1703_vm6, %v1695_v24  ;;  %2175 = vmatpush.msk.msrb.mxu2 %vm1707_vm15, %v1862_v38 }
 0x259   :  { %1922 = vmatpush.msrb.mxu2 %v1861_v43 }
 0x25e   :  { %2162 = vmatmul.msk.f32.vlgmr.msra.gmra.mxu2 %vm1703_vm6, %v1695_v24  ;;  %2171 = vmatmul.msk.f32.vlgmr.msrb.gmra.mxu3 %vm1703_vm6, %v1695_v24 }
 0x2d4   :  { %v1791_v21 = vpop.f32.mrf.mxu1 }
 0x2d9   :  { %v1728_v17 = vpop.f32.mrf.mxu2  ;;  %v1759_v54 = vpop.f32.mrf.mxu3 }
 0x2da   :  { %v1762_v56 = vmax.f32 %v1728_v17, %v1759_v54 }
 0x2dc   :  { %v1794_v1 = vmax.f32 %v1762_v56, %v1791_v21 }
 0x2e1   :  { %v1823_v16 = vpop.f32.mrf.mxu2  ;;  %v1855_v3 = vpop.f32.mrf.mxu3 }
 0x2e2   :  { %v1826_v25 = vmax.f32 %v1794_v1, %v1823_v16 }
 0x2e4   :  { %v1858_v58 = vmax.f32 %v1826_v25, %v1855_v3 }
 0x2e6   :  { %v1860_v63 = vmul.f32 %v1859_v55, %v1858_v58  ;;  %v1903_v23 = vmul.f32 %v2174_v4, %v1858_v58 }
 0x2e8   :  { %2173 = vmatmul.msk.f32.vlgmr.msra.gmra.mxu1 %vm1863_vm1, %v1860_v63  ;;  %2176 = vmatmul.msk.f32.vlgmr.msrb.gmra.mxu2 %vm1863_vm1, %v1903_v23 }
 0x365   :  { %v1887_v48 = vpop.f32.mrf.mxu1 }
 0x366   :  { %v1891_v60 = vsel %vm1890_vm2, %v1887_v48, 0.0 }
 0x367   :  { %v1892_v20 = vrot.slane %v1891_v60, 4 }
 0x369   :  { %v1893_v49 = vadd.f32 %v1892_v20, %v1891_v60 }
 0x36b   :  { %v1894_v36 = vrot.slane %v1893_v49, 2  ;;  %v1924_v47 = vpop.f32.mrf.mxu2 }
 0x36c   :  { %v1927_v30 = vsel %vm1890_vm2, %v1924_v47, 0.0 }
 0x36d   :  { %v1895_v59 = vadd.f32 %v1894_v36, %v1893_v49  ;;  %v1928_v15 = vrot.slane %v1927_v30, 4 }
 0x36f   :  { %v1929_v29 = vadd.f32 %v1928_v15, %v1927_v30  ;;  %v1896_v9 = vrot.slane %v1895_v59, 1 }
 0x371   :  { %v1930_v62 = vrot.slane %v1929_v29, 2  ;;  %v1897_v7 = vadd.f32 %v1896_v9, %v1895_v59 }
 0x373   :  { %v1931_v50 = vadd.f32 %v1930_v62, %v1929_v29  ;;  %v1900_v13 = vadd.f32 %v1899_v39, %v1897_v7 }
 0x375   :  { %v1932_v22 = vrot.slane %v1931_v50, 1 }
 0x377   :  { %v1933_v28 = vadd.f32 %v1932_v22, %v1931_v50 }
 0x379   :  { %v1936_v31 = vadd.f32 %v1935_v61, %v1933_v28 }
 0x37b   :  { %v1937_v46 = vmax.f32 %v1900_v13, %v1936_v31 }
 0x37d   :  { %v1938_v40 = vsub.f32 %v1900_v13, %v1937_v46  ;;  %v1941_v10 = vsub.f32 %v1936_v31, %v1937_v46 }
 0x37f   :  { %v1939_v34 = vmul.f32 1.442695, %v1938_v40  ;;  %v1942_v26 = vmul.f32 1.442695, %v1941_v10 }
 0x381   :  { %2447 = vpow2.f32 %v1939_v34 }
 0x382   :  { %2449 = vpow2.f32 %v1942_v26 }
 0x387   :  { %v2448_v57 = vpop.eup %2447 }
 0x388   :  { %v2450_v5 = vpop.eup %2449 }
 0x389   :  { %v1944_v45 = vadd.f32 %v2450_v5, %v2448_v57 }
 0x38b   :  { %2451 = vrcp.f32 %v1944_v45  ;;  %v1956_v52 = vand.u32 2147483648, %v1944_v45  ;;  %v1954_v0 = vand.u32 2147483647, %v1944_v45  ;;  %vm1950_vm4 = vweird.f32 %v1944_v45 }
 0x38d   :  { %v1957_v32 = vor.u32 1.1754944e-38, %v1956_v52  ;;  %vm1955_vm7 = vcmp.eq.f32.partialorder %v1954_v0, 8.507059e+37 }
 0x391   :  { %v2452_v19 = vpop.eup %2451 }
 0x392   :  { %v1946_v35 = vmul.f32 %v2452_v19, %v1944_v45  ;;  %vm1951_vm3 = vweird.f32 %v2452_v19 }
 0x393   :  { %vm1952_vm5 = vmor %vm1950_vm4, %vm1951_vm3 }
 0x394   :  { %v1947_v37 = vsub.f32 1.0, %v1946_v35 }
 0x396   :  { %v1948_v18 = vmul.f32 %v2452_v19, %v1947_v37 }
 0x398   :  { %v1949_v11 = vadd.f32 %v2452_v19, %v1948_v18 }
 0x39a   :  { %v1953_v6 = vsel %vm1952_vm5, %v2452_v19, %v1949_v11 }
 0x39b   :  { %v1958_v33 = vsel %vm1955_vm7, %v1957_v32, %v1953_v6 }
 0x39c   :  { %v1960_v12 = vmul.f32 %v2448_v57, %v1958_v33  ;;  %v1963_v2 = vmul.f32 %v2450_v5, %v1958_v33 }
 0x39e   :  { %1962 = vst.msk [vmem:[%s4415_s10] sm:$0x1] %vm1961_vm8, %v1960_v12 }
 0x39f   :  { %1964 = vst.msk [vmem:[%s4415_s10 + $0x1] sm:$0x1] %vm1961_vm8, %v1963_v2 }
 0x3a0   :  { %1969 = vsyncpa [#allocation3], 1 }
 0x3a1   :  { %1970 = vsyncpa [#allocation5], 1 }

</bundles_post_ra>
